<compile_context>
chip_gen: v5e
topology: v5e:2x2
jax: 0.10.0
libtpu: 0.0.40
codegen_flags: <defaults>
</compile_context>

<pallas_src>
import functools

import jax
import jax.numpy as jnp
from jax.experimental import pallas as pl
from jax.experimental.pallas import tpu as pltpu


def _round_up(x, m):
    return ((x + m - 1) // m) * m


def _pick_tile_h(H, target=8):
    """Largest divisor of H that is <= target (keeps VMEM bounded; v7x-safe)."""
    th = min(target, H)
    while H % th:
        th -= 1
    return th


def _fused_heads_kernel(x_ref, w1_ref, b1_ref,
                        w2d_ref, b2d_ref, w2e_ref, b2e_ref,
                        od_ref, oe_ref, *, TH, W, CIN, CHID_D):
    """Fused detector + descriptor heads for one (batch, row-block) tile.

    x_ref   : (TH+2, W+2, CIN)          bf16, zero-padded halo'd row block (NHWC)
    w1_ref  : (9*CIN, CHID_D + CHID_E)  bf16, both heads' 3x3 weights, tap-major rows
    b1_ref  : (1, CHID_D + CHID_E)      f32
    w2*_ref : (CHID_*, COUT_*)          bf16, 1x1 weights (128-lane padded)
    b2*_ref : (1, COUT_*)               f32
    o*_ref  : (TH*W, COUT_*)            f32, lane-dense output rows
    """
    # im2col: 9 shifted windows concatenated on the (128-aligned) lane axis.
    taps = []
    for dy in range(3):
        for dx in range(3):
            taps.append(x_ref[dy:dy + TH, dx:dx + W, :])
    patch = jnp.concatenate(taps, axis=-1).reshape(TH * W, 9 * CIN)  # bf16

    # Stage 1: ONE MXU matmul (K = 9*CIN) computes BOTH heads' hidden layers.
    h = jnp.dot(patch, w1_ref[...], preferred_element_type=jnp.float32)
    h = jnp.maximum(h + b1_ref[...], 0.0).astype(jnp.bfloat16)       # bias+ReLU

    # Stage 2: per-head 1x1 conv.  CHID_D % 128 == 0 -> vreg-aligned lane split.
    hd = h[:, :CHID_D]
    he = h[:, CHID_D:]
    od_ref[...] = (jnp.dot(hd, w2d_ref[...], preferred_element_type=jnp.float32)
                   + b2d_ref[...]).astype(od_ref.dtype)
    oe_ref[...] = (jnp.dot(he, w2e_ref[...], preferred_element_type=jnp.float32)
                   + b2e_ref[...]).astype(oe_ref.dtype)


def _prep_head_weights(w1, b1, w2, b2, cin_p):
    """PyTorch layouts -> kernel layouts (bf16 matmuls, f32 biases, lane pads)."""
    chid, cin = w1.shape[0], w1.shape[1]
    cout = w2.shape[0]
    chid_p = _round_up(chid, 128)
    cout_p = _round_up(cout, 128)
    # (Chid, Cin, 3, 3) -> (ky, kx, cin, chid); pad cin & chid; row = (ky*3+kx)*cin_p + cin
    w1k = jnp.transpose(w1, (2, 3, 1, 0))
    w1k = jnp.pad(w1k, ((0, 0), (0, 0), (0, cin_p - cin), (0, chid_p - chid)))
    w1k = w1k.reshape(9 * cin_p, chid_p).astype(jnp.bfloat16)
    b1k = jnp.pad(b1, (0, chid_p - chid)).astype(jnp.float32)
    # (Cout, Chid, 1, 1) -> (Chid, Cout); pad rows (chid) and cols (cout) to 128 mults.
    w2k = jnp.transpose(w2[:, :, 0, 0], (1, 0))
    w2k = jnp.pad(w2k, ((0, chid_p - chid), (0, cout_p - cout))).astype(jnp.bfloat16)
    b2k = jnp.pad(b2, (0, cout_p - cout)).reshape(1, cout_p).astype(jnp.float32)
    return w1k, b1k, w2k, b2k, chid_p, cout, cout_p


def superpoint_decoder_forward(x_nchw, params, *, tile_h=8):
    """Pallas equivalent of SuperPointDecoder.forward: (pointness, desc)."""
    N, Cin, H, W = x_nchw.shape
    det, desc = params["detector"], params["descriptor"]
    cin_p = _round_up(Cin, 128)

    w1d, b1d, w2d, b2d, chd_p, Cdet, Cdet_p = _prep_head_weights(
        det["w1"], det["b1"], det["w2"], det["b2"], cin_p)
    w1e, b1e, w2e, b2e, che_p, Cdesc, Cdesc_p = _prep_head_weights(
        desc["w1"], desc["b1"], desc["w2"], desc["b2"], cin_p)

    # Fuse both heads' 3x3 weights along the output-channel (lane) axis so the
    # kernel does a single stage-1 matmul shared by detector + descriptor.
    w1c = jnp.concatenate([w1d, w1e], axis=1)                 # (9*cin_p, chd_p+che_p)
    b1c = jnp.concatenate([b1d, b1e]).reshape(1, chd_p + che_p)

    th = _pick_tile_h(H, tile_h)
    if (th * W) % 8 != 0:      # keep output row blocks sublane-aligned
        th = H
    NB = H // th

    # NCHW -> NHWC, 1-px zero halo for the 3x3 "same" conv, pad Cin lanes, bf16.
    x = jnp.transpose(x_nchw, (0, 2, 3, 1)).astype(jnp.bfloat16)
    x = jnp.pad(x, ((0, 0), (1, 1), (1, 1), (0, cin_p - Cin)))
    # Halo'd row blocks: block r covers output rows [r*th, (r+1)*th) plus one
    # halo row above and below -> (N, NB, th+2, W+2, cin_p).
    x_blocks = jnp.stack([x[:, r * th:r * th + th + 2] for r in range(NB)],
                         axis=1)

    kernel = functools.partial(_fused_heads_kernel,
                               TH=th, W=W, CIN=cin_p, CHID_D=chd_p)
    wmap = lambda n, r: (0, 0)

    out_det, out_desc = pl.pallas_call(
        kernel,
        out_shape=(
            jax.ShapeDtypeStruct((N, H * W, Cdet_p), jnp.float32),
            jax.ShapeDtypeStruct((N, H * W, Cdesc_p), jnp.float32),
        ),
        grid_spec=pltpu.PrefetchScalarGridSpec(
            num_scalar_prefetch=0,
            grid=(N, NB),
            in_specs=[
                pl.BlockSpec((None, None, th + 2, W + 2, cin_p),
                             lambda n, r: (n, r, 0, 0, 0)),
                pl.BlockSpec((9 * cin_p, chd_p + che_p), wmap),
                pl.BlockSpec((1, chd_p + che_p), wmap),
                pl.BlockSpec((chd_p, Cdet_p), wmap),
                pl.BlockSpec((1, Cdet_p), wmap),
                pl.BlockSpec((che_p, Cdesc_p), wmap),
                pl.BlockSpec((1, Cdesc_p), wmap),
            ],
            out_specs=[
                pl.BlockSpec((None, th * W, Cdet_p), lambda n, r: (n, r, 0)),
                pl.BlockSpec((None, th * W, Cdesc_p), lambda n, r: (n, r, 0)),
            ],
        ),
        compiler_params=pltpu.CompilerParams(
            dimension_semantics=("parallel", "parallel")),
    )(x_blocks, w1c, b1c, w2d, b2d, w2e, b2e)

    # Un-pad lanes, restore (N, H, W, C), go back to PyTorch NCHW.
    pointness = jnp.transpose(
        out_det[:, :, :Cdet].reshape(N, H, W, Cdet), (0, 3, 1, 2))
    descriptor = jnp.transpose(
        out_desc[:, :, :Cdesc].reshape(N, H, W, Cdesc), (0, 3, 1, 2))
    return pointness, descriptor


# ----------------------------- reference (pure JAX) ---------------------------
def _ref_head(x, w1, b1, w2, b2):
    """Same math path as the kernel (bf16 inputs/weights, f32 accumulate)."""
    y = jax.lax.conv_general_dilated(
        x.astype(jnp.bfloat16), w1.astype(jnp.bfloat16),
        window_strides=(1, 1), padding="SAME",
        dimension_numbers=("NCHW", "OIHW", "NCHW"),
        preferred_element_type=jnp.float32)
    y = jnp.maximum(y + b1[None, :, None, None], 0.0).astype(jnp.bfloat16)
    y = jax.lax.conv_general_dilated(
        y, w2.astype(jnp.bfloat16),
        window_strides=(1, 1), padding="VALID",
        dimension_numbers=("NCHW", "OIHW", "NCHW"),
        preferred_element_type=jnp.float32)
    return y + b2[None, :, None, None]


def _init_params(key, cin, chid, cdet, cdesc):
    ks = jax.random.split(key, 8)
    scale = 0.1

    def w(k, shape):
        return (scale * jax.random.normal(k, shape)).astype(jnp.float32)

    return {
        "detector": {
            "w1": w(ks[0], (chid, cin, 3, 3)),
            "b1": w(ks[1], (chid,)),
            "w2": w(ks[2], (cdet, chid, 1, 1)),
            "b2": w(ks[3], (cdet,)),
        },
        "descriptor": {
            "w1": w(ks[4], (chid, cin, 3, 3)),
            "b1": w(ks[5], (chid,)),
            "w2": w(ks[6], (cdesc, chid, 1, 1)),
            "b2": w(ks[7], (cdesc,)),
        },
    }


if __name__ == "__main__":
    key = jax.random.PRNGKey(0)
    kx, kp = jax.random.split(key)

    N, Cin, H, W = 2, 4, 16, 16
    Chid, Cdet, Cdesc = 32, 65, 32   # 65 = SuperPoint 8x8 cells + dustbin

    x = jax.random.normal(kx, (N, Cin, H, W), dtype=jnp.float32)
    params = _init_params(kp, Cin, Chid, Cdet, Cdesc)

    fwd = jax.jit(superpoint_decoder_forward)
    pointness, descr = fwd(x, params)
    pointness = jax.block_until_ready(pointness)
    descr = jax.block_until_ready(descr)

    # correctness check against plain-JAX convs (same bf16-in / f32-acc path)
    det_p, desc_p = params["detector"], params["descriptor"]
    ref_point = _ref_head(x, det_p["w1"], det_p["b1"], det_p["w2"], det_p["b2"])
    ref_desc = _ref_head(x, desc_p["w1"], desc_p["b1"], desc_p["w2"], desc_p["b2"])

    assert pointness.shape == (N, Cdet, H, W)
    assert descr.shape == (N, Cdesc, H, W)
    assert jnp.allclose(pointness, ref_point, atol=2e-2, rtol=2e-2)
    assert jnp.allclose(descr, ref_desc, atol=2e-2, rtol=2e-2)

    print("KERNEL_OK")
</pallas_src>

<mosaic_0001>
module attributes {stable_mosaic.version = 11 : i64} {
  func.func @_fused_heads_kernel(%arg0: i32, %arg1: i32, %arg2: memref<1x1x10x18x128xbf16, #tpu.memory_space<vmem>>, %arg3: memref<1152x256xbf16, #tpu.memory_space<vmem>>, %arg4: memref<1x256xf32, #tpu.memory_space<vmem>>, %arg5: memref<128x128xbf16, #tpu.memory_space<vmem>>, %arg6: memref<1x128xf32, #tpu.memory_space<vmem>>, %arg7: memref<128x128xbf16, #tpu.memory_space<vmem>>, %arg8: memref<1x128xf32, #tpu.memory_space<vmem>>, %arg9: memref<1x128x128xf32, #tpu.memory_space<vmem>>, %arg10: memref<1x128x128xf32, #tpu.memory_space<vmem>>) attributes {dimension_semantics = [#tpu.dimension_semantics<parallel>, #tpu.dimension_semantics<parallel>], iteration_bounds = array<i64: 2, 2>, scalar_prefetch = 0 : i64, scratch_operands = 0 : i64, tpu.core_type = #tpu.core_type<tc>, window_params = [{transform_indices = @transform_0, window_bounds = array<i64: 1, 1, 10, 18, 128>}, {pipeline_mode = #tpu.pipeline_mode<synchronous>, transform_indices = @transform_1, window_bounds = array<i64: 1152, 256>}, {pipeline_mode = #tpu.pipeline_mode<synchronous>, transform_indices = @transform_2, window_bounds = array<i64: 1, 256>}, {pipeline_mode = #tpu.pipeline_mode<synchronous>, transform_indices = @transform_3, window_bounds = array<i64: 128, 128>}, {pipeline_mode = #tpu.pipeline_mode<synchronous>, transform_indices = @transform_4, window_bounds = array<i64: 1, 128>}, {pipeline_mode = #tpu.pipeline_mode<synchronous>, transform_indices = @transform_5, window_bounds = array<i64: 128, 128>}, {pipeline_mode = #tpu.pipeline_mode<synchronous>, transform_indices = @transform_6, window_bounds = array<i64: 1, 128>}, {transform_indices = @transform_7, window_bounds = array<i64: 1, 128, 128>}, {transform_indices = @transform_8, window_bounds = array<i64: 1, 128, 128>}]} {
    %c0 = arith.constant 0 : index
    %c0_0 = arith.constant 0 : index
    %c0_1 = arith.constant 0 : index
    %c0_2 = arith.constant 0 : index
    %c0_3 = arith.constant 0 : index
    %0 = vector.load %arg2[%c0, %c0_0, %c0_1, %c0_2, %c0_3] : memref<1x1x10x18x128xbf16, #tpu.memory_space<vmem>>, vector<1x1x8x16x128xbf16>
    %1 = vector.shape_cast %0 : vector<1x1x8x16x128xbf16> to vector<8x16x128xbf16>
    %c0_4 = arith.constant 0 : index
    %c0_5 = arith.constant 0 : index
    %c0_6 = arith.constant 0 : index
    %c1 = arith.constant 1 : index
    %c0_7 = arith.constant 0 : index
    %2 = vector.load %arg2[%c0_4, %c0_5, %c0_6, %c1, %c0_7] : memref<1x1x10x18x128xbf16, #tpu.memory_space<vmem>>, vector<1x1x8x16x128xbf16>
    %3 = vector.shape_cast %2 : vector<1x1x8x16x128xbf16> to vector<8x16x128xbf16>
    %c0_8 = arith.constant 0 : index
    %c0_9 = arith.constant 0 : index
    %c0_10 = arith.constant 0 : index
    %c2 = arith.constant 2 : index
    %c0_11 = arith.constant 0 : index
    %4 = vector.load %arg2[%c0_8, %c0_9, %c0_10, %c2, %c0_11] : memref<1x1x10x18x128xbf16, #tpu.memory_space<vmem>>, vector<1x1x8x16x128xbf16>
    %5 = vector.shape_cast %4 : vector<1x1x8x16x128xbf16> to vector<8x16x128xbf16>
    %c0_12 = arith.constant 0 : index
    %c0_13 = arith.constant 0 : index
    %c1_14 = arith.constant 1 : index
    %c0_15 = arith.constant 0 : index
    %c0_16 = arith.constant 0 : index
    %6 = vector.load %arg2[%c0_12, %c0_13, %c1_14, %c0_15, %c0_16] : memref<1x1x10x18x128xbf16, #tpu.memory_space<vmem>>, vector<1x1x8x16x128xbf16>
    %7 = vector.shape_cast %6 : vector<1x1x8x16x128xbf16> to vector<8x16x128xbf16>
    %c0_17 = arith.constant 0 : index
    %c0_18 = arith.constant 0 : index
    %c1_19 = arith.constant 1 : index
    %c1_20 = arith.constant 1 : index
    %c0_21 = arith.constant 0 : index
    %8 = vector.load %arg2[%c0_17, %c0_18, %c1_19, %c1_20, %c0_21] : memref<1x1x10x18x128xbf16, #tpu.memory_space<vmem>>, vector<1x1x8x16x128xbf16>
    %9 = vector.shape_cast %8 : vector<1x1x8x16x128xbf16> to vector<8x16x128xbf16>
    %c0_22 = arith.constant 0 : index
    %c0_23 = arith.constant 0 : index
    %c1_24 = arith.constant 1 : index
    %c2_25 = arith.constant 2 : index
    %c0_26 = arith.constant 0 : index
    %10 = vector.load %arg2[%c0_22, %c0_23, %c1_24, %c2_25, %c0_26] : memref<1x1x10x18x128xbf16, #tpu.memory_space<vmem>>, vector<1x1x8x16x128xbf16>
    %11 = vector.shape_cast %10 : vector<1x1x8x16x128xbf16> to vector<8x16x128xbf16>
    %c0_27 = arith.constant 0 : index
    %c0_28 = arith.constant 0 : index
    %c2_29 = arith.constant 2 : index
    %c0_30 = arith.constant 0 : index
    %c0_31 = arith.constant 0 : index
    %12 = vector.load %arg2[%c0_27, %c0_28, %c2_29, %c0_30, %c0_31] : memref<1x1x10x18x128xbf16, #tpu.memory_space<vmem>>, vector<1x1x8x16x128xbf16>
    %13 = vector.shape_cast %12 : vector<1x1x8x16x128xbf16> to vector<8x16x128xbf16>
    %c0_32 = arith.constant 0 : index
    %c0_33 = arith.constant 0 : index
    %c2_34 = arith.constant 2 : index
    %c1_35 = arith.constant 1 : index
    %c0_36 = arith.constant 0 : index
    %14 = vector.load %arg2[%c0_32, %c0_33, %c2_34, %c1_35, %c0_36] : memref<1x1x10x18x128xbf16, #tpu.memory_space<vmem>>, vector<1x1x8x16x128xbf16>
    %15 = vector.shape_cast %14 : vector<1x1x8x16x128xbf16> to vector<8x16x128xbf16>
    %c0_37 = arith.constant 0 : index
    %c0_38 = arith.constant 0 : index
    %c2_39 = arith.constant 2 : index
    %c2_40 = arith.constant 2 : index
    %c0_41 = arith.constant 0 : index
    %16 = vector.load %arg2[%c0_37, %c0_38, %c2_39, %c2_40, %c0_41] : memref<1x1x10x18x128xbf16, #tpu.memory_space<vmem>>, vector<1x1x8x16x128xbf16>
    %17 = vector.shape_cast %16 : vector<1x1x8x16x128xbf16> to vector<8x16x128xbf16>
    %18 = tpu.concatenate %1, %3, %5, %7, %9, %11, %13, %15, %17 in 2 : vector<8x16x128xbf16>, vector<8x16x128xbf16>, vector<8x16x128xbf16>, vector<8x16x128xbf16>, vector<8x16x128xbf16>, vector<8x16x128xbf16>, vector<8x16x128xbf16>, vector<8x16x128xbf16>, vector<8x16x128xbf16> -> vector<8x16x1152xbf16>
    %19 = vector.shape_cast %18 : vector<8x16x1152xbf16> to vector<128x1152xbf16>
    %c0_42 = arith.constant 0 : index
    %c0_43 = arith.constant 0 : index
    %20 = vector.load %arg3[%c0_42, %c0_43] : memref<1152x256xbf16, #tpu.memory_space<vmem>>, vector<1152x256xbf16>
    %cst = arith.constant dense<0.000000e+00> : vector<128x256xf32>
    %21 = tpu.matmul %19, %20, %cst {dimension_numbers = #tpu.dot_dimension_numbers<[1], [0], [0], [1], [0, 0, 1, 1], [], []>} : vector<128x1152xbf16>, vector<1152x256xbf16>, vector<128x256xf32> -> vector<128x256xf32>
    %c0_44 = arith.constant 0 : index
    %c0_45 = arith.constant 0 : index
    %22 = vector.load %arg4[%c0_44, %c0_45] : memref<1x256xf32, #tpu.memory_space<vmem>>, vector<1x256xf32>
    %23 = vector.broadcast %22 : vector<1x256xf32> to vector<128x256xf32>
    %24 = arith.addf %21, %23 : vector<128x256xf32>
    %cst_46 = arith.constant 0.000000e+00 : f32
    %25 = vector.broadcast %cst_46 : f32 to vector<128x256xf32>
    %26 = arith.maximumf %24, %25 : vector<128x256xf32>
    %27 = arith.truncf %26 : vector<128x256xf32> to vector<128x256xbf16>
    %28 = vector.extract_strided_slice %27 {offsets = [0, 0], sizes = [128, 128], strides = [1, 1]} : vector<128x256xbf16> to vector<128x128xbf16>
    %29 = vector.extract_strided_slice %27 {offsets = [0, 128], sizes = [128, 128], strides = [1, 1]} : vector<128x256xbf16> to vector<128x128xbf16>
    %c0_47 = arith.constant 0 : index
    %c0_48 = arith.constant 0 : index
    %30 = vector.load %arg5[%c0_47, %c0_48] : memref<128x128xbf16, #tpu.memory_space<vmem>>, vector<128x128xbf16>
    %cst_49 = arith.constant dense<0.000000e+00> : vector<128x128xf32>
    %31 = tpu.matmul %28, %30, %cst_49 {dimension_numbers = #tpu.dot_dimension_numbers<[1], [0], [0], [1], [0, 0, 1, 1], [], []>} : vector<128x128xbf16>, vector<128x128xbf16>, vector<128x128xf32> -> vector<128x128xf32>
    %c0_50 = arith.constant 0 : index
    %c0_51 = arith.constant 0 : index
    %32 = vector.load %arg6[%c0_50, %c0_51] : memref<1x128xf32, #tpu.memory_space<vmem>>, vector<1x128xf32>
    %33 = vector.broadcast %32 : vector<1x128xf32> to vector<128x128xf32>
    %34 = arith.addf %31, %33 : vector<128x128xf32>
    %c0_52 = arith.constant 0 : index
    %c0_53 = arith.constant 0 : index
    %c0_54 = arith.constant 0 : index
    %35 = vector.load %arg9[%c0_52, %c0_53, %c0_54] : memref<1x128x128xf32, #tpu.memory_space<vmem>>, vector<1x128x128xf32>
    %36 = vector.shape_cast %35 : vector<1x128x128xf32> to vector<128x128xf32>
    %37 = vector.shape_cast %34 : vector<128x128xf32> to vector<1x128x128xf32>
    tpu.vector_store %arg9[%c0_52, %c0_53, %c0_54], %37 {strides = array<i32>} : memref<1x128x128xf32, #tpu.memory_space<vmem>>, vector<1x128x128xf32>,
    %c0_55 = arith.constant 0 : index
    %c0_56 = arith.constant 0 : index
    %38 = vector.load %arg7[%c0_55, %c0_56] : memref<128x128xbf16, #tpu.memory_space<vmem>>, vector<128x128xbf16>
    %cst_57 = arith.constant dense<0.000000e+00> : vector<128x128xf32>
    %39 = tpu.matmul %29, %38, %cst_57 {dimension_numbers = #tpu.dot_dimension_numbers<[1], [0], [0], [1], [0, 0, 1, 1], [], []>} : vector<128x128xbf16>, vector<128x128xbf16>, vector<128x128xf32> -> vector<128x128xf32>
    %c0_58 = arith.constant 0 : index
    %c0_59 = arith.constant 0 : index
    %40 = vector.load %arg8[%c0_58, %c0_59] : memref<1x128xf32, #tpu.memory_space<vmem>>, vector<1x128xf32>
    %41 = vector.broadcast %40 : vector<1x128xf32> to vector<128x128xf32>
    %42 = arith.addf %39, %41 : vector<128x128xf32>
    %c0_60 = arith.constant 0 : index
    %c0_61 = arith.constant 0 : index
    %c0_62 = arith.constant 0 : index
    %43 = vector.load %arg10[%c0_60, %c0_61, %c0_62] : memref<1x128x128xf32, #tpu.memory_space<vmem>>, vector<1x128x128xf32>
    %44 = vector.shape_cast %43 : vector<1x128x128xf32> to vector<128x128xf32>
    %45 = vector.shape_cast %42 : vector<128x128xf32> to vector<1x128x128xf32>
    tpu.vector_store %arg10[%c0_60, %c0_61, %c0_62], %45 {strides = array<i32>} : memref<1x128x128xf32, #tpu.memory_space<vmem>>, vector<1x128x128xf32>,
    return
  }
  func.func @transform_0(%arg0: i32, %arg1: i32) -> (i32, i32, i32, i32, i32) {
    %c0_i32 = arith.constant 0 : i32
    %c0_i32_0 = arith.constant 0 : i32
    %c0_i32_1 = arith.constant 0 : i32
    %c0_i32_2 = arith.constant 0 : i32
    return %arg0, %arg1, %c0_i32, %c0_i32_0, %c0_i32_1 : i32, i32, i32, i32, i32
  }
  func.func @transform_1(%arg0: i32, %arg1: i32) -> (i32, i32) {
    %c0_i32 = arith.constant 0 : i32
    %c0_i32_0 = arith.constant 0 : i32
    %c0_i32_1 = arith.constant 0 : i32
    return %c0_i32, %c0_i32_0 : i32, i32
  }
  func.func @transform_2(%arg0: i32, %arg1: i32) -> (i32, i32) {
    %c0_i32 = arith.constant 0 : i32
    %c0_i32_0 = arith.constant 0 : i32
    %c0_i32_1 = arith.constant 0 : i32
    return %c0_i32, %c0_i32_0 : i32, i32
  }
  func.func @transform_3(%arg0: i32, %arg1: i32) -> (i32, i32) {
    %c0_i32 = arith.constant 0 : i32
    %c0_i32_0 = arith.constant 0 : i32
    %c0_i32_1 = arith.constant 0 : i32
    return %c0_i32, %c0_i32_0 : i32, i32
  }
  func.func @transform_4(%arg0: i32, %arg1: i32) -> (i32, i32) {
    %c0_i32 = arith.constant 0 : i32
    %c0_i32_0 = arith.constant 0 : i32
    %c0_i32_1 = arith.constant 0 : i32
    return %c0_i32, %c0_i32_0 : i32, i32
  }
  func.func @transform_5(%arg0: i32, %arg1: i32) -> (i32, i32) {
    %c0_i32 = arith.constant 0 : i32
    %c0_i32_0 = arith.constant 0 : i32
    %c0_i32_1 = arith.constant 0 : i32
    return %c0_i32, %c0_i32_0 : i32, i32
  }
  func.func @transform_6(%arg0: i32, %arg1: i32) -> (i32, i32) {
    %c0_i32 = arith.constant 0 : i32
    %c0_i32_0 = arith.constant 0 : i32
    %c0_i32_1 = arith.constant 0 : i32
    return %c0_i32, %c0_i32_0 : i32, i32
  }
  func.func @transform_7(%arg0: i32, %arg1: i32) -> (i32, i32, i32) {
    %c0_i32 = arith.constant 0 : i32
    %c0_i32_0 = arith.constant 0 : i32
    return %arg0, %arg1, %c0_i32 : i32, i32, i32
  }
  func.func @transform_8(%arg0: i32, %arg1: i32) -> (i32, i32, i32) {
    %c0_i32 = arith.constant 0 : i32
    %c0_i32_0 = arith.constant 0 : i32
    return %arg0, %arg1, %c0_i32 : i32, i32, i32
  }
}

</mosaic_0001>

<bundles_post_ra>
// kernel: superpoint_decoder_forward.1
= control target key start
LH: loop header
LB: loop body
LE: loop exit
PB: predicated region body
PF: predicated region fallthrough
CT: control target
= control target key end

     0   :  { %s6706_s0 = inlined_call_operand.vmem [shape: bf16[2,2,10,18,128], index: 0, kind: input, shape index: {}]   ;;  %s6707_s1 = inlined_call_operand.vmem [shape: bf16[1152,256], index: 1, kind: input, shape index: {}]   ;;  %s6708_s2 = inlined_call_operand.vmem [shape: f32[1,256], index: 2, kind: input, shape index: {}]   ;;  %s6709_s3 = inlined_call_operand.vmem [shape: bf16[128,128], index: 3, kind: input, shape index: {}]   ;;  %s6710_s4 = inlined_call_operand.vmem [shape: f32[1,128], index: 4, kind: input, shape index: {}]   ;;  %s6711_s5 = inlined_call_operand.vmem [shape: bf16[128,128], index: 5, kind: input, shape index: {}]   ;;  %s6712_s6 = inlined_call_operand.vmem [shape: f32[1,128], index: 6, kind: input, shape index: {}]   ;;  %s6713_s7 = inlined_call_operand.hbm [shape: f32[2,256,128], index: 7, kind: output, shape index: {0}]   ;;  %s6714_s8 = inlined_call_operand.hbm [shape: f32[2,256,128], index: 8, kind: output, shape index: {1}]  }
   0x1   :  { %6754 = sst [smem:[#allocation49_spill]] %s6706_s0 }
   0x2   :  { %14 = vsyncpa [#allocation3], 0 }
   0x3   :  { %16 = vsyncpa [#allocation3 + $0x1], 0 }
   0x4   :  { %17 = vsyncpa [#allocation5], 0 }
   0x5   :  { %19 = vsyncpa [#allocation5 + $0x1], 0  ;;  %s4728_s27 = smov 0   ;;  %s4730_s28 = smov 0  }
   0x6   :  { %s4732_s29 = smov 0   ;;  %s4734_s30 = smov 0  }
   0x7   :  { %s4736_s9 = smov 0   ;;  %s4738_s10 = smov 0  }
   0x8   :  { %s4740_s11 = smov 0   ;;  %s4742_s12 = smov 0  }
   0x9 LB: > { %6755 = sst [smem:[#allocation8_spill]] %s4671_s10  ;;  %s3452_s13 = sadd.s32 4294967295, %s4679_s12   ;;  %s4679_s12 = sphi %s4742_s12, %s25_s12   ;;  %s4675_s11 = sphi %s4740_s11, %s6839_s11   ;;  %s4671_s10 = sphi %s4738_s10, %s6838_s10   ;;  %s4667_s9 = sphi %s4736_s9, %s6837_s9   ;;  %s4663_s30 = sphi %s4734_s30, %s6836_s30   ;;  %s4659_s29 = sphi %s4732_s29, %s6842_s29   ;;  %s4655_s28 = sphi %s4730_s28, %s6841_s28   ;;  %s4651_s27 = sphi %s4728_s27, %s6840_s27  }
   0xa   : > { %6756 = sst [smem:[#allocation9_spill]] %s4675_s11  ;;  %s3453_s14 = sadd.s32 4294967294, %s4679_s12  }
   0xb   : > { %s34_s15 = sadd.s32 1, %s4671_s10  ;;  %s37_s16 = sadd.s32 1, %s4675_s11 }
   0xc   : > { %p35_p0 = scmp.ge.s32.totalorder %s34_s15, 2  ;;  %p210_p1 = scmp.ne.s32.totalorder %s4659_s29, %s4655_s28 }
   0xd   : > { %p211_p2 = scmp.eq.s32.totalorder %s3452_s13, 3  ;;  %p216_p5 = scmp.ne.s32.totalorder %s4655_s28, %s4651_s27 }
   0xe   : > { %s6844_s15 = smov (%p35_p0, %s34_s15), 0  ;;  %s6846_s16 = smov (!%p35_p0, %s37_s16), %s4675_s11 }
   0xf   : > { %6757 = sst [smem:[#allocation10_spill]] %s6844_s15  ;;  %s196_s17 = ssub.s32 %s4671_s10, %s6844_s15 }
  0x10   : > { %p4779_p3 = por %p211_p2, %p210_p1  ;;  %p39_p4 = scmp.ge.s32.totalorder %s6846_s16, 2 }
  0x11   : > { %p217_p6 = scmp.eq.s32.totalorder %s3453_s14, 3  ;;  %p3456_p7 = scmp.ge.s32.totalorder %s4679_s12, 1 }
  0x12   : > { %s6848_s16 = smov (%p39_p4, %s6846_s16), 0  ;;  %p293_p9 = scmp.lt.s32.totalorder %s4679_s12, 5 }
  0x13   : > { %6759 = sst [smem:[#allocation11_spill]] %s6848_s16  ;;  %p4788_p8 = por %p217_p6, %p216_p5 }
  0x14   : > { %s195_s20 = ssub.s32 %s4675_s11, %s6848_s16  ;;  %s200_s21 = sadd.s32 1, %s4659_s29 }
  0x15   : > { %s197_s22 = sor.u32 %s196_s17, %s195_s20  ;;  %p294_p10 = pnand %p3456_p7, %p293_p9 }
  0x16   : > { %p198_p11 = scmp.eq.s32.totalorder %s197_s22, 0 }
  0x17   : > { %297 = sbr.rel (%p294_p10) target bundleno = 994 (0x3e2), region = 48 }
  0x18   : > { %s4797_s23 = scalar_select %p198_p11, %s4659_s29, %s200_s21  }
  0x1a   : > { %6761 = sst [smem:[#allocation12_spill]] %s4797_s23 }
  0x1c   : > { %v3582_v0 = vld [vmem:[%s6707_s1 + $0x70] sm:$0xf]  ;;  %v4189_v1 = vld [vmem:[%s6707_s1 + $0x74] sm:$0xf0]  ;;  %v3574_v11 = vld [vmem:[%s6707_s1 + $0x60] sm:$0xf] }
  0x1d   : > { %v3646_v2 = vld [vmem:[%s6707_s1 + $0xf0] sm:$0xf]  ;;  %v3583_v3 = vor.u32 %v4189_v1, %v3582_v0  ;;  %v4205_v4 = vld [vmem:[%s6707_s1 + $0xf4] sm:$0xf0]  ;;  %v4187_v13 = vld [vmem:[%s6707_s1 + $0x64] sm:$0xf0] }
  0x1e   : > { %v3710_v5 = vld [vmem:[%s6707_s1 + $0x170] sm:$0xf]  ;;  %v4221_v6 = vld [vmem:[%s6707_s1 + $0x174] sm:$0xf0]  ;;  %v3647_v7 = vor.u32 %v4205_v4, %v3646_v2  ;;  %v3638_v14 = vld [vmem:[%s6707_s1 + $0xe0] sm:$0xf]  ;;  %v3575_v16 = vor.u32 %v4187_v13, %v3574_v11 }
  0x1f   : > { %v3711_v8 = vor.u32 %v4221_v6, %v3710_v5  ;;  %v3774_v9 = vld [vmem:[%s6707_s1 + $0x1f0] sm:$0xf]  ;;  %v4237_v10 = vld [vmem:[%s6707_s1 + $0x1f4] sm:$0xf0]  ;;  %2013 = vmatpush.bf16.msra.mxu0 %v3583_v3  ;;  %v4203_v15 = vld [vmem:[%s6707_s1 + $0xe4] sm:$0xf0] }
  0x20   : > { %v3775_v12 = vor.u32 %v4237_v10, %v3774_v9  ;;  %2062 = vmatpush.bf16.msra.mxu1 %v3647_v7  ;;  %v3639_v17 = vor.u32 %v4203_v15, %v3638_v14  ;;  %v3702_v18 = vld [vmem:[%s6707_s1 + $0x160] sm:$0xf]  ;;  %v4219_v19 = vld [vmem:[%s6707_s1 + $0x164] sm:$0xf0]  ;;  %v3566_v23 = vld [vmem:[%s6707_s1 + $0x50] sm:$0xf] }
  0x21   : > { %2111 = vmatpush.bf16.msra.mxu2 %v3711_v8  ;;  %v3766_v20 = vld [vmem:[%s6707_s1 + $0x1e0] sm:$0xf]  ;;  %v3703_v21 = vor.u32 %v4219_v19, %v3702_v18  ;;  %v4235_v22 = vld [vmem:[%s6707_s1 + $0x1e4] sm:$0xf0]  ;;  %v4185_v24 = vld [vmem:[%s6707_s1 + $0x54] sm:$0xf0] }
  0x22   : > { %2160 = vmatpush.bf16.msra.mxu3 %v3775_v12  ;;  %v3767_v25 = vor.u32 %v4235_v22, %v3766_v20  ;;  %v3630_v26 = vld [vmem:[%s6707_s1 + $0xd0] sm:$0xf]  ;;  %v4201_v27 = vld [vmem:[%s6707_s1 + $0xd4] sm:$0xf0]  ;;  %v3567_v29 = vor.u32 %v4185_v24, %v3566_v23  ;;  %v3558_v35 = vld [vmem:[%s6707_s1 + $0x40] sm:$0xf] }
  0x23   : > { %v3694_v28 = vld [vmem:[%s6707_s1 + $0x150] sm:$0xf]  ;;  %2014 = vmatpush.bf16.msra.mxu0 %v3575_v16  ;;  %v4217_v30 = vld [vmem:[%s6707_s1 + $0x154] sm:$0xf0]  ;;  %v3631_v33 = vor.u32 %v4201_v27, %v3630_v26  ;;  %v4183_v36 = vld [vmem:[%s6707_s1 + $0x44] sm:$0xf0] }
  0x24   : > { %v3758_v31 = vld [vmem:[%s6707_s1 + $0x1d0] sm:$0xf]  ;;  %v4233_v32 = vld [vmem:[%s6707_s1 + $0x1d4] sm:$0xf0]  ;;  %2063 = vmatpush.bf16.msra.mxu1 %v3639_v17  ;;  %v3695_v34 = vor.u32 %v4217_v30, %v3694_v28  ;;  %v3622_v37 = vld [vmem:[%s6707_s1 + $0xc0] sm:$0xf]  ;;  %v3559_v44 = vor.u32 %v4183_v36, %v3558_v35 }
  0x25   : > { %2112 = vmatpush.bf16.msra.mxu2 %v3703_v21  ;;  %v3759_v38 = vor.u32 %v4233_v32, %v3758_v31  ;;  %v4199_v39 = vld [vmem:[%s6707_s1 + $0xc4] sm:$0xf0]  ;;  %v3686_v40 = vld [vmem:[%s6707_s1 + $0x140] sm:$0xf]  ;;  %v3550_v47 = vld [vmem:[%s6707_s1 + $0x30] sm:$0xf] }
  0x26   : > { %2161 = vmatpush.bf16.msra.mxu3 %v3767_v25  ;;  %v4215_v41 = vld [vmem:[%s6707_s1 + $0x144] sm:$0xf0]  ;;  %v3750_v42 = vld [vmem:[%s6707_s1 + $0x1c0] sm:$0xf]  ;;  %v3623_v45 = vor.u32 %v4199_v39, %v3622_v37  ;;  %v4181_v48 = vld [vmem:[%s6707_s1 + $0x34] sm:$0xf0] }
  0x27   : > { %v4231_v43 = vld [vmem:[%s6707_s1 + $0x1c4] sm:$0xf0]  ;;  %2015 = vmatpush.bf16.msra.mxu0 %v3567_v29  ;;  %v3687_v46 = vor.u32 %v4215_v41, %v3686_v40  ;;  %v3614_v49 = vld [vmem:[%s6707_s1 + $0xb0] sm:$0xf]  ;;  %v4197_v51 = vld [vmem:[%s6707_s1 + $0xb4] sm:$0xf0]  ;;  %v3551_v56 = vor.u32 %v4181_v48, %v3550_v47 }
  0x28   : > { %2064 = vmatpush.bf16.msra.mxu1 %v3631_v33  ;;  %v3751_v50 = vor.u32 %v4231_v43, %v3750_v42  ;;  %v3678_v52 = vld [vmem:[%s6707_s1 + $0x130] sm:$0xf]  ;;  %v4213_v53 = vld [vmem:[%s6707_s1 + $0x134] sm:$0xf0]  ;;  %v3615_v57 = vor.u32 %v4197_v51, %v3614_v49  ;;  %v3542_v59 = vld [vmem:[%s6707_s1 + $0x20] sm:$0xf] }
  0x29   : > { %2113 = vmatpush.bf16.msra.mxu2 %v3695_v34  ;;  %v3742_v54 = vld [vmem:[%s6707_s1 + $0x1b0] sm:$0xf]  ;;  %v4229_v55 = vld [vmem:[%s6707_s1 + $0x1b4] sm:$0xf0]  ;;  %v3679_v58 = vor.u32 %v4213_v53, %v3678_v52  ;;  %v4179_v60 = vld [vmem:[%s6707_s1 + $0x24] sm:$0xf0] }
  0x2a   : > { %2162 = vmatpush.bf16.msra.mxu3 %v3759_v38  ;;  %v3606_v61 = vld [vmem:[%s6707_s1 + $0xa0] sm:$0xf]  ;;  %v3743_v62 = vor.u32 %v4229_v55, %v3742_v54  ;;  %v4195_v63 = vld [vmem:[%s6707_s1 + $0xa4] sm:$0xf0]  ;;  %v3543_v4 = vor.u32 %v4179_v60, %v3542_v59  ;;  %v3534_v5 = vld [vmem:[%s6707_s1 + $0x10] sm:$0xf] }
  0x2b   : > { %2016 = vmatpush.bf16.msra.mxu0 %v3559_v44  ;;  %v3670_v0 = vld [vmem:[%s6707_s1 + $0x120] sm:$0xf]  ;;  %v4211_v1 = vld [vmem:[%s6707_s1 + $0x124] sm:$0xf0]  ;;  %v4177_v6 = vld [vmem:[%s6707_s1 + $0x14] sm:$0xf0]  ;;  %v3607_v7 = vor.u32 %v4195_v63, %v3606_v61 }
  0x2c   : > { %2065 = vmatpush.bf16.msra.mxu1 %v3623_v45  ;;  %v3734_v2 = vld [vmem:[%s6707_s1 + $0x1a0] sm:$0xf]  ;;  %v4227_v3 = vld [vmem:[%s6707_s1 + $0x1a4] sm:$0xf0]  ;;  %v3671_v8 = vor.u32 %v4211_v1, %v3670_v0  ;;  %v3598_v9 = vld [vmem:[%s6707_s1 + $0x90] sm:$0xf]  ;;  %v3535_v18 = vor.u32 %v4177_v6, %v3534_v5 }
  0x2d   : > { %2114 = vmatpush.bf16.msra.mxu2 %v3687_v46  ;;  %v4193_v10 = vld [vmem:[%s6707_s1 + $0x94] sm:$0xf0]  ;;  %v3662_v11 = vld [vmem:[%s6707_s1 + $0x110] sm:$0xf]  ;;  %v3735_v12 = vor.u32 %v4227_v3, %v3734_v2  ;;  %p336_p12 = scmp.lt.s32.totalorder %s4667_s9, 1  ;;  %p338_p13 = scmp.lt.s32.totalorder %s4663_s30, 1 }
  0x2e   : > { %2163 = vmatpush.bf16.msra.mxu3 %v3751_v50  ;;  %v4209_v13 = vld [vmem:[%s6707_s1 + $0x114] sm:$0xf0]  ;;  %v3726_v14 = vld [vmem:[%s6707_s1 + $0x190] sm:$0xf]  ;;  %v3526_v16 = vld [vmem:[%s6707_s1] sm:$0xf]  ;;  %v3599_v23 = vor.u32 %v4193_v10, %v3598_v9 }
  0x2f   : > { %2017 = vmatpush.bf16.msra.mxu0 %v3551_v56  ;;  %v4225_v15 = vld [vmem:[%s6707_s1 + $0x194] sm:$0xf0]  ;;  %v4175_v17 = vld [vmem:[%s6707_s1 + $0x4] sm:$0xf0]  ;;  %v3590_v19 = vld [vmem:[%s6707_s1 + $0x80] sm:$0xf]  ;;  %v3663_v24 = vor.u32 %v4209_v13, %v3662_v11 }
  0x30   : > { %2066 = vmatpush.bf16.msra.mxu1 %v3615_v57  ;;  %v4191_v20 = vld [vmem:[%s6707_s1 + $0x84] sm:$0xf0]  ;;  %v3654_v21 = vld [vmem:[%s6707_s1 + $0x100] sm:$0xf]  ;;  %s337_s15 = scalar_select %p336_p12, %s4667_s9, 1  ;;  %v3727_v25 = vor.u32 %v4225_v15, %v3726_v14  ;;  %v3527_v30 = vor.u32 %v4175_v17, %v3526_v16  ;;  %vm646_vm0 = vcmask 1046528  }
  0x31   : > { %2115 = vmatpush.bf16.msra.mxu2 %v3679_v58  ;;  %v4207_v22 = vld [vmem:[%s6707_s1 + $0x104] sm:$0xf0]  ;;  %s339_s13 = scalar_select %p338_p13, %s4663_s30, 1  ;;  %v3718_v26 = vld [vmem:[%s6707_s1 + $0x180] sm:$0xf]  ;;  %v3591_v33 = vor.u32 %v4191_v20, %v3590_v19 }
  0x32   : > { %2164 = vmatpush.bf16.msra.mxu3 %v3743_v62  ;;  %v4223_v27 = vld [vmem:[%s6707_s1 + $0x184] sm:$0xf0]  ;;  %s4430_s21 = smul.u32 60, %s337_s15  ;;  %v3838_v28 = vld [vmem:[%s6707_s1 + $0x270] sm:$0xf]  ;;  %v3655_v34 = vor.u32 %v4207_v22, %v3654_v21  ;;  %s6762_s0 = sld [smem:[#allocation49_spill]] }
  0x33   : > { %2018 = vmatpush.bf16.msra.mxu0 %v3543_v4  ;;  %s4429_s22 = smul.u32 30, %s339_s13  ;;  %v4253_v29 = vld [vmem:[%s6707_s1 + $0x274] sm:$0xf0]  ;;  %v3902_v31 = vld [vmem:[%s6707_s1 + $0x2f0] sm:$0xf]  ;;  %v3719_v35 = vor.u32 %v4223_v27, %v3718_v26  ;;  %s4166_s20 = sshll.u32 %s4663_s30, 4 }
  0x34   : > { %2067 = vmatpush.bf16.msra.mxu1 %v3607_v7  ;;  %v4269_v32 = vld [vmem:[%s6707_s1 + $0x2f4] sm:$0xf0]  ;;  %v3839_v36 = vor.u32 %v4253_v29, %v3838_v28  ;;  %v3830_v37 = vld [vmem:[%s6707_s1 + $0x260] sm:$0xf]  ;;  %v4251_v38 = vld [vmem:[%s6707_s1 + $0x264] sm:$0xf0] }
  0x35   : > { %2116 = vmatpush.bf16.msra.mxu2 %v3671_v8  ;;  %s342_s15 = sadd.s32 %s4430_s21, %s4429_s22  ;;  %v3903_v39 = vor.u32 %v4269_v32, %v3902_v31  ;;  %v3894_v40 = vld [vmem:[%s6707_s1 + $0x2e0] sm:$0xf]  ;;  %v4267_v41 = vld [vmem:[%s6707_s1 + $0x2e4] sm:$0xf0]  ;;  %v3831_v53 = vor.u32 %v4251_v38, %v3830_v37  ;;  %vm517_vm1 = vsmask.f32 7424 }
  0x36   : > { %2165 = vmatpush.bf16.msra.mxu3 %v3735_v12  ;;  %s3459_s13 = sshll.u32 %s342_s15, 2  ;;  %v3895_v55 = vor.u32 %v4267_v41, %v3894_v40  ;;  %v3822_v4 = vld [vmem:[%s6707_s1 + $0x250] sm:$0xf]  ;;  %v4249_v7 = vld [vmem:[%s6707_s1 + $0x254] sm:$0xf0]  ;;  %s6558_s22 = sand.u32 1, %s4655_s28  }
  0x37   : > { %2019 = vmatpush.bf16.msra.mxu0 %v3535_v18  ;;  %v3886_v8 = vld [vmem:[%s6707_s1 + $0x2d0] sm:$0xf]  ;;  %v3823_v9 = vor.u32 %v4249_v7, %v3822_v4  ;;  %v4265_v10 = vld [vmem:[%s6707_s1 + $0x2d4] sm:$0xf0]  ;;  %v3814_v27 = vld [vmem:[%s6707_s1 + $0x240] sm:$0xf] }
  0x38   : > { %2068 = vmatpush.bf16.msra.mxu1 %v3599_v23  ;;  %s5018_s25 = scalar_lea.vmem %s6762_s0, %s3459_s13  ;;  %v3887_v12 = vor.u32 %v4265_v10, %v3886_v8  ;;  %v4247_v28 = vld [vmem:[%s6707_s1 + $0x244] sm:$0xf0]  ;;  %s3457_s26 = sshll.u32 %s6558_s22, 7 }
  0x39   : > { %2117 = vmatpush.bf16.msra.mxu2 %v3663_v24  ;;  %v4335_v42 = vld [vmem:[%s5018_s25] sm:$0xff]   ;;  %v363_v43 = vld [vmem:[%s5018_s25 + $0x8] sm:$0x1]  ;;  %v5031_v49 = vld [vmem:[%s5018_s25 + $0xc] sm:$0xff]   ;;  %s6573_s11 = scalar_lea.vmem [#allocation2], %s3457_s26  ;;  %s6576_s17 = scalar_lea.vmem [#allocation4], %s3457_s26 }
  0x3a   : > { %2166 = vmatpush.bf16.msra.mxu3 %v3727_v25  ;;  %v4393_v44 = vld [vmem:[%s5018_s25] sm:$0xf0]  ;;  %v501_v45 = vunpack.c.l.b16 %v363_v43  ;;  %v519_v46 = vshrl.u32 %v4335_v42, 16  ;;  %v521_v47 = vshll.u32 %v4335_v42, 16  ;;  %v4394_v48 = vld [vmem:[%s5018_s25] sm:$0xe] }
  0x3b   : > { %2020 = vmatpush.bf16.msra.mxu0 %v3527_v30  ;;  %6763 = vst [vmem:[#allocation13_spill] sm:$0xff] %v5031_v49  ;;  %v5034_v50 = vld [vmem:[%s5018_s25 + $0xc] sm:$0xf0]  ;;  %v4395_v54 = vor.u32 %v4394_v48, %v4393_v44  ;;  %v364_v59 = vld [vmem:[%s5018_s25 + $0x14] sm:$0x1]  ;;  %v5067_v20 = vld [vmem:[%s5018_s25 + $0x18] sm:$0xff]  }
  0x3c   : > { %2069 = vmatpush.bf16.msra.mxu1 %v3591_v33  ;;  %v5037_v51 = vld [vmem:[%s5018_s25 + $0xc] sm:$0xff]   ;;  %v509_v56 = vpack.c.b16 %v501_v45, %v501_v45  ;;  %v523_v57 = vrot.slane %v521_v47, 1  ;;  %v502_v2 = vunpack.c.l.b16 %v364_v59  ;;  %v365_v21 = vld [vmem:[%s5018_s25 + $0x20] sm:$0x1]  ;;  %v4396_v25 = vld [vmem:[%s5018_s25 + $0x18] sm:$0xf0]  ;;  %v3815_v33 = vor.u32 %v4247_v28, %v3814_v27 }
  0x3d   : > { %2118 = vmatpush.bf16.msra.mxu2 %v3655_v34  ;;  %v4517_v52 = vld [vmem:[%s5018_s25 + $0xc] sm:$0xf0]  ;;  %v647_v58 = vrot.slane %v4395_v54, 1  ;;  %v4518_v63 = vld [vmem:[%s5018_s25 + $0xc] sm:$0xe]  ;;  %v533_v6 = vshll.u32 %v5037_v51, 16  ;;  %v503_v24 = vunpack.c.l.b16 %v365_v21 }
  0x3e   : > { %2167 = vmatpush.bf16.msra.mxu3 %v3719_v35  ;;  %2021 = vmatmul.bf16.vlgmr.msra.gmra.mxu0 %v4335_v42  ;;  %v524_v60 = vor.u32 %v523_v57, %v519_v46  ;;  %v526_v61 = vshll.u32 %v509_v56, 16  ;;  %v648_v62 = vrot.slane %v509_v56, 1  ;;  %v510_v5 = vpack.c.b16 %v502_v2, %v502_v2  ;;  %v4397_v26 = vld [vmem:[%s5018_s25 + $0x18] sm:$0xe]  ;;  %v5089_v31 = vld [vmem:[%s5018_s25 + $0x24] sm:$0xff]   ;;  %v5158_v21 = vld [vmem:[%s5018_s25 + $0x3c] sm:$0xff]  }
  0x3f   : > { %2209 = vmatpush.bf16.msrb.mxu0 %v3839_v36  ;;  %v4519_v11 = vor.u32 %v4518_v63, %v4517_v52  ;;  %v531_v13 = vshrl.u32 %v5037_v51, 16  ;;  %v535_v14 = vrot.slane %v533_v6, 1  ;;  %v511_v29 = vpack.c.b16 %v503_v24, %v503_v24  ;;  %6764 = vst [vmem:[#allocation14_spill] sm:$0xff] %v5089_v31  ;;  %v5092_v32 = vld [vmem:[%s5018_s25 + $0x24] sm:$0xf0]  ;;  %s4167_s10 = sshll.u32 %s4667_s9, 5 }
  0x40   : > { %2258 = vmatpush.bf16.msrb.mxu1 %v3903_v39  ;;  %v528_v0 = vrot.slane %v526_v61, 1  ;;  %v5044_v1 = vsel %vm646_vm0, %v647_v58, %v648_v62  ;;  %v538_v15 = vshll.u32 %v510_v5, 16  ;;  %v651_v17 = vrot.slane %v510_v5, 1  ;;  %v3878_v34 = vld [vmem:[%s6707_s1 + $0x2c0] sm:$0xf]  ;;  %v5102_v41 = vld [vmem:[%s5018_s25 + $0x24] sm:$0xff]  }
  0x41   : > { %2168 = vmatmul.bf16.vlgmr.msra.gmra.mxu3 %v5031_v49  ;;  %2119 = vmatmul.bf16.vlgmr.msra.gmra.mxu2 %v5044_v1  ;;  %v650_v16 = vrot.slane %v4519_v11, 1  ;;  %v536_v18 = vor.u32 %v535_v14, %v531_v13  ;;  %v545_v30 = vshll.u32 %v5067_v20, 16  ;;  %v4263_v35 = vld [vmem:[%s6707_s1 + $0x2c4] sm:$0xf0]  ;;  %v4398_v37 = vor.u32 %v4397_v26, %v4396_v25  ;;  %v366_v47 = vld [vmem:[%s5018_s25 + $0x2c] sm:$0x1] }
  0x42   : > { %v5048_v3 = vsel %vm517_vm1, %v524_v60, %v528_v0  ;;  %v540_v19 = vrot.slane %v538_v15, 1  ;;  %v3879_v36 = vor.u32 %v4263_v35, %v3878_v34  ;;  %v543_v38 = vshrl.u32 %v5067_v20, 16  ;;  %v4520_v42 = vld [vmem:[%s5018_s25 + $0x24] sm:$0xf0]  ;;  %v4521_v52 = vld [vmem:[%s5018_s25 + $0x24] sm:$0xe] }
  0x43   : > { %2210 = vmatpush.bf16.msrb.mxu0 %v3831_v53  ;;  %2070 = vmatmul.bf16.vlgmr.msra.gmra.mxu1 %v5048_v3  ;;  %v5071_v22 = vsel %vm646_vm0, %v650_v16, %v651_v17  ;;  %v547_v39 = vrot.slane %v545_v30, 1  ;;  %v550_v40 = vshll.u32 %v511_v29, 16  ;;  %v653_v43 = vrot.slane %v4398_v37, 1  ;;  %v4245_v56 = vld [vmem:[%s6707_s1 + $0x234] sm:$0xf0]  ;;  %6765 = vst [vmem:[#allocation15_spill] sm:$0xff] %v5158_v21 }
  0x44   : > { %2259 = vmatpush.bf16.msrb.mxu1 %v3895_v55  ;;  %v5075_v23 = vsel %vm517_vm1, %v536_v18, %v540_v19  ;;  %v654_v44 = vrot.slane %v511_v29, 1  ;;  %v504_v54 = vunpack.c.l.b16 %v366_v47  ;;  %v3806_v55 = vld [vmem:[%s6707_s1 + $0x230] sm:$0xf]  ;;  %v557_v59 = vshll.u32 %v5102_v41, 16  ;;  %v4261_v61 = vld [vmem:[%s6707_s1 + $0x2b4] sm:$0xf0] }
  0x45   : > { %v5106_v45 = vor.u32 %v547_v39, %v543_v38  ;;  %v552_v46 = vrot.slane %v550_v40, 1  ;;  %v3870_v57 = vld [vmem:[%s6707_s1 + $0x2b0] sm:$0xf]  ;;  %v3807_v60 = vor.u32 %v4245_v56, %v3806_v55  ;;  %v4522_v63 = vor.u32 %v4521_v52, %v4520_v42  ;;  %v367_v10 = vld [vmem:[%s5018_s25 + $0x38] sm:$0x1]  ;;  %v5170_v30 = vld [vmem:[%s5018_s25 + $0x3c] sm:$0xff]  }
  0x46   : > { %v5110_v48 = vsel %vm646_vm0, %v653_v43, %v654_v44  ;;  %v512_v58 = vpack.c.b16 %v504_v54, %v504_v54  ;;  %v3871_v62 = vor.u32 %v4261_v61, %v3870_v57  ;;  %v555_v0 = vshrl.u32 %v5102_v41, 16  ;;  %v4399_v14 = vld [vmem:[%s5018_s25 + $0x30] sm:$0xf0]  ;;  %v4400_v15 = vld [vmem:[%s5018_s25 + $0x30] sm:$0xe]  ;;  %6766 = vst [vmem:[#allocation16_spill] sm:$0xff] %v5170_v30 }
  0x47   : > { %2211 = vmatpush.bf16.msrb.mxu0 %v3823_v9  ;;  %v5116_v53 = vsel %vm517_vm1, %v5106_v45, %v552_v46  ;;  %v559_v2 = vrot.slane %v557_v59, 1  ;;  %v656_v5 = vrot.slane %v4522_v63, 1  ;;  %v5136_v9 = vld [vmem:[%s5018_s25 + $0x30] sm:$0xff]   ;;  %v505_v13 = vunpack.c.l.b16 %v367_v10  ;;  %v3798_v16 = vld [vmem:[%s6707_s1 + $0x220] sm:$0xf]  ;;  %s3309_s14 = sshll.u32 %s6573_s11, 4  ;;  %s3310_s14 = int_to_ptr.vmem [resolvable:$true] %s3309_s14 }
  0x48   : > { %2260 = vmatpush.bf16.msrb.mxu1 %v3887_v12  ;;  %v562_v4 = vshll.u32 %v512_v58, 16  ;;  %v657_v6 = vrot.slane %v512_v58, 1  ;;  %v4243_v17 = vld [vmem:[%s6707_s1 + $0x224] sm:$0xf0]  ;;  %v569_v19 = vshll.u32 %v5136_v9, 16  ;;  %v4401_v29 = vor.u32 %v4400_v15, %v4399_v14  ;;  %s3328_s13 = sshll.u32 %s6576_s17, 4  ;;  %s6648_s13 = int_to_ptr.vmem [resolvable:$true] %s3328_s13 }
  0x49   : > { %v560_v7 = vor.u32 %v559_v2, %v555_v0  ;;  %v513_v18 = vpack.c.b16 %v505_v13, %v505_v13  ;;  %v5161_v24 = vld [vmem:[%s5018_s25 + $0x3c] sm:$0xf0]  ;;  %v3799_v25 = vor.u32 %v4243_v17, %v3798_v16  ;;  %v4259_v27 = vld [vmem:[%s6707_s1 + $0x2a4] sm:$0xf0]  ;;  %v567_v34 = vshrl.u32 %v5136_v9, 16 }
  0x4a   : > { %v564_v8 = vrot.slane %v562_v4, 1  ;;  %v5140_v11 = vsel %vm646_vm0, %v656_v5, %v657_v6  ;;  %v3862_v26 = vld [vmem:[%s6707_s1 + $0x2a0] sm:$0xf]  ;;  %v571_v35 = vrot.slane %v569_v19, 1  ;;  %v659_v37 = vrot.slane %v4401_v29, 1 }
  0x4b   : > { %2212 = vmatpush.bf16.msrb.mxu0 %v3815_v33  ;;  %v3863_v28 = vor.u32 %v4259_v27, %v3862_v26  ;;  %v4523_v33 = vld [vmem:[%s5018_s25 + $0x3c] sm:$0xf0]  ;;  %v660_v38 = vrot.slane %v513_v18, 1  ;;  %v368_v42 = vld [vmem:[%s5018_s25 + $0x44] sm:$0x1]  ;;  %v581_v55 = vshll.u32 %v5170_v30, 16 }
  0x4c   : > { %2261 = vmatpush.bf16.msrb.mxu1 %v3879_v36  ;;  %v5144_v12 = vsel %vm517_vm1, %v560_v7, %v564_v8  ;;  %v574_v36 = vshll.u32 %v513_v18, 16  ;;  %v5175_v39 = vor.u32 %v571_v35, %v567_v34  ;;  %v4524_v44 = vld [vmem:[%s5018_s25 + $0x3c] sm:$0xe]  ;;  %v506_v47 = vunpack.c.l.b16 %v368_v42  ;;  %v3966_v52 = vld [vmem:[%s6707_s1 + $0x370] sm:$0xf] }
  0x4d   : > { %v5179_v43 = vsel %vm646_vm0, %v659_v37, %v660_v38  ;;  %v4285_v54 = vld [vmem:[%s6707_s1 + $0x374] sm:$0xf0]  ;;  %v3790_v57 = vld [vmem:[%s6707_s1 + $0x210] sm:$0xf]  ;;  %v3958_v5 = vld [vmem:[%s6707_s1 + $0x360] sm:$0xf]  ;;  %v4525_v8 = vor.u32 %v4524_v44, %v4523_v33 }
  0x4e   : > { %2026 = vmatmul.bf16.gmra.mxu0 %v5037_v51  ;;  %v576_v40 = vrot.slane %v574_v36, 1  ;;  %v3967_v56 = vor.u32 %v4285_v54, %v3966_v52  ;;  %v4241_v58 = vld [vmem:[%s6707_s1 + $0x214] sm:$0xf0]  ;;  %v3854_v59 = vld [vmem:[%s6707_s1 + $0x290] sm:$0xf]  ;;  %v579_v17 = vshrl.u32 %v5170_v30, 16 }
  0x4f   : > { %2213 = vmatpush.bf16.msrb.mxu0 %v3807_v60  ;;  %v514_v60 = vpack.c.b16 %v506_v47, %v506_v47  ;;  %v3791_v61 = vor.u32 %v4241_v58, %v3790_v57  ;;  %v4030_v63 = vld [vmem:[%s6707_s1 + $0x3f0] sm:$0xf]  ;;  %v4301_v0 = vld [vmem:[%s6707_s1 + $0x3f4] sm:$0xf0]  ;;  %v4283_v6 = vld [vmem:[%s6707_s1 + $0x364] sm:$0xf0] }
  0x50   : > { %2262 = vmatpush.bf16.msrb.mxu1 %v3871_v62  ;;  %v5185_v46 = vsel %vm517_vm1, %v5175_v39, %v576_v40  ;;  %2307 = vmatpush.bf16.msrb.mxu2 %v3967_v56  ;;  %v4257_v62 = vld [vmem:[%s6707_s1 + $0x294] sm:$0xf0]  ;;  %v4031_v4 = vor.u32 %v4301_v0, %v4030_v63  ;;  %v4022_v7 = vld [vmem:[%s6707_s1 + $0x3e0] sm:$0xf]  ;;  %v3959_v10 = vor.u32 %v4283_v6, %v3958_v5  ;;  %v4299_v13 = vld [vmem:[%s6707_s1 + $0x3e4] sm:$0xf0] }
  0x51   : > { %2173 = vmatmul.bf16.gmra.mxu3 %v5067_v20  ;;  %2124 = vmatmul.bf16.gmra.mxu2 %v5071_v22  ;;  %v3855_v2 = vor.u32 %v4257_v62, %v3854_v59  ;;  %v3950_v14 = vld [vmem:[%s6707_s1 + $0x350] sm:$0xf]  ;;  %v4281_v15 = vld [vmem:[%s6707_s1 + $0x354] sm:$0xf0]  ;;  %v4023_v16 = vor.u32 %v4299_v13, %v4022_v7  ;;  %v583_v18 = vrot.slane %v581_v55, 1  ;;  %v586_v19 = vshll.u32 %v514_v60, 16 }
  0x52   : > { %2356 = vmatpush.bf16.msrb.mxu3 %v4031_v4  ;;  %v4014_v26 = vld [vmem:[%s6707_s1 + $0x3d0] sm:$0xf]  ;;  %v4297_v27 = vld [vmem:[%s6707_s1 + $0x3d4] sm:$0xf0]  ;;  %v4279_v29 = vld [vmem:[%s6707_s1 + $0x344] sm:$0xf0] }
  0x53   : > { %2075 = vmatmul.bf16.gmra.mxu1 %v5075_v23  ;;  %2214 = vmatpush.bf16.msrb.mxu0 %v3799_v25  ;;  %v3951_v25 = vor.u32 %v4281_v15, %v3950_v14  ;;  %v662_v33 = vrot.slane %v4525_v8, 1  ;;  %v663_v34 = vrot.slane %v514_v60, 1  ;;  %v584_v35 = vor.u32 %v583_v18, %v579_v17  ;;  %v5247_v37 = vld [vmem:[%s5018_s25 + $0x48] sm:$0xff]   ;;  %v369_v42 = vld [vmem:[%s5018_s25 + $0x50] sm:$0x1]  ;;  %v5281_v4 = vld [vmem:[%s5018_s25 + $0x54] sm:$0xff]  }
  0x54   : > { %2263 = vmatpush.bf16.msrb.mxu1 %v3863_v28  ;;  %2308 = vmatpush.bf16.msrb.mxu2 %v3959_v10  ;;  %v3942_v28 = vld [vmem:[%s6707_s1 + $0x340] sm:$0xf]  ;;  %v588_v36 = vrot.slane %v586_v19, 1  ;;  %v4015_v38 = vor.u32 %v4297_v27, %v4014_v26  ;;  %v4295_v47 = vld [vmem:[%s6707_s1 + $0x3c4] sm:$0xf0]  ;;  %v507_v55 = vunpack.c.l.b16 %v369_v42  ;;  %v814_v59 = vshll.u32 %v5247_v37, 16 }
  0x55   : > { %v3943_v40 = vor.u32 %v4279_v29, %v3942_v28  ;;  %v4006_v44 = vld [vmem:[%s6707_s1 + $0x3c0] sm:$0xf]  ;;  %v5257_v52 = vsel %vm646_vm0, %v662_v33, %v663_v34  ;;  %v3934_v57 = vld [vmem:[%s6707_s1 + $0x330] sm:$0xf]  ;;  %v4277_v58 = vld [vmem:[%s6707_s1 + $0x334] sm:$0xf0] }
  0x56   : > { %2357 = vmatpush.bf16.msrb.mxu3 %v4023_v16  ;;  %v5261_v54 = vsel %vm517_vm1, %v584_v35, %v588_v36  ;;  %v4007_v56 = vor.u32 %v4295_v47, %v4006_v44  ;;  %v4402_v60 = vld [vmem:[%s5018_s25 + $0x48] sm:$0xf0]  ;;  %v4403_v62 = vld [vmem:[%s5018_s25 + $0x48] sm:$0xe]  ;;  %v3782_v63 = vld [vmem:[%s6707_s1 + $0x200] sm:$0xf] }
  0x57   : > { %2215 = vmatpush.bf16.msrb.mxu0 %v3791_v61  ;;  %v3935_v61 = vor.u32 %v4277_v58, %v3934_v57  ;;  %v4239_v0 = vld [vmem:[%s6707_s1 + $0x204] sm:$0xf0]  ;;  %6767 = vst [vmem:[#allocation17_spill] sm:$0xff] %v5281_v4  ;;  %v5284_v5 = vld [vmem:[%s5018_s25 + $0x54] sm:$0xf0]  ;;  %v812_v16 = vshrl.u32 %v5247_v37, 16  ;;  %v4404_v18 = vor.u32 %v4403_v62, %v4402_v60 }
  0x58   : > { %2264 = vmatpush.bf16.msrb.mxu1 %v3855_v2  ;;  %2309 = vmatpush.bf16.msrb.mxu2 %v3951_v25  ;;  %v515_v2 = vpack.c.b16 %v507_v55, %v507_v55  ;;  %v3783_v6 = vor.u32 %v4239_v0, %v3782_v63  ;;  %v3846_v7 = vld [vmem:[%s6707_s1 + $0x280] sm:$0xf]  ;;  %v4255_v8 = vld [vmem:[%s6707_s1 + $0x284] sm:$0xf0]  ;;  %v3998_v13 = vld [vmem:[%s6707_s1 + $0x3b0] sm:$0xf] }
  0x59   : > { %v3847_v10 = vor.u32 %v4255_v8, %v3846_v7  ;;  %v4293_v14 = vld [vmem:[%s6707_s1 + $0x3b4] sm:$0xf0]  ;;  %v3926_v15 = vld [vmem:[%s6707_s1 + $0x320] sm:$0xf]  ;;  %v816_v17 = vrot.slane %v814_v59, 1  ;;  %v665_v47 = vrot.slane %v4404_v18, 1 }
  0x5a   : > { %2358 = vmatpush.bf16.msrb.mxu3 %v4015_v38  ;;  %v3999_v19 = vor.u32 %v4293_v14, %v3998_v13  ;;  %v4275_v25 = vld [vmem:[%s6707_s1 + $0x324] sm:$0xf0]  ;;  %v3990_v26 = vld [vmem:[%s6707_s1 + $0x3a0] sm:$0xf]  ;;  %v3918_v29 = vld [vmem:[%s6707_s1 + $0x310] sm:$0xf] }
  0x5b   : > { %2216 = vmatpush.bf16.msrb.mxu0 %v3783_v6  ;;  %v3927_v27 = vor.u32 %v4275_v25, %v3926_v15  ;;  %v4291_v28 = vld [vmem:[%s6707_s1 + $0x3a4] sm:$0xf0]  ;;  %v4273_v33 = vld [vmem:[%s6707_s1 + $0x314] sm:$0xf0]  ;;  %v598_v34 = vshll.u32 %v515_v2, 16  ;;  %v666_v55 = vrot.slane %v515_v2, 1 }
  0x5c   : > { %2310 = vmatpush.bf16.msrb.mxu2 %v3943_v40  ;;  %2265 = vmatpush.bf16.msrb.mxu1 %v3847_v10  ;;  %v3991_v35 = vor.u32 %v4291_v28, %v3990_v26  ;;  %v5318_v36 = vld [vmem:[%s5018_s25 + $0x54] sm:$0xff]   ;;  %v3919_v40 = vor.u32 %v4273_v33, %v3918_v29  ;;  %v3982_v42 = vld [vmem:[%s6707_s1 + $0x390] sm:$0xf]  ;;  %v370_v59 = vld [vmem:[%s5018_s25 + $0x5c] sm:$0x1] }
  0x5d   : > { %6768 = vst [vmem:[#allocation18_spill] sm:$0xff] %v5318_v36  ;;  %v4526_v38 = vld [vmem:[%s5018_s25 + $0x54] sm:$0xf0]  ;;  %v600_v57 = vrot.slane %v598_v34, 1  ;;  %v3910_v60 = vld [vmem:[%s6707_s1 + $0x300] sm:$0xf]  ;;  %v5338_v62 = vsel %vm646_vm0, %v665_v47, %v666_v55  ;;  %v508_v8 = vunpack.c.l.b16 %v370_v59 }
  0x5e   : > { %2031 = vmatmul.bf16.gmra.mxu0 %v5067_v20  ;;  %2359 = vmatpush.bf16.msrb.mxu3 %v4007_v56  ;;  %v4289_v44 = vld [vmem:[%s6707_s1 + $0x394] sm:$0xf0]  ;;  %v5327_v56 = vor.u32 %v816_v17, %v812_v16  ;;  %6769 = vst [vmem:[#allocation19_spill] sm:$0xff] %v5338_v62  ;;  %v4527_v0 = vld [vmem:[%s5018_s25 + $0x54] sm:$0xe]  ;;  %v605_v16 = vshll.u32 %v5318_v36, 16 }
  0x5f   : > { %v3983_v58 = vor.u32 %v4289_v44, %v3982_v42  ;;  %v3974_v2 = vld [vmem:[%s6707_s1 + $0x380] sm:$0xf]  ;;  %v4287_v6 = vld [vmem:[%s6707_s1 + $0x384] sm:$0xf0]  ;;  %v4094_v13 = vld [vmem:[%s6707_s1 + $0x470] sm:$0xf]  ;;  %v516_v15 = vpack.c.b16 %v508_v8, %v508_v8  ;;  %v4528_v26 = vor.u32 %v4527_v0, %v4526_v38 }
  0x60   : > { %2311 = vmatpush.bf16.msrb.mxu2 %v3935_v61  ;;  %v4271_v61 = vld [vmem:[%s6707_s1 + $0x304] sm:$0xf0]  ;;  %v5350_v7 = vsel %vm517_vm1, %v5327_v56, %v600_v57  ;;  %v3975_v10 = vor.u32 %v4287_v6, %v3974_v2  ;;  %v4317_v14 = vld [vmem:[%s6707_s1 + $0x474] sm:$0xf0]  ;;  %v4188_v18 = vld [vmem:[%s6707_s1 + $0x74] sm:$0xf] }
  0x61   : > { %2178 = vmatmul.bf16.gmra.mxu3 %v5089_v31  ;;  %2129 = vmatmul.bf16.gmra.mxu2 %v5110_v48  ;;  %v3911_v63 = vor.u32 %v4271_v61, %v3910_v60  ;;  %6770 = vst [vmem:[#allocation20_spill] sm:$0xff] %v5350_v7  ;;  %v4095_v17 = vor.u32 %v4317_v14, %v4094_v13  ;;  %v603_v28 = vshrl.u32 %v5318_v36, 16  ;;  %v607_v29 = vrot.slane %v605_v16, 1  ;;  %v5372_v55 = vld [vmem:[%s5018_s25 + $0x60] sm:$0xff]   ;;  %v4530_v6 = vld [vmem:[%s5018_s25 + $0xc] sm:$0xe] }
  0x62   : > { %2360 = vmatpush.bf16.msrb.mxu3 %v3999_v19  ;;  %v3584_v19 = vld [vmem:[%s6707_s1 + $0x78] sm:$0xf0]  ;;  %v610_v33 = vshll.u32 %v516_v15, 16  ;;  %v669_v42 = vrot.slane %v516_v15, 1  ;;  %v4086_v8 = vld [vmem:[%s6707_s1 + $0x460] sm:$0xf] }
  0x63   : > { %2080 = vmatmul.bf16.gmra.mxu1 %v5116_v53  ;;  %v3587_v25 = vor.u32 %v4188_v18, %v3584_v19  ;;  %2405 = vmatpush.bf16.msra.mxu0 %v4095_v17  ;;  %v608_v44 = vor.u32 %v607_v29, %v603_v28  ;;  %v4186_v15 = vld [vmem:[%s6707_s1 + $0x64] sm:$0xf]  ;;  %v3576_v16 = vld [vmem:[%s6707_s1 + $0x68] sm:$0xf0]  ;;  %v3477_v28 = vld [vmem:[%s5018_s25 + $0x20] sm:$0x1]  ;;  %v4531_v29 = vor.u32 %v4530_v6, %v5034_v50 }
  0x64   : > { %2312 = vmatpush.bf16.msrb.mxu2 %v3927_v27  ;;  %v3476_v27 = vld [vmem:[%s5018_s25 + $0x14] sm:$0x1]  ;;  %v612_v47 = vrot.slane %v610_v33, 1  ;;  %v5402_v19 = vld [vmem:[%s5018_s25 + $0x24] sm:$0xff]  }
  0x65   : > { %2454 = vmatpush.bf16.msra.mxu1 %v3587_v25  ;;  %v735_v34 = vunpack.c.l.b16 %v3476_v27  ;;  %6773 = vst [vmem:[#allocation23_spill] sm:$0xff] %v5402_v19  ;;  %v5405_v25 = vld [vmem:[%s5018_s25 + $0x24] sm:$0xf0]  ;;  %v1287_v27 = vld [vmem:[%s6708_s2] sm:$0x3] }
  0x66   : > { %2361 = vmatpush.bf16.msrb.mxu3 %v3991_v35  ;;  %v3508_v35 = vld [vmem:[%s5018_s25 + $0x20] sm:$0x1]  ;;  %v5380_v60 = vsel %vm517_vm1, %v608_v44, %v612_v47  ;;  %v3509_v44 = vld [vmem:[%s5018_s25 + $0x2c] sm:$0x1] }
  0x67   : > { %v967_v57 = vunpack.c.l.b16 %v3508_v35  ;;  %v743_v38 = vpack.c.b16 %v735_v34, %v735_v34  ;;  %6772 = vst [vmem:[#allocation22_spill] sm:$0xff] %v5380_v60  ;;  %v5412_v34 = vperm.slane %v1287_v27, 0  ;;  %v968_v50 = vunpack.c.l.b16 %v3509_v44  ;;  %v4313_v27 = vld [vmem:[%s6707_s1 + $0x454] sm:$0xf0] }
  0x68   : > { %2313 = vmatpush.bf16.msrb.mxu2 %v3919_v40  ;;  %v668_v40 = vrot.slane %v4528_v26, 1  ;;  %v3579_v26 = vor.u32 %v4186_v15, %v3576_v16  ;;  %v4405_v16 = vld [vmem:[%s5018_s25 + $0x18] sm:$0xf0] }
  0x69   : > { %v5382_v61 = vpack.c.b16 %v967_v57, %v967_v57  ;;  %v759_v2 = vshll.u32 %v743_v38, 16  ;;  %v880_v47 = vrot.slane %v743_v38, 1  ;;  %v879_v57 = vrot.slane %v4531_v29, 1 }
  0x6a   : > { %2362 = vmatpush.bf16.msrb.mxu3 %v3983_v58  ;;  %v754_v58 = vshll.u32 %v5031_v49, 16  ;;  %v5376_v59 = vsel %vm646_vm0, %v668_v40, %v669_v42  ;;  %2455 = vmatpush.bf16.msra.mxu1 %v3579_v26  ;;  %v736_v42 = vunpack.c.l.b16 %v3477_v28  ;;  %v5428_v38 = vpack.c.b16 %v968_v50, %v968_v50  ;;  %v4078_v26 = vld [vmem:[%s6707_s1 + $0x450] sm:$0xf] }
  0x6b   : > { %6771 = vst [vmem:[#allocation21_spill] sm:$0xff] %v5376_v59  ;;  %v991_v13 = vshll.u32 %v5382_v61, 16  ;;  %v761_v18 = vrot.slane %v759_v2, 1  ;;  %v5426_v6 = vsel %vm646_vm0, %v879_v57, %v880_v47 }
  0x6c   : > { %2314 = vmatpush.bf16.msrb.mxu2 %v3911_v63  ;;  %v752_v63 = vshrl.u32 %v5031_v49, 16  ;;  %v756_v0 = vrot.slane %v754_v58, 1  ;;  %6776 = vst [vmem:[#allocation26_spill] sm:$0xff] %v5426_v6  ;;  %v1003_v29 = vshll.u32 %v5428_v38, 16 }
  0x6d   : > { %v993_v33 = vrot.slane %v991_v13, 1 }
  0x6e   : > { %2036 = vmatmul.bf16.gmra.mxu0 %v5102_v41  ;;  %2363 = vmatpush.bf16.msrb.mxu3 %v3975_v10  ;;  %v4315_v10 = vld [vmem:[%s6707_s1 + $0x464] sm:$0xf0]  ;;  %v757_v17 = vor.u32 %v756_v0, %v752_v63  ;;  %v744_v0 = vpack.c.b16 %v736_v42, %v736_v42  ;;  %v3568_v42 = vld [vmem:[%s6707_s1 + $0x58] sm:$0xf0] }
  0x6f   : > { %v4087_v14 = vor.u32 %v4315_v10, %v4086_v8  ;;  %v5421_v58 = vsel %vm517_vm1, %v5106_v45, %v993_v33  ;;  %v998_v8 = vshll.u32 %v5402_v19, 16  ;;  %v4079_v33 = vor.u32 %v4313_v27, %v4078_v26 }
  0x70   : > { %v5415_v40 = vsel %vm517_vm1, %v757_v17, %v761_v18  ;;  %6775 = vst [vmem:[#allocation25_spill] sm:$0xff] %v5421_v58  ;;  %v4406_v17 = vld [vmem:[%s5018_s25 + $0x18] sm:$0xe]  ;;  %v996_v18 = vshrl.u32 %v5402_v19, 16 }
  0x71   : > { %2183 = vmatmul.bf16.gmra.mxu3 %v5136_v9  ;;  %2134 = vmatmul.bf16.gmra.mxu2 %v5140_v11  ;;  %6774 = vst [vmem:[#allocation24_spill] sm:$0xff] %v5415_v40 }
  0x72   : > { %2406 = vmatpush.bf16.msra.mxu0 %v4087_v14  ;;  %v771_v14 = vshll.u32 %v744_v0, 16 }
  0x73   : > { %2085 = vmatmul.bf16.gmra.mxu1 %v5144_v12 }
  0x74   : > { %v773_v57 = vrot.slane %v771_v14, 1 }
  0x76   : > { %2407 = vmatpush.bf16.msra.mxu0 %v4079_v33  ;;  %v5455_v49 = vsel %vm517_vm1, %v5106_v45, %v773_v57 }
  0x77   : > { %6777 = vst [vmem:[#allocation27_spill] sm:$0xff] %v5455_v49 }
  0x7e   : > { %2041 = vmatmul.bf16.gmra.mxu0 %v5136_v9 }
  0x81   : > { %2188 = vmatmul.bf16.gmra.mxu3 %v5158_v21  ;;  %2139 = vmatmul.bf16.gmra.mxu2 %v5179_v43 }
  0x83   : > { %2090 = vmatmul.bf16.gmra.mxu1 %v5185_v46 }
  0x8e   : > { %2046 = vmatmul.bf16.gmra.mxu0 %v5170_v30  ;;  %v3514_v30 = vld [vmem:[%s5018_s25 + $0x68] sm:$0x1] }
  0x91   : > { %2193 = vmatmul.bf16.gmra.mxu3 %v5247_v37  ;;  %2144 = vmatmul.bf16.gmra.mxu2 %v5257_v52 }
  0x93   : > { %2095 = vmatmul.bf16.gmra.mxu1 %v5261_v54 }
  0x9e   : > { %2051 = vmatmul.bf16.gmra.mxu0 %v5247_v37 }
  0xa1   : > { %2198 = vmatmul.bf16.gmra.mxu3 %v5281_v4  ;;  %2149 = vmatmul.bf16.gmra.mxu2 %v5338_v62 }
  0xa3   : > { %2100 = vmatmul.bf16.gmra.mxu1 %v5350_v7 }
  0xae   : > { %2056 = vmatmul.bf16.gmra.mxu0 %v5318_v36 }
  0xb1   : > { %2203 = vmatmul.bf16.gmra.mxu3 %v5372_v55  ;;  %2154 = vmatmul.bf16.gmra.mxu2 %v5376_v59 }
  0xb3   : > { %2105 = vmatmul.bf16.gmra.mxu1 %v5380_v60 }
  0xbb   : > { %v2022_v35 = vpop.f32.mrf.mxu0 }
  0xbc   : > { %v2023_v63 = vadd.f32 %v2022_v35, %v5412_v34  ;;  %v4184_v35 = vld [vmem:[%s6707_s1 + $0x54] sm:$0xf] }
  0xbd   : > { %v3571_v50 = vor.u32 %v4184_v35, %v3568_v42 }
  0xbe   : > { %2217 = vmatmul.bf16.vlgmr.msrb.gmra.mxu0 %v5415_v40 }
  0xbf   : > { %2456 = vmatpush.bf16.msra.mxu1 %v3571_v50 }
  0xc0   : > { %v2071_v2 = vpop.f32.mrf.mxu1 }
  0xc1   : > { %2364 = vmatmul.bf16.vlgmr.msrb.gmra.mxu3 %v5421_v58  ;;  %v2072_v10 = vadd.f32 %v2071_v2, %v2023_v63  ;;  %2315 = vmatmul.bf16.vlgmr.msrb.gmra.mxu2 %v5067_v20  ;;  %v1000_v20 = vrot.slane %v998_v8, 1  ;;  %v3478_v63 = vld [vmem:[%s5018_s25 + $0x2c] sm:$0x1]  ;;  %v4407_v8 = vor.u32 %v4406_v17, %v4405_v16  ;;  %v1005_v58 = vrot.slane %v1003_v29, 1 }
  0xc2   : > { %v778_v17 = vshll.u32 %v5089_v31, 16 }
  0xc3   : > { %v2024_v13 = vpop.f32.mrf.mxu0  ;;  %2266 = vmatmul.bf16.vlgmr.msrb.gmra.mxu1 %v5426_v6  ;;  %v1001_v27 = vor.u32 %v1000_v20, %v996_v18  ;;  %v882_v14 = vrot.slane %v4407_v8, 1  ;;  %v4070_v8 = vld [vmem:[%s6707_s1 + $0x440] sm:$0xf] }
  0xc4   : > { %v2169_v15 = vpop.f32.mrf.mxu3  ;;  %v2120_v28 = vpop.f32.mrf.mxu2  ;;  %v2025_v47 = vadd.f32 %v2024_v13, %v5412_v34 }
  0xc5   : > { %v2121_v44 = vadd.f32 %v2120_v28, %v2072_v10  ;;  %v737_v10 = vunpack.c.l.b16 %v3478_v63  ;;  %v3510_v28 = vld [vmem:[%s5018_s25 + $0x38] sm:$0x1]  ;;  %v5460_v16 = vsel %vm517_vm1, %v1001_v27, %v1005_v58  ;;  %v4533_v58 = vld [vmem:[%s5018_s25 + $0x24] sm:$0xe] }
  0xc6   : > { %6778 = vst [vmem:[#allocation28_spill] sm:$0xff] %v5460_v16  ;;  %v969_v18 = vunpack.c.l.b16 %v3510_v28 }
  0xc7   : > { %v5451_v2 = vadd.f32 %v2169_v15, %v2121_v44  ;;  %v883_v15 = vrot.slane %v744_v0, 1  ;;  %v745_v45 = vpack.c.b16 %v737_v10, %v737_v10  ;;  %v776_v0 = vshrl.u32 %v5089_v31, 16 }
  0xc8   : > { %v2073_v26 = vpop.f32.mrf.mxu1  ;;  %v5472_v57 = vpack.c.b16 %v969_v18, %v969_v18 }
  0xc9   : > { %v2074_v40 = vadd.f32 %v2073_v26, %v2025_v47  ;;  %v5468_v44 = vsel %vm646_vm0, %v882_v14, %v883_v15  ;;  %v780_v47 = vrot.slane %v778_v17, 1  ;;  %v4311_v26 = vld [vmem:[%s6707_s1 + $0x444] sm:$0xf0]  ;;  %v4182_v14 = vld [vmem:[%s6707_s1 + $0x44] sm:$0xf] }
  0xca   : > { %6779 = vst [vmem:[#allocation29_spill] sm:$0xff] %v5468_v44  ;;  %v1015_v28 = vshll.u32 %v5472_v57, 16 }
  0xcb   : > { %v2027_v6 = vpop.f32.mrf.mxu0  ;;  %v781_v10 = vor.u32 %v780_v47, %v776_v0  ;;  %v3479_v0 = vld [vmem:[%s5018_s25 + $0x38] sm:$0x1] }
  0xcc   : > { %v2171_v13 = vpop.f32.mrf.mxu3  ;;  %v2122_v35 = vpop.f32.mrf.mxu2  ;;  %v2028_v29 = vadd.f32 %v2027_v6, %v5412_v34  ;;  %v783_v6 = vshll.u32 %v745_v45, 16 }
  0xcd   : > { %v2123_v20 = vadd.f32 %v2122_v35, %v2074_v40  ;;  %v3560_v35 = vld [vmem:[%s6707_s1 + $0x48] sm:$0xf0] }
  0xce   : > { %2222 = vmatmul.bf16.gmra.mxu0 %v5455_v49  ;;  %v785_v18 = vrot.slane %v783_v6, 1  ;;  %v738_v6 = vunpack.c.l.b16 %v3479_v0 }
  0xcf   : > { %v5464_v33 = vadd.f32 %v2171_v13, %v2123_v20  ;;  %v4071_v13 = vor.u32 %v4311_v26, %v4070_v8  ;;  %v5491_v20 = vld [vmem:[%s5018_s25 + $0x3c] sm:$0xff]   ;;  %v4534_v8 = vor.u32 %v4533_v58, %v5092_v32 }
  0xd0   : > { %v2076_v42 = vpop.f32.mrf.mxu1  ;;  %6780 = vst [vmem:[#allocation30_spill] sm:$0xff] %v5491_v20  ;;  %v1020_v0 = vshrl.u32 %v5491_v20, 16 }
  0xd1   : > { %2369 = vmatmul.bf16.gmra.mxu3 %v5460_v16  ;;  %v2077_v50 = vadd.f32 %v2076_v42, %v2028_v29  ;;  %2320 = vmatmul.bf16.gmra.mxu2 %v5402_v19  ;;  %v5494_v29 = vld [vmem:[%s5018_s25 + $0x3c] sm:$0xf0]  ;;  %v3563_v42 = vor.u32 %v4182_v14, %v3560_v35  ;;  %v1017_v16 = vrot.slane %v1015_v28, 1 }
  0xd2   : > { %2408 = vmatpush.bf16.msra.mxu0 %v4071_v13  ;;  %v886_v13 = vrot.slane %v745_v45, 1 }
  0xd3   : > { %v2029_v40 = vpop.f32.mrf.mxu0  ;;  %2271 = vmatmul.bf16.gmra.mxu1 %v5468_v44  ;;  %v885_v44 = vrot.slane %v4534_v8, 1  ;;  %v4309_v8 = vld [vmem:[%s6707_s1 + $0x434] sm:$0xf0] }
  0xd4   : > { %v2174_v63 = vpop.f32.mrf.mxu3  ;;  %v2125_v27 = vpop.f32.mrf.mxu2  ;;  %v2030_v17 = vadd.f32 %v2029_v40, %v5412_v34  ;;  %2457 = vmatpush.bf16.msra.mxu1 %v3563_v42  ;;  %v5501_v40 = vsel %vm517_vm1, %v781_v10, %v785_v18  ;;  %v746_v10 = vpack.c.b16 %v738_v6, %v738_v6  ;;  %v4408_v42 = vld [vmem:[%s5018_s25 + $0x30] sm:$0xf0] }
  0xd5   : > { %v2126_v15 = vadd.f32 %v2125_v27, %v2077_v50  ;;  %6781 = vst [vmem:[#allocation31_spill] sm:$0xff] %v5501_v40  ;;  %v3511_v27 = vld [vmem:[%s5018_s25 + $0x44] sm:$0x1] }
  0xd6   : > { %v970_v32 = vunpack.c.l.b16 %v3511_v27  ;;  %v4180_v27 = vld [vmem:[%s6707_s1 + $0x34] sm:$0xf] }
  0xd7   : > { %v5497_v47 = vadd.f32 %v2174_v63, %v2126_v15  ;;  %v5507_v63 = vsel %vm517_vm1, %v5175_v39, %v1017_v16  ;;  %v5514_v15 = vsel %vm646_vm0, %v885_v44, %v886_v13  ;;  %v1022_v16 = vshll.u32 %v5491_v20, 16  ;;  %v4062_v44 = vld [vmem:[%s6707_s1 + $0x430] sm:$0xf]  ;;  %v3552_v13 = vld [vmem:[%s6707_s1 + $0x38] sm:$0xf0] }
  0xd8   : > { %v2078_v26 = vpop.f32.mrf.mxu1  ;;  %6782 = vst [vmem:[#allocation32_spill] sm:$0xff] %v5507_v63  ;;  %v5516_v45 = vpack.c.b16 %v970_v32, %v970_v32  ;;  %v4063_v6 = vor.u32 %v4309_v8, %v4062_v44 }
  0xd9   : > { %v2079_v31 = vadd.f32 %v2078_v26, %v2030_v17  ;;  %6783 = vst [vmem:[#allocation33_spill] sm:$0xff] %v5514_v15 }
  0xda   : > { %2409 = vmatpush.bf16.msra.mxu0 %v4063_v6 }
  0xdb   : > { %v2032_v50 = vpop.f32.mrf.mxu0 }
  0xdc   : > { %v2176_v49 = vpop.f32.mrf.mxu3  ;;  %v2127_v19 = vpop.f32.mrf.mxu2  ;;  %v2033_v28 = vadd.f32 %v2032_v50, %v5412_v34  ;;  %v1027_v50 = vshll.u32 %v5516_v45, 16 }
  0xdd   : > { %v2128_v58 = vadd.f32 %v2127_v19, %v2079_v31  ;;  %v795_v31 = vshll.u32 %v746_v10, 16 }
  0xde   : > { %2227 = vmatmul.bf16.gmra.mxu0 %v5501_v40 }
  0xdf   : > { %v5510_v14 = vadd.f32 %v2176_v49, %v2128_v58  ;;  %v4409_v49 = vld [vmem:[%s5018_s25 + $0x30] sm:$0xe] }
  0xe0   : > { %v2081_v35 = vpop.f32.mrf.mxu1  ;;  %v4410_v40 = vor.u32 %v4409_v49, %v4408_v42  ;;  %v802_v49 = vshll.u32 %v5158_v21, 16 }
  0xe1   : > { %2374 = vmatmul.bf16.gmra.mxu3 %v5507_v63  ;;  %v2082_v17 = vadd.f32 %v2081_v35, %v2033_v28  ;;  %2325 = vmatmul.bf16.gmra.mxu2 %v5136_v9  ;;  %v1024_v9 = vrot.slane %v1022_v16, 1  ;;  %v797_v28 = vrot.slane %v795_v31, 1  ;;  %v3555_v35 = vor.u32 %v4180_v27, %v3552_v13  ;;  %v3480_v63 = vld [vmem:[%s5018_s25 + $0x44] sm:$0x1] }
  0xe2   : > { %v888_v31 = vrot.slane %v4410_v40, 1 }
  0xe3   : > { %v2034_v18 = vpop.f32.mrf.mxu0  ;;  %2276 = vmatmul.bf16.gmra.mxu1 %v5514_v15  ;;  %v1025_v8 = vor.u32 %v1024_v9, %v1020_v0  ;;  %v1029_v15 = vrot.slane %v1027_v50, 1  ;;  %v5543_v59 = vsel %vm517_vm1, %v5175_v39, %v797_v28 }
  0xe4   : > { %v2179_v19 = vpop.f32.mrf.mxu3  ;;  %v2130_v26 = vpop.f32.mrf.mxu2  ;;  %v2035_v58 = vadd.f32 %v2034_v18, %v5412_v34  ;;  %2458 = vmatpush.bf16.msra.mxu1 %v3555_v35  ;;  %6784 = vst [vmem:[#allocation34_spill] sm:$0xff] %v5543_v59  ;;  %v3481_v35 = vld [vmem:[%s5018_s25 + $0x50] sm:$0x1] }
  0xe5   : > { %v2131_v32 = vadd.f32 %v2130_v26, %v2082_v17  ;;  %v739_v17 = vunpack.c.l.b16 %v3480_v63  ;;  %v3512_v26 = vld [vmem:[%s5018_s25 + $0x50] sm:$0x1]  ;;  %v5548_v42 = vsel %vm517_vm1, %v1025_v8, %v1029_v15  ;;  %v804_v15 = vrot.slane %v802_v49, 1  ;;  %v4307_v8 = vld [vmem:[%s6707_s1 + $0x424] sm:$0xf0] }
  0xe6   : > { %6785 = vst [vmem:[#allocation35_spill] sm:$0xff] %v5548_v42  ;;  %v971_v0 = vunpack.c.l.b16 %v3512_v26  ;;  %v4178_v49 = vld [vmem:[%s6707_s1 + $0x24] sm:$0xf] }
  0xe7   : > { %v5539_v16 = vadd.f32 %v2179_v19, %v2131_v32  ;;  %v889_v19 = vrot.slane %v746_v10, 1  ;;  %v747_v39 = vpack.c.b16 %v739_v17, %v739_v17  ;;  %v800_v10 = vshrl.u32 %v5158_v21, 16 }
  0xe8   : > { %v2083_v44 = vpop.f32.mrf.mxu1  ;;  %v5559_v13 = vpack.c.b16 %v971_v0, %v971_v0  ;;  %v3544_v0 = vld [vmem:[%s6707_s1 + $0x28] sm:$0xf0] }
  0xe9   : > { %v2084_v36 = vadd.f32 %v2083_v44, %v2035_v58  ;;  %v5556_v6 = vsel %vm646_vm0, %v888_v31, %v889_v19  ;;  %v807_v32 = vshll.u32 %v747_v39, 16  ;;  %v4536_v58 = vld [vmem:[%s5018_s25 + $0x3c] sm:$0xe]  ;;  %v4054_v44 = vld [vmem:[%s6707_s1 + $0x420] sm:$0xf]  ;;  %v805_v26 = vor.u32 %v804_v15, %v800_v10  ;;  %v5573_v31 = vld [vmem:[%s5018_s25 + $0x54] sm:$0xff]  }
  0xea   : > { %6786 = vst [vmem:[#allocation36_spill] sm:$0xff] %v5556_v6  ;;  %v4055_v19 = vor.u32 %v4307_v8, %v4054_v44  ;;  %v3547_v10 = vor.u32 %v4178_v49, %v3544_v0  ;;  %v740_v15 = vunpack.c.l.b16 %v3481_v35  ;;  %v4537_v44 = vor.u32 %v4536_v58, %v5161_v24 }
  0xeb   : > { %v2037_v60 = vpop.f32.mrf.mxu0  ;;  %6787 = vst [vmem:[#allocation37_spill] sm:$0xff] %v5573_v31  ;;  %v892_v35 = vrot.slane %v747_v39, 1 }
  0xec   : > { %v2181_v18 = vpop.f32.mrf.mxu3  ;;  %v2132_v27 = vpop.f32.mrf.mxu2  ;;  %v2038_v50 = vadd.f32 %v2037_v60, %v5412_v34  ;;  %2410 = vmatpush.bf16.msra.mxu0 %v4055_v19  ;;  %2459 = vmatpush.bf16.msra.mxu1 %v3547_v10  ;;  %v4411_v10 = vld [vmem:[%s5018_s25 + $0x48] sm:$0xf0] }
  0xed   : > { %v2133_v9 = vadd.f32 %v2132_v27, %v2084_v36  ;;  %v5576_v27 = vld [vmem:[%s5018_s25 + $0x54] sm:$0xf0] }
  0xee   : > { %2232 = vmatmul.bf16.gmra.mxu0 %v5543_v59  ;;  %v3513_v59 = vld [vmem:[%s5018_s25 + $0x5c] sm:$0x1] }
  0xef   : > { %v5552_v63 = vadd.f32 %v2181_v18, %v2133_v9  ;;  %v1039_v18 = vshll.u32 %v5559_v13, 16 }
  0xf0   : > { %v2086_v40 = vpop.f32.mrf.mxu1 }
  0xf1   : > { %2379 = vmatmul.bf16.gmra.mxu3 %v5548_v42  ;;  %v2087_v36 = vadd.f32 %v2086_v40, %v2038_v50  ;;  %2330 = vmatmul.bf16.gmra.mxu2 %v5491_v20  ;;  %v809_v40 = vrot.slane %v807_v32, 1  ;;  %v1041_v8 = vrot.slane %v1039_v18, 1  ;;  %v1046_v18 = vshll.u32 %v5573_v31, 16 }
  0xf3   : > { %v2039_v60 = vpop.f32.mrf.mxu0  ;;  %2281 = vmatmul.bf16.gmra.mxu1 %v5556_v6  ;;  %v5590_v7 = vsel %vm517_vm1, %v805_v26, %v809_v40  ;;  %v5597_v19 = vsel %vm517_vm1, %v5327_v56, %v1041_v8 }
  0xf4   : > { %v2184_v28 = vpop.f32.mrf.mxu3  ;;  %v2135_v17 = vpop.f32.mrf.mxu2  ;;  %v2040_v50 = vadd.f32 %v2039_v60, %v5412_v34  ;;  %6788 = vst [vmem:[#allocation38_spill] sm:$0xff] %v5590_v7  ;;  %v972_v60 = vunpack.c.l.b16 %v3513_v59 }
  0xf5   : > { %v2136_v9 = vadd.f32 %v2135_v17, %v2087_v36  ;;  %v5592_v17 = vpack.c.b16 %v740_v15, %v740_v15  ;;  %6789 = vst [vmem:[#allocation39_spill] sm:$0xff] %v5597_v19  ;;  %v4412_v15 = vld [vmem:[%s5018_s25 + $0x48] sm:$0xe] }
  0xf6   : > { %v5604_v59 = vpack.c.b16 %v972_v60, %v972_v60  ;;  %v4046_v60 = vld [vmem:[%s6707_s1 + $0x410] sm:$0xf] }
  0xf7   : > { %v5585_v42 = vadd.f32 %v2184_v28, %v2136_v9  ;;  %v891_v28 = vrot.slane %v4537_v44, 1  ;;  %v819_v58 = vshll.u32 %v5592_v17, 16  ;;  %v3648_v9 = vld [vmem:[%s6707_s1 + $0xf8] sm:$0xf0]  ;;  %v1044_v44 = vshrl.u32 %v5573_v31, 16 }
  0xf8   : > { %v2088_v21 = vpop.f32.mrf.mxu1 }
  0xf9   : > { %v2089_v6 = vadd.f32 %v2088_v21, %v2040_v50  ;;  %v5608_v49 = vsel %vm646_vm0, %v891_v28, %v892_v35  ;;  %v821_v40 = vrot.slane %v819_v58, 1  ;;  %v4220_v58 = vld [vmem:[%s6707_s1 + $0x174] sm:$0xf] }
  0xfa   : > { %6790 = vst [vmem:[#allocation40_spill] sm:$0xff] %v5608_v49 }
  0xfb   : > { %v2042_v20 = vpop.f32.mrf.mxu0 }
  0xfc   : > { %v2186_v36 = vpop.f32.mrf.mxu3  ;;  %v2137_v32 = vpop.f32.mrf.mxu2  ;;  %v2043_v21 = vadd.f32 %v2042_v20, %v5412_v34  ;;  %v4204_v20 = vld [vmem:[%s6707_s1 + $0xf4] sm:$0xf] }
  0xfd   : > { %v2138_v24 = vadd.f32 %v2137_v32, %v2089_v6  ;;  %v3651_v8 = vor.u32 %v4204_v20, %v3648_v9  ;;  %v4305_v32 = vld [vmem:[%s6707_s1 + $0x414] sm:$0xf0]  ;;  %v3712_v9 = vld [vmem:[%s6707_s1 + $0x178] sm:$0xf0] }
  0xfe   : > { %2237 = vmatmul.bf16.gmra.mxu0 %v5590_v7  ;;  %v4047_v35 = vor.u32 %v4305_v32, %v4046_v60  ;;  %v3640_v60 = vld [vmem:[%s6707_s1 + $0xe8] sm:$0xf0]  ;;  %v3482_v32 = vld [vmem:[%s5018_s25 + $0x5c] sm:$0x1] }
  0xff   : > { %v5601_v26 = vadd.f32 %v2186_v36, %v2138_v24  ;;  %v1048_v36 = vrot.slane %v1046_v18, 1  ;;  %2503 = vmatpush.bf16.msra.mxu2 %v3651_v8  ;;  %v4176_v24 = vld [vmem:[%s6707_s1 + $0x14] sm:$0xf]  ;;  %v4202_v8 = vld [vmem:[%s6707_s1 + $0xe4] sm:$0xf] }
 0x100   : > { %v2091_v39 = vpop.f32.mrf.mxu1  ;;  %2411 = vmatpush.bf16.msra.mxu0 %v4047_v35 }
 0x101   : > { %2384 = vmatmul.bf16.gmra.mxu3 %v5597_v19  ;;  %v2092_v0 = vadd.f32 %v2091_v39, %v2043_v21  ;;  %2335 = vmatmul.bf16.gmra.mxu2 %v5247_v37  ;;  %v1051_v37 = vshll.u32 %v5604_v59, 16  ;;  %v3536_v21 = vld [vmem:[%s6707_s1 + $0x18] sm:$0xf0]  ;;  %v3715_v19 = vor.u32 %v4220_v58, %v3712_v9 }
 0x102   : > { %v3539_v20 = vor.u32 %v4176_v24, %v3536_v21  ;;  %v4218_v24 = vld [vmem:[%s6707_s1 + $0x164] sm:$0xf]  ;;  %v3704_v21 = vld [vmem:[%s6707_s1 + $0x168] sm:$0xf0] }
 0x103   : > { %v2044_v6 = vpop.f32.mrf.mxu0  ;;  %2286 = vmatmul.bf16.gmra.mxu1 %v5608_v49  ;;  %v1049_v49 = vor.u32 %v1048_v36, %v1044_v44  ;;  %v1053_v62 = vrot.slane %v1051_v37, 1  ;;  %2552 = vmatpush.bf16.msra.mxu3 %v3715_v19  ;;  %v3707_v35 = vor.u32 %v4218_v24, %v3704_v21  ;;  %v3632_v44 = vld [vmem:[%s6707_s1 + $0xd8] sm:$0xf0] }
 0x104   : > { %v2189_v50 = vpop.f32.mrf.mxu3  ;;  %v2140_v28 = vpop.f32.mrf.mxu2  ;;  %v2045_v39 = vadd.f32 %v2044_v6, %v5412_v34  ;;  %v4413_v6 = vor.u32 %v4412_v15, %v4411_v10  ;;  %2460 = vmatpush.bf16.msra.mxu1 %v3539_v20  ;;  %v5659_v10 = vsel %vm517_vm1, %v5327_v56, %v821_v40  ;;  %v741_v15 = vunpack.c.l.b16 %v3482_v32  ;;  %v3696_v56 = vld [vmem:[%s6707_s1 + $0x158] sm:$0xf0] }
 0x105   : > { %v2141_v18 = vadd.f32 %v2140_v28, %v2092_v0  ;;  %v3643_v0 = vor.u32 %v4202_v8, %v3640_v60  ;;  %6791 = vst [vmem:[#allocation41_spill] sm:$0xff] %v5659_v10  ;;  %v973_v20 = vunpack.c.l.b16 %v3514_v30  ;;  %v5676_v9 = vsel %vm517_vm1, %v1049_v49, %v1053_v62  ;;  %v3624_v62 = vld [vmem:[%s6707_s1 + $0xc8] sm:$0xf0] }
 0x106   : > { %v894_v19 = vrot.slane %v4413_v6, 1  ;;  %6792 = vst [vmem:[#allocation42_spill] sm:$0xff] %v5676_v9  ;;  %v826_v8 = vshll.u32 %v5281_v4, 16  ;;  %v4198_v6 = vld [vmem:[%s6707_s1 + $0xc4] sm:$0xf]  ;;  %v838_v49 = vshll.u32 %v5372_v55, 16 }
 0x107   : > { %v5648_v28 = vadd.f32 %v2189_v50, %v2141_v18  ;;  %2504 = vmatpush.bf16.msra.mxu2 %v3643_v0  ;;  %v4200_v18 = vld [vmem:[%s6707_s1 + $0xd4] sm:$0xf]  ;;  %2553 = vmatpush.bf16.msra.mxu3 %v3707_v35  ;;  %v5680_v0 = vpack.c.b16 %v741_v15, %v741_v15  ;;  %v5692_v21 = vpack.c.b16 %v973_v20, %v973_v20  ;;  %v4214_v35 = vld [vmem:[%s6707_s1 + $0x144] sm:$0xf] }
 0x108   : > { %v2093_v7 = vpop.f32.mrf.mxu1  ;;  %v3635_v37 = vor.u32 %v4200_v18, %v3632_v44  ;;  %v824_v18 = vshrl.u32 %v5281_v4, 16  ;;  %v828_v44 = vrot.slane %v826_v8, 1 }
 0x109   : > { %v2094_v58 = vadd.f32 %v2093_v7, %v2045_v39  ;;  %v4216_v7 = vld [vmem:[%s6707_s1 + $0x154] sm:$0xf]  ;;  %v895_v39 = vrot.slane %v5592_v17, 1  ;;  %v3627_v17 = vor.u32 %v4198_v6, %v3624_v62  ;;  %v4038_v6 = vld [vmem:[%s6707_s1 + $0x400] sm:$0xf] }
 0x10a   : > { %v3699_v30 = vor.u32 %v4216_v7, %v3696_v56  ;;  %v831_v56 = vshll.u32 %v5680_v0, 16  ;;  %v4303_v62 = vld [vmem:[%s6707_s1 + $0x404] sm:$0xf0] }
 0x10b   : > { %v2047_v50 = vpop.f32.mrf.mxu0  ;;  %2505 = vmatpush.bf16.msra.mxu2 %v3635_v37  ;;  %v5701_v15 = vsel %vm646_vm0, %v894_v19, %v895_v39  ;;  %v3616_v19 = vld [vmem:[%s6707_s1 + $0xb8] sm:$0xf0]  ;;  %v836_v39 = vshrl.u32 %v5372_v55, 16 }
 0x10c   : > { %v2191_v36 = vpop.f32.mrf.mxu3  ;;  %v2142_v40 = vpop.f32.mrf.mxu2  ;;  %v2048_v32 = vadd.f32 %v2047_v50, %v5412_v34  ;;  %6793 = vst [vmem:[#allocation43_spill] sm:$0xff] %v5701_v15  ;;  %2554 = vmatpush.bf16.msra.mxu3 %v3699_v30  ;;  %v833_v4 = vrot.slane %v831_v56, 1 }
 0x10d   : > { %v2143_v60 = vadd.f32 %v2142_v40, %v2094_v58  ;;  %v3688_v58 = vld [vmem:[%s6707_s1 + $0x148] sm:$0xf0]  ;;  %v4196_v40 = vld [vmem:[%s6707_s1 + $0xb4] sm:$0xf] }
 0x10e   : > { %2242 = vmatmul.bf16.gmra.mxu0 %v5659_v10  ;;  %v3691_v37 = vor.u32 %v4214_v35, %v3688_v58  ;;  %v3619_v30 = vor.u32 %v4196_v40, %v3616_v19  ;;  %v829_v58 = vor.u32 %v828_v44, %v824_v18  ;;  %v4212_v40 = vld [vmem:[%s6707_s1 + $0x134] sm:$0xf]  ;;  %v5733_v10 = vld [vmem:[%s5018_s25 + $0x6c] sm:$0xff]  }
 0x10f   : > { %v5689_v24 = vadd.f32 %v2191_v36, %v2143_v60  ;;  %v4539_v36 = vld [vmem:[%s5018_s25 + $0x54] sm:$0xe]  ;;  %2506 = vmatpush.bf16.msra.mxu2 %v3627_v17  ;;  %v840_v60 = vrot.slane %v838_v49, 1  ;;  %v4039_v17 = vor.u32 %v4303_v62, %v4038_v6  ;;  %v4174_v49 = vld [vmem:[%s6707_s1 + $0x4] sm:$0xf] }
 0x110   : > { %v2096_v50 = vpop.f32.mrf.mxu1  ;;  %2555 = vmatpush.bf16.msra.mxu3 %v3691_v37  ;;  %v5736_v18 = vld [vmem:[%s5018_s25 + $0x6c] sm:$0xf0]  ;;  %v3680_v37 = vld [vmem:[%s6707_s1 + $0x138] sm:$0xf0]  ;;  %v4194_v6 = vld [vmem:[%s6707_s1 + $0xa4] sm:$0xf] }
 0x111   : > { %2389 = vmatmul.bf16.gmra.mxu3 %v5676_v9  ;;  %v2097_v20 = vadd.f32 %v2096_v50, %v2048_v32  ;;  %2340 = vmatmul.bf16.gmra.mxu2 %v5573_v31  ;;  %v1063_v32 = vshll.u32 %v5692_v21, 16  ;;  %v3528_v50 = vld [vmem:[%s6707_s1 + $0x8] sm:$0xf0]  ;;  %6794 = vst [vmem:[#allocation44_spill] sm:$0xff] %v5736_v18  ;;  %v3483_v62 = vld [vmem:[%s5018_s25 + $0x68] sm:$0x1] }
 0x112   : > { %v3531_v44 = vor.u32 %v4174_v49, %v3528_v50  ;;  %2412 = vmatpush.bf16.msra.mxu0 %v4039_v17  ;;  %v5751_v49 = vor.u32 %v840_v60, %v836_v39  ;;  %v3515_v39 = vld [vmem:[%s5018_s25 + $0x74] sm:$0x1] }
 0x113   : > { %v2049_v7 = vpop.f32.mrf.mxu0  ;;  %2291 = vmatmul.bf16.gmra.mxu1 %v5701_v15  ;;  %2507 = vmatpush.bf16.msra.mxu2 %v3619_v30  ;;  %v4210_v15 = vld [vmem:[%s6707_s1 + $0x124] sm:$0xf]  ;;  %v3672_v30 = vld [vmem:[%s6707_s1 + $0x128] sm:$0xf0]  ;;  %v4192_v60 = vld [vmem:[%s6707_s1 + $0x94] sm:$0xf] }
 0x114   : > { %v2194_v8 = vpop.f32.mrf.mxu3  ;;  %v2145_v35 = vpop.f32.mrf.mxu2  ;;  %v2050_v9 = vadd.f32 %v2049_v7, %v5412_v34  ;;  %v3608_v7 = vld [vmem:[%s6707_s1 + $0xa8] sm:$0xf0]  ;;  %2461 = vmatpush.bf16.msra.mxu1 %v3531_v44  ;;  %v3600_v44 = vld [vmem:[%s6707_s1 + $0x98] sm:$0xf0] }
 0x115   : > { %v2146_v19 = vadd.f32 %v2145_v35, %v2097_v20  ;;  %v3683_v20 = vor.u32 %v4212_v40, %v3680_v37  ;;  %v4540_v35 = vor.u32 %v4539_v36, %v5284_v5  ;;  %v3611_v50 = vor.u32 %v4194_v6, %v3608_v7 }
 0x116   : > { %v1065_v40 = vrot.slane %v1063_v32, 1  ;;  %v3675_v37 = vor.u32 %v4210_v15, %v3672_v30  ;;  %v5760_v5 = vsel %vm517_vm1, %v829_v58, %v833_v4  ;;  %v742_v36 = vunpack.c.l.b16 %v3483_v62  ;;  %v4208_v4 = vld [vmem:[%s6707_s1 + $0x114] sm:$0xf]  ;;  %v3664_v15 = vld [vmem:[%s6707_s1 + $0x118] sm:$0xf0] }
 0x117   : > { %v5748_v56 = vadd.f32 %v2194_v8, %v2146_v19  ;;  %2556 = vmatpush.bf16.msra.mxu3 %v3683_v20  ;;  %6795 = vst [vmem:[#allocation45_spill] sm:$0xff] %v5760_v5  ;;  %2508 = vmatpush.bf16.msra.mxu2 %v3611_v50  ;;  %v3603_v32 = vor.u32 %v4192_v60, %v3600_v44  ;;  %v897_v20 = vrot.slane %v4540_v35, 1  ;;  %v974_v7 = vunpack.c.l.b16 %v3515_v39  ;;  %v3592_v60 = vld [vmem:[%s6707_s1 + $0x88] sm:$0xf0] }
 0x118   : > { %v2098_v17 = vpop.f32.mrf.mxu1  ;;  %v5779_v62 = vsel %vm517_vm1, %v5751_v49, %v1065_v40  ;;  %v3667_v35 = vor.u32 %v4208_v4, %v3664_v15  ;;  %v5782_v30 = vpack.c.b16 %v742_v36, %v742_v36 }
 0x119   : > { %v2099_v8 = vadd.f32 %v2098_v17, %v2050_v9  ;;  %v898_v9 = vrot.slane %v5680_v0, 1  ;;  %6796 = vst [vmem:[#allocation46_spill] sm:$0xff] %v5779_v62  ;;  %v4190_v17 = vld [vmem:[%s6707_s1 + $0x84] sm:$0xf]  ;;  %v5802_v39 = vpack.c.b16 %v974_v7, %v974_v7 }
 0x11a   : > { %v3595_v44 = vor.u32 %v4190_v17, %v3592_v60 }
 0x11b   : > { %v2052_v19 = vpop.f32.mrf.mxu0  ;;  %2557 = vmatpush.bf16.msra.mxu3 %v3675_v37  ;;  %2509 = vmatpush.bf16.msra.mxu2 %v3603_v32  ;;  %v4206_v37 = vld [vmem:[%s6707_s1 + $0x104] sm:$0xf]  ;;  %v5800_v36 = vsel %vm646_vm0, %v897_v20, %v898_v9  ;;  %6798 = vst [vmem:[#allocation48_spill] sm:$0xff] %v5802_v39  ;;  %v1070_v32 = vshll.u32 %v5733_v10, 16  ;;  %v4236_v20 = vld [vmem:[%s6707_s1 + $0x1f4] sm:$0xf] }
 0x11c   : > { %v2196_v6 = vpop.f32.mrf.mxu3  ;;  %v2147_v58 = vpop.f32.mrf.mxu2  ;;  %v2053_v0 = vadd.f32 %v2052_v19, %v5412_v34  ;;  %6797 = vst [vmem:[#allocation47_spill] sm:$0xff] %v5800_v36  ;;  %v3776_v9 = vld [vmem:[%s6707_s1 + $0x1f8] sm:$0xf0]  ;;  %v1075_v17 = vshll.u32 %v5802_v39, 16 }
 0x11d   : > { %v2148_v50 = vadd.f32 %v2147_v58, %v2099_v8  ;;  %v3656_v8 = vld [vmem:[%s6707_s1 + $0x108] sm:$0xf0]  ;;  %v843_v58 = vshll.u32 %v5782_v30, 16  ;;  %v3779_v60 = vor.u32 %v4236_v20, %v3776_v9 }
 0x11e   : > { %2247 = vmatmul.bf16.gmra.mxu0 %v5760_v5  ;;  %v4415_v5 = vld [vmem:[%s5018_s25 + $0x60] sm:$0xe]  ;;  %v1077_v9 = vrot.slane %v1075_v17, 1 }
 0x11f   : > { %v5790_v40 = vadd.f32 %v2196_v6, %v2148_v50  ;;  %2558 = vmatpush.bf16.msra.mxu3 %v3667_v35  ;;  %v3659_v6 = vor.u32 %v4206_v37, %v3656_v8  ;;  %2510 = vmatpush.bf16.msra.mxu2 %v3595_v44  ;;  %v1068_v35 = vshrl.u32 %v5733_v10, 16  ;;  %v3840_v44 = vld [vmem:[%s6707_s1 + $0x278] sm:$0xf0] }
 0x120   : > { %v2101_v19 = vpop.f32.mrf.mxu1  ;;  %2601 = vmatpush.bf16.msrb.mxu0 %v3779_v60 }
 0x121   : > { %2394 = vmatmul.bf16.gmra.mxu3 %v5779_v62  ;;  %v2102_v4 = vadd.f32 %v2101_v19, %v2053_v0  ;;  %2345 = vmatmul.bf16.gmra.mxu2 %v5372_v55  ;;  %v4252_v55 = vld [vmem:[%s6707_s1 + $0x274] sm:$0xf]  ;;  %v1072_v0 = vrot.slane %v1070_v32, 1  ;;  %v845_v19 = vrot.slane %v843_v58, 1  ;;  %v4414_v62 = vld [vmem:[%s5018_s25 + $0x60] sm:$0xf0] }
 0x123   : > { %v2054_v15 = vpop.f32.mrf.mxu0  ;;  %2296 = vmatmul.bf16.gmra.mxu1 %v5800_v36  ;;  %2559 = vmatpush.bf16.msra.mxu3 %v3659_v6  ;;  %v3843_v36 = vor.u32 %v4252_v55, %v3840_v44  ;;  %v4416_v6 = vor.u32 %v4415_v5, %v4414_v62  ;;  %v1073_v20 = vor.u32 %v1072_v0, %v1068_v35  ;;  %v4417_v62 = vld [vmem:[%s5018_s25 + $0x18] sm:$0xf0]  ;;  %v4418_v35 = vld [vmem:[%s5018_s25 + $0x18] sm:$0xe] }
 0x124   : > { %v2199_v50 = vpop.f32.mrf.mxu3  ;;  %v2150_v7 = vpop.f32.mrf.mxu2  ;;  %v2055_v8 = vadd.f32 %v2054_v15, %v5412_v34  ;;  %v4419_v44 = vor.u32 %v4418_v35, %v4417_v62 }
 0x125   : > { %v2151_v37 = vadd.f32 %v2150_v7, %v2102_v4  ;;  %2650 = vmatpush.bf16.msrb.mxu1 %v3843_v36  ;;  %v5829_v4 = vsel %vm517_vm1, %v5751_v49, %v845_v19  ;;  %v900_v55 = vrot.slane %v4416_v6, 1  ;;  %v5834_v36 = vsel %vm517_vm1, %v1073_v20, %v1077_v9  ;;  %v3832_v20 = vld [vmem:[%s6707_s1 + $0x268] sm:$0xf0] }
 0x127   : > { %v5825_v31 = vadd.f32 %v2199_v50, %v2151_v37  ;;  %v901_v50 = vrot.slane %v5782_v30, 1 }
 0x128   : > { %v2103_v32 = vpop.f32.mrf.mxu1 }
 0x129   : > { %v2104_v39 = vadd.f32 %v2103_v32, %v2055_v8  ;;  %v5843_v17 = vsel %vm646_vm0, %v900_v55, %v901_v50  ;;  %v4250_v8 = vld [vmem:[%s6707_s1 + $0x264] sm:$0xf]  ;;  %v1112_v32 = vrot.slane %v5382_v61, 1 }
 0x12a   : > { %v3835_v55 = vor.u32 %v4250_v8, %v3832_v20 }
 0x12b   : > { %v2057_v18 = vpop.f32.mrf.mxu0 }
 0x12c   : > { %v2201_v15 = vpop.f32.mrf.mxu3  ;;  %v2152_v58 = vpop.f32.mrf.mxu2  ;;  %v2058_v5 = vadd.f32 %v2057_v18, %v5412_v34  ;;  %v4234_v18 = vld [vmem:[%s6707_s1 + $0x1e4] sm:$0xf]  ;;  %2651 = vmatpush.bf16.msrb.mxu1 %v3835_v55 }
 0x12d   : > { %v2153_v7 = vadd.f32 %v2152_v58, %v2104_v39  ;;  %v3768_v39 = vld [vmem:[%s6707_s1 + $0x1e8] sm:$0xf0]  ;;  %v1111_v58 = vrot.slane %v4419_v44, 1 }
 0x12e   : > { %2252 = vmatmul.bf16.gmra.mxu0 %v5829_v4  ;;  %v3771_v6 = vor.u32 %v4234_v18, %v3768_v39  ;;  %v4542_v18 = vld [vmem:[%s5018_s25 + $0x24] sm:$0xe] }
 0x12f   : > { %v5839_v0 = vadd.f32 %v2201_v15, %v2153_v7  ;;  %v5864_v61 = vsel %vm646_vm0, %v1111_v58, %v1112_v32  ;;  %v4543_v8 = vor.u32 %v4542_v18, %v5405_v25  ;;  %v3824_v25 = vld [vmem:[%s6707_s1 + $0x258] sm:$0xf0]  ;;  %v1115_v58 = vrot.slane %v5428_v38, 1  ;;  %v4421_v38 = vld [vmem:[%s5018_s25 + $0x30] sm:$0xe] }
 0x130   : > { %v2106_v49 = vpop.f32.mrf.mxu1  ;;  %2602 = vmatpush.bf16.msrb.mxu0 %v3771_v6  ;;  %v4232_v6 = vld [vmem:[%s6707_s1 + $0x1d4] sm:$0xf] }
 0x131   : > { %2399 = vmatmul.bf16.gmra.mxu3 %v5834_v36  ;;  %v2107_v60 = vadd.f32 %v2106_v49, %v2058_v5  ;;  %2350 = vmatmul.bf16.gmra.mxu2 %v5733_v10 }
 0x133   : > { %v2059_v30 = vpop.f32.mrf.mxu0  ;;  %2301 = vmatmul.bf16.gmra.mxu1 %v5843_v17 }
 0x134   : > { %v2204_v37 = vpop.f32.mrf.mxu3  ;;  %v2155_v19 = vpop.f32.mrf.mxu2  ;;  %v2060_v15 = vadd.f32 %v2059_v30, %v5412_v34 }
 0x135   : > { %v2156_v9 = vadd.f32 %v2155_v19, %v2107_v60 }
 0x137   : > { %v5861_v50 = vadd.f32 %v2204_v37, %v2156_v9 }
 0x138   : > { %v2108_v7 = vpop.f32.mrf.mxu1 }
 0x139   : > { %v2109_v5 = vadd.f32 %v2108_v7, %v2060_v15  ;;  %v1114_v15 = vrot.slane %v4543_v8, 1 }
 0x13b   : > { %v2218_v62 = vpop.f32.mrf.mxu0 }
 0x13c   : > { %v2206_v35 = vpop.f32.mrf.mxu3  ;;  %v2219_v49 = vadd.f32 %v2218_v62, %v5451_v2  ;;  %v2157_v60 = vpop.f32.mrf.mxu2  ;;  %v4511_v2 = vld [vmem:[%s5018_s25] sm:$0xff]  }
 0x13d   : > { %v2158_v34 = vadd.f32 %v2157_v60, %v2109_v5 }
 0x13e   : > { %2413 = vmatmul.bf16.vlgmr.msra.gmra.mxu0 %v5864_v61 }
 0x13f   : > { %v5869_v30 = vadd.f32 %v2206_v35, %v2158_v34 }
 0x140   : > { %v2267_v44 = vpop.f32.mrf.mxu1 }
 0x141   : > { %2560 = vmatmul.bf16.vlgmr.msra.gmra.mxu3 %v5044_v1  ;;  %v2268_v37 = vadd.f32 %v2267_v44, %v2219_v49  ;;  %2511 = vmatmul.bf16.vlgmr.msra.gmra.mxu2 %v5048_v3  ;;  %v3760_v1 = vld [vmem:[%s6707_s1 + $0x1d8] sm:$0xf0]  ;;  %v4248_v3 = vld [vmem:[%s6707_s1 + $0x254] sm:$0xf]  ;;  %v5892_v49 = vsel %vm646_vm0, %v1114_v15, %v1115_v58 }
 0x142   : > { %v3763_v9 = vor.u32 %v4232_v6, %v3760_v1  ;;  %v3827_v55 = vor.u32 %v4248_v3, %v3824_v25  ;;  %v4230_v1 = vld [vmem:[%s6707_s1 + $0x1c4] sm:$0xf]  ;;  %v3752_v3 = vld [vmem:[%s6707_s1 + $0x1c8] sm:$0xf0]  ;;  %v1118_v25 = vrot.slane %v5472_v57, 1 }
 0x143   : > { %v2220_v39 = vpop.f32.mrf.mxu0  ;;  %2462 = vmatmul.bf16.vlgmr.msra.gmra.mxu1 %v4511_v2 }
 0x144   : > { %v2221_v19 = vadd.f32 %v2220_v39, %v5464_v33  ;;  %v2365_v32 = vpop.f32.mrf.mxu3  ;;  %v2316_v20 = vpop.f32.mrf.mxu2  ;;  %2603 = vmatpush.bf16.msrb.mxu0 %v3763_v9  ;;  %2652 = vmatpush.bf16.msrb.mxu1 %v3827_v55 }
 0x145   : > { %v2317_v33 = vadd.f32 %v2316_v20, %v2268_v37  ;;  %v4420_v37 = vld [vmem:[%s5018_s25 + $0x30] sm:$0xf0]  ;;  %v3755_v20 = vor.u32 %v4230_v1, %v3752_v3 }
 0x146   : > { %v4422_v2 = vor.u32 %v4421_v38, %v4420_v37 }
 0x147   : > { %v5889_v7 = vadd.f32 %v2365_v32, %v2317_v33 }
 0x148   : > { %v2269_v5 = vpop.f32.mrf.mxu1  ;;  %v1117_v9 = vrot.slane %v4422_v2, 1  ;;  %2604 = vmatpush.bf16.msrb.mxu0 %v3755_v20  ;;  %v5932_v2 = vld [vmem:[%s5018_s25 + $0x18] sm:$0xff]  }
 0x149   : > { %v2270_v62 = vadd.f32 %v2269_v5, %v2221_v19 }
 0x14b   : > { %v2223_v35 = vpop.f32.mrf.mxu0 }
 0x14c   : > { %v2224_v18 = vadd.f32 %v2223_v35, %v5497_v47  ;;  %v2367_v60 = vpop.f32.mrf.mxu3  ;;  %v2318_v34 = vpop.f32.mrf.mxu2 }
 0x14d   : > { %v2319_v44 = vadd.f32 %v2318_v34, %v2270_v62  ;;  %v5920_v62 = vsel %vm646_vm0, %v1117_v9, %v1118_v25 }
 0x14e   : > { %2418 = vmatmul.bf16.gmra.mxu0 %v5892_v49 }
 0x14f   : > { %v5898_v39 = vadd.f32 %v2367_v60, %v2319_v44  ;;  %v4545_v60 = vld [vmem:[%s5018_s25 + $0x3c] sm:$0xe] }
 0x150   : > { %v2272_v8 = vpop.f32.mrf.mxu1 }
 0x151   : > { %2565 = vmatmul.bf16.gmra.mxu3 %v5071_v22  ;;  %v2273_v32 = vadd.f32 %v2272_v8, %v2224_v18  ;;  %2516 = vmatmul.bf16.gmra.mxu2 %v5075_v23  ;;  %v4246_v22 = vld [vmem:[%s6707_s1 + $0x244] sm:$0xf] }
 0x153   : > { %v2225_v19 = vpop.f32.mrf.mxu0  ;;  %2467 = vmatmul.bf16.gmra.mxu1 %v5037_v51 }
 0x154   : > { %v2226_v6 = vadd.f32 %v2225_v19, %v5510_v14  ;;  %v2370_v47 = vpop.f32.mrf.mxu3  ;;  %v2321_v23 = vpop.f32.mrf.mxu2  ;;  %v3816_v14 = vld [vmem:[%s6707_s1 + $0x248] sm:$0xf0] }
 0x155   : > { %v2322_v51 = vadd.f32 %v2321_v23, %v2273_v32  ;;  %v3819_v33 = vor.u32 %v4246_v22, %v3816_v14  ;;  %v4546_v32 = vor.u32 %v4545_v60, %v5494_v29  ;;  %v1121_v22 = vrot.slane %v5516_v45, 1  ;;  %v4424_v45 = vld [vmem:[%s5018_s25 + $0x48] sm:$0xe] }
 0x157   : > { %v5917_v15 = vadd.f32 %v2370_v47, %v2322_v51  ;;  %2653 = vmatpush.bf16.msrb.mxu1 %v3819_v33  ;;  %v1120_v3 = vrot.slane %v4546_v32, 1 }
 0x158   : > { %v2274_v58 = vpop.f32.mrf.mxu1 }
 0x159   : > { %v2275_v55 = vadd.f32 %v2274_v58, %v2226_v6  ;;  %v4228_v6 = vld [vmem:[%s6707_s1 + $0x1b4] sm:$0xf]  ;;  %v5951_v25 = vsel %vm646_vm0, %v1120_v3, %v1121_v22 }
 0x15b   : > { %v2228_v5 = vpop.f32.mrf.mxu0 }
 0x15c   : > { %v2229_v35 = vadd.f32 %v2228_v5, %v5539_v16  ;;  %v2372_v18 = vpop.f32.mrf.mxu3  ;;  %v2323_v34 = vpop.f32.mrf.mxu2 }
 0x15d   : > { %v2324_v57 = vadd.f32 %v2323_v34, %v2275_v55 }
 0x15e   : > { %2423 = vmatmul.bf16.gmra.mxu0 %v5920_v62 }
 0x15f   : > { %v5925_v44 = vadd.f32 %v2372_v18, %v2324_v57 }
 0x160   : > { %v2277_v37 = vpop.f32.mrf.mxu1 }
 0x161   : > { %2570 = vmatmul.bf16.gmra.mxu3 %v5110_v48  ;;  %v2278_v38 = vadd.f32 %v2277_v37, %v2229_v35  ;;  %2521 = vmatmul.bf16.gmra.mxu2 %v5116_v53  ;;  %v3744_v48 = vld [vmem:[%s6707_s1 + $0x1b8] sm:$0xf0]  ;;  %v4244_v53 = vld [vmem:[%s6707_s1 + $0x234] sm:$0xf]  ;;  %v4423_v35 = vld [vmem:[%s5018_s25 + $0x48] sm:$0xf0] }
 0x162   : > { %v3747_v47 = vor.u32 %v4228_v6, %v3744_v48  ;;  %v4425_v37 = vor.u32 %v4424_v45, %v4423_v35  ;;  %v1124_v6 = vrot.slane %v5559_v13, 1 }
 0x163   : > { %v2230_v8 = vpop.f32.mrf.mxu0  ;;  %2472 = vmatmul.bf16.gmra.mxu1 %v5932_v2 }
 0x164   : > { %v2231_v19 = vadd.f32 %v2230_v8, %v5552_v63  ;;  %v2375_v16 = vpop.f32.mrf.mxu3  ;;  %v2326_v29 = vpop.f32.mrf.mxu2  ;;  %v3808_v63 = vld [vmem:[%s6707_s1 + $0x238] sm:$0xf0]  ;;  %2605 = vmatpush.bf16.msrb.mxu0 %v3747_v47  ;;  %v4226_v8 = vld [vmem:[%s6707_s1 + $0x1a4] sm:$0xf] }
 0x165   : > { %v2327_v1 = vadd.f32 %v2326_v29, %v2278_v38  ;;  %v3811_v23 = vor.u32 %v4244_v53, %v3808_v63  ;;  %v4548_v29 = vld [vmem:[%s5018_s25 + $0x54] sm:$0xe] }
 0x167   : > { %v5948_v20 = vadd.f32 %v2375_v16, %v2327_v1  ;;  %2654 = vmatpush.bf16.msrb.mxu1 %v3811_v23 }
 0x168   : > { %v2279_v14 = vpop.f32.mrf.mxu1 }
 0x169   : > { %v2280_v51 = vadd.f32 %v2279_v14, %v2231_v19 }
 0x16b   : > { %v2233_v9 = vpop.f32.mrf.mxu0 }
 0x16c   : > { %v2234_v33 = vadd.f32 %v2233_v9, %v5585_v42  ;;  %v2377_v58 = vpop.f32.mrf.mxu3  ;;  %v2328_v55 = vpop.f32.mrf.mxu2 }
 0x16d   : > { %v2329_v5 = vadd.f32 %v2328_v55, %v2280_v51  ;;  %v4549_v51 = vor.u32 %v4548_v29, %v5576_v27 }
 0x16e   : > { %2428 = vmatmul.bf16.gmra.mxu0 %v5951_v25 }
 0x16f   : > { %v5957_v18 = vadd.f32 %v2377_v58, %v2329_v5  ;;  %v3904_v5 = vld [vmem:[%s6707_s1 + $0x2f8] sm:$0xf0]  ;;  %v1126_v45 = vrot.slane %v4549_v51, 1 }
 0x170   : > { %v2282_v60 = vpop.f32.mrf.mxu1 }
 0x171   : > { %2575 = vmatmul.bf16.gmra.mxu3 %v5140_v11  ;;  %v2283_v34 = vadd.f32 %v2282_v60, %v2234_v33  ;;  %2526 = vmatmul.bf16.gmra.mxu2 %v5144_v12  ;;  %v3736_v11 = vld [vmem:[%s6707_s1 + $0x1a8] sm:$0xf0]  ;;  %v4242_v12 = vld [vmem:[%s6707_s1 + $0x224] sm:$0xf] }
 0x172   : > { %v3739_v19 = vor.u32 %v4226_v8, %v3736_v11  ;;  %v3968_v8 = vld [vmem:[%s6707_s1 + $0x378] sm:$0xf0] }
 0x173   : > { %v2235_v57 = vpop.f32.mrf.mxu0  ;;  %2477 = vmatmul.bf16.gmra.mxu1 %v5102_v41  ;;  %v1123_v41 = vrot.slane %v4425_v37, 1 }
 0x174   : > { %v2236_v42 = vadd.f32 %v2235_v57, %v5601_v26  ;;  %v2380_v38 = vpop.f32.mrf.mxu3  ;;  %v2331_v32 = vpop.f32.mrf.mxu2  ;;  %v3800_v26 = vld [vmem:[%s6707_s1 + $0x228] sm:$0xf0]  ;;  %2606 = vmatpush.bf16.msrb.mxu0 %v3739_v19  ;;  %v4240_v57 = vld [vmem:[%s6707_s1 + $0x214] sm:$0xf] }
 0x175   : > { %v2332_v16 = vadd.f32 %v2331_v32, %v2283_v34  ;;  %v3803_v48 = vor.u32 %v4242_v12, %v3800_v26  ;;  %v5980_v3 = vsel %vm646_vm0, %v1123_v41, %v1124_v6  ;;  %v5997_v34 = vld [vmem:[%s5018_s25 + $0x30] sm:$0xff]   ;;  %v1127_v12 = vrot.slane %v5604_v59, 1  ;;  %v4266_v26 = vld [vmem:[%s6707_s1 + $0x2e4] sm:$0xf] }
 0x176   : > { %v4282_v59 = vld [vmem:[%s6707_s1 + $0x364] sm:$0xf] }
 0x177   : > { %v5976_v53 = vadd.f32 %v2380_v38, %v2332_v16  ;;  %2655 = vmatpush.bf16.msrb.mxu1 %v3803_v48  ;;  %v4284_v38 = vld [vmem:[%s6707_s1 + $0x374] sm:$0xf]  ;;  %v3896_v16 = vld [vmem:[%s6707_s1 + $0x2e8] sm:$0xf0] }
 0x178   : > { %v2284_v47 = vpop.f32.mrf.mxu1  ;;  %v3971_v19 = vor.u32 %v4284_v38, %v3968_v8  ;;  %v3899_v41 = vor.u32 %v4266_v26, %v3896_v16  ;;  %v3960_v48 = vld [vmem:[%s6707_s1 + $0x368] sm:$0xf0] }
 0x179   : > { %v2285_v63 = vadd.f32 %v2284_v47, %v2236_v42  ;;  %v3792_v42 = vld [vmem:[%s6707_s1 + $0x218] sm:$0xf0]  ;;  %v3963_v47 = vor.u32 %v4282_v59, %v3960_v48  ;;  %v3720_v59 = vld [vmem:[%s6707_s1 + $0x188] sm:$0xf0]  ;;  %v4238_v48 = vld [vmem:[%s6707_s1 + $0x204] sm:$0xf] }
 0x17a   : > { %v3795_v32 = vor.u32 %v4240_v57, %v3792_v42  ;;  %2748 = vmatpush.bf16.msrb.mxu3 %v3971_v19 }
 0x17b   : > { %v2238_v1 = vpop.f32.mrf.mxu0 }
 0x17c   : > { %v2239_v22 = vadd.f32 %v2238_v1, %v5648_v28  ;;  %v2382_v23 = vpop.f32.mrf.mxu3  ;;  %v2333_v14 = vpop.f32.mrf.mxu2  ;;  %v4268_v28 = vld [vmem:[%s6707_s1 + $0x2f4] sm:$0xf]  ;;  %2656 = vmatpush.bf16.msrb.mxu1 %v3795_v32 }
 0x17d   : > { %v2334_v13 = vadd.f32 %v2333_v14, %v2285_v63  ;;  %v3907_v60 = vor.u32 %v4268_v28, %v3904_v5  ;;  %v3888_v14 = vld [vmem:[%s6707_s1 + $0x2d8] sm:$0xf0]  ;;  %v4280_v28 = vld [vmem:[%s6707_s1 + $0x354] sm:$0xf] }
 0x17e   : > { %2433 = vmatmul.bf16.gmra.mxu0 %v5980_v3  ;;  %2749 = vmatpush.bf16.msrb.mxu3 %v3963_v47  ;;  %v3952_v5 = vld [vmem:[%s6707_s1 + $0x358] sm:$0xf0]  ;;  %v3784_v47 = vld [vmem:[%s6707_s1 + $0x208] sm:$0xf0] }
 0x17f   : > { %v5985_v9 = vadd.f32 %v2382_v23, %v2334_v13  ;;  %2699 = vmatpush.bf16.msrb.mxu2 %v3907_v60  ;;  %v4264_v23 = vld [vmem:[%s6707_s1 + $0x2d4] sm:$0xf]  ;;  %v3880_v60 = vld [vmem:[%s6707_s1 + $0x2c8] sm:$0xf0] }
 0x180   : > { %v2287_v33 = vpop.f32.mrf.mxu1 }
 0x181   : > { %2580 = vmatmul.bf16.gmra.mxu3 %v5179_v43  ;;  %v2288_v58 = vadd.f32 %v2287_v33, %v2239_v22  ;;  %2531 = vmatmul.bf16.gmra.mxu2 %v5185_v46  ;;  %v4224_v43 = vld [vmem:[%s6707_s1 + $0x194] sm:$0xf]  ;;  %v3728_v46 = vld [vmem:[%s6707_s1 + $0x198] sm:$0xf0]  ;;  %v6034_v22 = vsel %vm646_vm0, %v1126_v45, %v1127_v12  ;;  %v4426_v33 = vld [vmem:[%s5018_s25 + $0x60] sm:$0xf0] }
 0x182   : > { %v3731_v37 = vor.u32 %v4224_v43, %v3728_v46  ;;  %v3872_v12 = vld [vmem:[%s6707_s1 + $0x2b8] sm:$0xf0] }
 0x183   : > { %v2240_v55 = vpop.f32.mrf.mxu0  ;;  %2482 = vmatmul.bf16.gmra.mxu1 %v5997_v34  ;;  %2700 = vmatpush.bf16.msrb.mxu2 %v3899_v41  ;;  %v6799_v41 = vld [vmem:[#allocation16_spill] sm:$0xff] }
 0x184   : > { %v2241_v35 = vadd.f32 %v2240_v55, %v5689_v24  ;;  %v2385_v27 = vpop.f32.mrf.mxu3  ;;  %v2336_v24 = vpop.f32.mrf.mxu2  ;;  %2607 = vmatpush.bf16.msrb.mxu0 %v3731_v37  ;;  %v4427_v55 = vld [vmem:[%s5018_s25 + $0x60] sm:$0xe]  ;;  %v3944_v37 = vld [vmem:[%s6707_s1 + $0x348] sm:$0xf0] }
 0x185   : > { %v2337_v11 = vadd.f32 %v2336_v24, %v2288_v58  ;;  %v3891_v58 = vor.u32 %v4264_v23, %v3888_v14  ;;  %v4428_v43 = vor.u32 %v4427_v55, %v4426_v33  ;;  %v4278_v24 = vld [vmem:[%s6707_s1 + $0x344] sm:$0xf]  ;;  %v1130_v14 = vrot.slane %v5692_v21, 1 }
 0x186   : > { %v3947_v38 = vor.u32 %v4278_v24, %v3944_v37  ;;  %v4258_v33 = vld [vmem:[%s6707_s1 + $0x2a4] sm:$0xf] }
 0x187   : > { %v6025_v6 = vadd.f32 %v2385_v27, %v2337_v11  ;;  %2701 = vmatpush.bf16.msrb.mxu2 %v3891_v58  ;;  %v3955_v27 = vor.u32 %v4280_v28, %v3952_v5  ;;  %v1129_v26 = vrot.slane %v4428_v43, 1  ;;  %v3864_v58 = vld [vmem:[%s6707_s1 + $0x2a8] sm:$0xf0]  ;;  %v4274_v21 = vld [vmem:[%s6707_s1 + $0x324] sm:$0xf] }
 0x188   : > { %v2289_v29 = vpop.f32.mrf.mxu1  ;;  %v3867_v55 = vor.u32 %v4258_v33, %v3864_v58  ;;  %v3928_v5 = vld [vmem:[%s6707_s1 + $0x328] sm:$0xf0]  ;;  %v4256_v43 = vld [vmem:[%s6707_s1 + $0x294] sm:$0xf]  ;;  %v4032_v58 = vld [vmem:[%s6707_s1 + $0x3f8] sm:$0xf0] }
 0x189   : > { %v2290_v63 = vadd.f32 %v2289_v29, %v2241_v35  ;;  %2750 = vmatpush.bf16.msrb.mxu3 %v3955_v27  ;;  %v3931_v27 = vor.u32 %v4274_v21, %v3928_v5  ;;  %v4300_v33 = vld [vmem:[%s6707_s1 + $0x3f4] sm:$0xf]  ;;  %v4096_v5 = vld [vmem:[%s6707_s1 + $0x478] sm:$0xf0] }
 0x18b   : > { %v2243_v1 = vpop.f32.mrf.mxu0 }
 0x18c   : > { %v2244_v13 = vadd.f32 %v2243_v1, %v5748_v56  ;;  %v2387_v51 = vpop.f32.mrf.mxu3  ;;  %v2338_v35 = vpop.f32.mrf.mxu2  ;;  %v4262_v56 = vld [vmem:[%s6707_s1 + $0x2c4] sm:$0xf]  ;;  %v3936_v1 = vld [vmem:[%s6707_s1 + $0x338] sm:$0xf0] }
 0x18d   : > { %v2339_v45 = vadd.f32 %v2338_v35, %v2290_v63  ;;  %v3883_v46 = vor.u32 %v4262_v56, %v3880_v60  ;;  %2751 = vmatpush.bf16.msrb.mxu3 %v3947_v38  ;;  %v4276_v63 = vld [vmem:[%s6707_s1 + $0x334] sm:$0xf]  ;;  %v6110_v60 = vsel %vm646_vm0, %v1129_v26, %v1130_v14 }
 0x18e   : > { %2438 = vmatmul.bf16.gmra.mxu0 %v6034_v22 }
 0x18f   : > { %v6058_v57 = vadd.f32 %v2387_v51, %v2339_v45  ;;  %2702 = vmatpush.bf16.msrb.mxu2 %v3883_v46  ;;  %v3939_v51 = vor.u32 %v4276_v63, %v3936_v1  ;;  %v3856_v46 = vld [vmem:[%s6707_s1 + $0x298] sm:$0xf0] }
 0x190   : > { %v2292_v42 = vpop.f32.mrf.mxu1  ;;  %v3859_v38 = vor.u32 %v4256_v43, %v3856_v46  ;;  %v6802_v1 = vld [vmem:[#allocation44_spill] sm:$0xff] }
 0x191   : > { %2585 = vmatmul.bf16.gmra.mxu3 %v5257_v52  ;;  %v2293_v8 = vadd.f32 %v2292_v42, %v2244_v13  ;;  %2536 = vmatmul.bf16.gmra.mxu2 %v5261_v54  ;;  %v4260_v52 = vld [vmem:[%s6707_s1 + $0x2b4] sm:$0xf]  ;;  %v4222_v54 = vld [vmem:[%s6707_s1 + $0x184] sm:$0xf]  ;;  %v3787_v13 = vor.u32 %v4238_v48, %v3784_v47  ;;  %v4551_v42 = vld [vmem:[%s5018_s25 + $0x6c] sm:$0xe] }
 0x192   : > { %v3875_v16 = vor.u32 %v4260_v52, %v3872_v12  ;;  %2752 = vmatpush.bf16.msrb.mxu3 %v3939_v51  ;;  %v6801_v47 = vld [vmem:[#allocation20_spill] sm:$0xff]  ;;  %v6146_v51 = vld [vmem:[%s5018_s25 + $0x48] sm:$0xff]  }
 0x193   : > { %v2245_v11 = vpop.f32.mrf.mxu0  ;;  %2487 = vmatmul.bf16.gmra.mxu1 %v6799_v41  ;;  %v6800_v41 = vld [vmem:[#allocation19_spill] sm:$0xff] }
 0x194   : > { %v2246_v32 = vadd.f32 %v2245_v11, %v5790_v40  ;;  %v2390_v19 = vpop.f32.mrf.mxu3  ;;  %v2341_v29 = vpop.f32.mrf.mxu2  ;;  %v3723_v40 = vor.u32 %v4222_v54, %v3720_v59  ;;  %2703 = vmatpush.bf16.msrb.mxu2 %v3875_v16  ;;  %2657 = vmatpush.bf16.msrb.mxu1 %v3787_v13  ;;  %v3920_v11 = vld [vmem:[%s6707_s1 + $0x318] sm:$0xf0]  ;;  %v4270_v54 = vld [vmem:[%s6707_s1 + $0x304] sm:$0xf]  ;;  %v3912_v59 = vld [vmem:[%s6707_s1 + $0x308] sm:$0xf0] }
 0x195   : > { %v2342_v23 = vadd.f32 %v2341_v29, %v2293_v8  ;;  %v4272_v8 = vld [vmem:[%s6707_s1 + $0x314] sm:$0xf]  ;;  %v3915_v29 = vor.u32 %v4270_v54, %v3912_v59 }
 0x196   : > { %2608 = vmatpush.bf16.msrb.mxu0 %v3723_v40  ;;  %2753 = vmatpush.bf16.msrb.mxu3 %v3931_v27  ;;  %v3923_v12 = vor.u32 %v4272_v8, %v3920_v11 }
 0x197   : > { %v6101_v28 = vadd.f32 %v2390_v19, %v2342_v23  ;;  %v3848_v19 = vld [vmem:[%s6707_s1 + $0x288] sm:$0xf0]  ;;  %v4552_v23 = vor.u32 %v4551_v42, %v6802_v1 }
 0x198   : > { %v2294_v35 = vpop.f32.mrf.mxu1  ;;  %2704 = vmatpush.bf16.msrb.mxu2 %v3867_v55  ;;  %v4316_v55 = vld [vmem:[%s6707_s1 + $0x474] sm:$0xf] }
 0x199   : > { %v2295_v45 = vadd.f32 %v2294_v35, %v2246_v32  ;;  %v1132_v27 = vrot.slane %v4552_v23, 1  ;;  %v4099_v43 = vor.u32 %v4316_v55, %v4096_v5 }
 0x19a   : > { %2754 = vmatpush.bf16.msrb.mxu3 %v3923_v12 }
 0x19b   : > { %v2248_v56 = vpop.f32.mrf.mxu0  ;;  %2846 = vmatpush.bf16.msra.mxu1 %v4099_v43 }
 0x19c   : > { %v2249_v24 = vadd.f32 %v2248_v56, %v5825_v31  ;;  %v2392_v37 = vpop.f32.mrf.mxu3  ;;  %v2343_v52 = vpop.f32.mrf.mxu2  ;;  %2705 = vmatpush.bf16.msrb.mxu2 %v3859_v38  ;;  %v4254_v31 = vld [vmem:[%s6707_s1 + $0x284] sm:$0xf] }
 0x19d   : > { %v2344_v32 = vadd.f32 %v2343_v52, %v2295_v45  ;;  %v3851_v26 = vor.u32 %v4254_v31, %v3848_v19  ;;  %v6803_v45 = vld [vmem:[#allocation48_spill] sm:$0xff]  ;;  %v6804_v31 = vld [vmem:[#allocation21_spill] sm:$0xff] }
 0x19e   : > { %2443 = vmatmul.bf16.gmra.mxu0 %v6110_v60  ;;  %2755 = vmatpush.bf16.msrb.mxu3 %v3915_v29  ;;  %v1133_v56 = vrot.slane %v6803_v45, 1  ;;  %v6806_v29 = vld [vmem:[#allocation18_spill] sm:$0xff] }
 0x19f   : > { %v6133_v16 = vadd.f32 %v2392_v37, %v2344_v32 }
 0x1a0   : > { %v2297_v48 = vpop.f32.mrf.mxu1  ;;  %2706 = vmatpush.bf16.msrb.mxu2 %v3851_v26  ;;  %v6165_v38 = vsel %vm646_vm0, %v1132_v27, %v1133_v56  ;;  %v4515_v56 = vld [vmem:[%s6708_s2] sm:$0x3] }
 0x1a1   : > { %2590 = vmatmul.bf16.gmra.mxu3 %v6800_v41  ;;  %v2298_v40 = vadd.f32 %v2297_v48, %v2249_v24  ;;  %2541 = vmatmul.bf16.gmra.mxu2 %v6801_v47  ;;  %v6805_v41 = vld [vmem:[#allocation22_spill] sm:$0xff]  ;;  %v4314_v47 = vld [vmem:[%s6707_s1 + $0x464] sm:$0xf]  ;;  %v6198_v43 = vperm.slane %v4515_v56, 1 }
 0x1a2   : > { %v4310_v56 = vld [vmem:[%s6707_s1 + $0x444] sm:$0xf] }
 0x1a3   : > { %v2250_v63 = vpop.f32.mrf.mxu0  ;;  %2492 = vmatmul.bf16.gmra.mxu1 %v6146_v51 }
 0x1a4   : > { %v2251_v14 = vadd.f32 %v2250_v63, %v5839_v0  ;;  %v2395_v13 = vpop.f32.mrf.mxu3  ;;  %v2346_v21 = vpop.f32.mrf.mxu2  ;;  %v4035_v0 = vor.u32 %v4300_v33, %v4032_v58 }
 0x1a5   : > { %v2347_v35 = vadd.f32 %v2346_v21, %v2298_v40  ;;  %v4024_v40 = vld [vmem:[%s6707_s1 + $0x3e8] sm:$0xf0] }
 0x1a6   : > { %2797 = vmatpush.bf16.msra.mxu0 %v4035_v0 }
 0x1a7   : > { %v6162_v46 = vadd.f32 %v2395_v13, %v2347_v35  ;;  %v6807_v35 = vld [vmem:[#allocation13_spill] sm:$0xff] }
 0x1a8   : > { %v2299_v24 = vpop.f32.mrf.mxu1 }
 0x1a9   : > { %v2300_v37 = vadd.f32 %v2299_v24, %v2251_v14 }
 0x1ab   : > { %v2253_v42 = vpop.f32.mrf.mxu0 }
 0x1ac   : > { %v2254_v8 = vadd.f32 %v2253_v42, %v5861_v50  ;;  %v2397_v11 = vpop.f32.mrf.mxu3  ;;  %v2348_v52 = vpop.f32.mrf.mxu2  ;;  %v4298_v50 = vld [vmem:[%s6707_s1 + $0x3e4] sm:$0xf] }
 0x1ad   : > { %v2349_v12 = vadd.f32 %v2348_v52, %v2300_v37  ;;  %v4027_v1 = vor.u32 %v4298_v50, %v4024_v40  ;;  %v6808_v37 = vld [vmem:[#allocation26_spill] sm:$0xff]  ;;  %v6809_v52 = vld [vmem:[#allocation24_spill] sm:$0xff] }
 0x1ae   : > { %2448 = vmatmul.bf16.gmra.mxu0 %v6165_v38 }
 0x1af   : > { %v6169_v32 = vadd.f32 %v2397_v11, %v2349_v12  ;;  %2798 = vmatpush.bf16.msra.mxu0 %v4027_v1  ;;  %v4296_v12 = vld [vmem:[%s6707_s1 + $0x3d4] sm:$0xf] }
 0x1b0   : > { %v2302_v19 = vpop.f32.mrf.mxu1 }
 0x1b1   : > { %2595 = vmatmul.bf16.gmra.mxu3 %v6804_v31  ;;  %v2303_v26 = vadd.f32 %v2302_v19, %v2254_v8  ;;  %2546 = vmatmul.bf16.gmra.mxu2 %v6805_v41  ;;  %v4016_v31 = vld [vmem:[%s6707_s1 + $0x3d8] sm:$0xf0]  ;;  %v4312_v19 = vld [vmem:[%s6707_s1 + $0x454] sm:$0xf] }
 0x1b2   : > { %v4080_v41 = vld [vmem:[%s6707_s1 + $0x458] sm:$0xf0] }
 0x1b3   : > { %v2255_v54 = vpop.f32.mrf.mxu0  ;;  %2497 = vmatmul.bf16.gmra.mxu1 %v6806_v29 }
 0x1b4   : > { %v2256_v59 = vadd.f32 %v2255_v54, %v5869_v30  ;;  %v2400_v48 = vpop.f32.mrf.mxu3  ;;  %v2351_v63 = vpop.f32.mrf.mxu2  ;;  %v4088_v30 = vld [vmem:[%s6707_s1 + $0x468] sm:$0xf0] }
 0x1b5   : > { %v2352_v23 = vadd.f32 %v2351_v63, %v2303_v26  ;;  %v4091_v14 = vor.u32 %v4314_v47, %v4088_v30 }
 0x1b7   : > { %v6187_v13 = vadd.f32 %v2400_v48, %v2352_v23  ;;  %2847 = vmatpush.bf16.msra.mxu1 %v4091_v14  ;;  %v6810_v14 = vld [vmem:[#allocation23_spill] sm:$0xff] }
 0x1b8   : > { %v2304_v33 = vpop.f32.mrf.mxu1 }
 0x1b9   : > { %v2305_v58 = vadd.f32 %v2304_v33, %v2256_v59  ;;  %v4083_v59 = vor.u32 %v4312_v19, %v4080_v41  ;;  %v6813_v41 = vld [vmem:[#allocation14_spill] sm:$0xff] }
 0x1bb   : > { %v2414_v55 = vpop.f32.mrf.mxu0  ;;  %2848 = vmatpush.bf16.msra.mxu1 %v4083_v59 }
 0x1bc   : > { %v2402_v21 = vpop.f32.mrf.mxu3  ;;  %v6190_v0 = vadd.f32 %v2414_v55, %v5889_v7  ;;  %v2353_v5 = vpop.f32.mrf.mxu2 }
 0x1bd   : > { %v2354_v27 = vadd.f32 %v2353_v5, %v2305_v58  ;;  %v6811_v58 = vld [vmem:[#allocation29_spill] sm:$0xff] }
 0x1be   : > { %2609 = vmatmul.bf16.vlgmr.msrb.gmra.mxu0 %v6807_v35  ;;  %v6812_v35 = vld [vmem:[#allocation27_spill] sm:$0xff] }
 0x1bf   : > { %v6193_v45 = vadd.f32 %v2402_v21, %v2354_v27  ;;  %v4008_v27 = vld [vmem:[%s6707_s1 + $0x3c8] sm:$0xf0] }
 0x1c0   : > { %v2463_v24 = vpop.f32.mrf.mxu1 }
 0x1c1   : > { %2756 = vmatmul.bf16.vlgmr.msrb.gmra.mxu3 %v5932_v2  ;;  %2707 = vmatmul.bf16.vlgmr.msrb.gmra.mxu2 %v6808_v37  ;;  %v2464_v11 = vadd.f32 %v2463_v24, %v6198_v43  ;;  %v4072_v37 = vld [vmem:[%s6707_s1 + $0x448] sm:$0xf0] }
 0x1c3   : > { %v2416_v42 = vpop.f32.mrf.mxu0  ;;  %2658 = vmatmul.bf16.vlgmr.msrb.gmra.mxu1 %v6809_v52 }
 0x1c4   : > { %v6203_v7 = vadd.f32 %v2416_v42, %v5898_v39  ;;  %v2561_v8 = vpop.f32.mrf.mxu3  ;;  %v2512_v26 = vpop.f32.mrf.mxu2  ;;  %v4019_v39 = vor.u32 %v4296_v12, %v4016_v31 }
 0x1c5   : > { %v2513_v54 = vadd.f32 %v2512_v26, %v2464_v11 }
 0x1c6   : > { %2799 = vmatpush.bf16.msra.mxu0 %v4019_v39 }
 0x1c7   : > { %v6219_v48 = vadd.f32 %v2561_v8, %v2513_v54  ;;  %v4075_v8 = vor.u32 %v4310_v56, %v4072_v37 }
 0x1c8   : > { %v2465_v29 = vpop.f32.mrf.mxu1 }
 0x1c9   : > { %v2466_v63 = vadd.f32 %v2465_v29, %v6198_v43  ;;  %2849 = vmatpush.bf16.msra.mxu1 %v4075_v8 }
 0x1cb   : > { %v2419_v50 = vpop.f32.mrf.mxu0 }
 0x1cc   : > { %v6222_v40 = vadd.f32 %v2419_v50, %v5917_v15  ;;  %v2563_v47 = vpop.f32.mrf.mxu3  ;;  %v2514_v1 = vpop.f32.mrf.mxu2  ;;  %v6814_v50 = vld [vmem:[#allocation33_spill] sm:$0xff] }
 0x1cd   : > { %v2515_v30 = vadd.f32 %v2514_v1, %v2466_v63 }
 0x1ce   : > { %2614 = vmatmul.bf16.gmra.mxu0 %v5932_v2  ;;  %v4294_v2 = vld [vmem:[%s6707_s1 + $0x3c4] sm:$0xf] }
 0x1cf   : > { %v6226_v23 = vadd.f32 %v2563_v47, %v2515_v30  ;;  %v6815_v30 = vld [vmem:[#allocation31_spill] sm:$0xff] }
 0x1d0   : > { %v2468_v33 = vpop.f32.mrf.mxu1 }
 0x1d1   : > { %2761 = vmatmul.bf16.gmra.mxu3 %v6810_v14  ;;  %2712 = vmatmul.bf16.gmra.mxu2 %v6811_v58  ;;  %v2469_v5 = vadd.f32 %v2468_v33, %v6198_v43  ;;  %v4292_v14 = vld [vmem:[%s6707_s1 + $0x3b4] sm:$0xf]  ;;  %v4000_v33 = vld [vmem:[%s6707_s1 + $0x3b8] sm:$0xf0] }
 0x1d2   : > { %v4308_v58 = vld [vmem:[%s6707_s1 + $0x434] sm:$0xf] }
 0x1d3   : > { %v2421_v55 = vpop.f32.mrf.mxu0  ;;  %2663 = vmatmul.bf16.gmra.mxu1 %v6812_v35 }
 0x1d4   : > { %v6231_v21 = vadd.f32 %v2421_v55, %v5925_v44  ;;  %v2566_v15 = vpop.f32.mrf.mxu3  ;;  %v2517_v24 = vpop.f32.mrf.mxu2  ;;  %v4011_v44 = vor.u32 %v4294_v2, %v4008_v27 }
 0x1d5   : > { %v2518_v42 = vadd.f32 %v2517_v24, %v2469_v5 }
 0x1d6   : > { %2800 = vmatpush.bf16.msra.mxu0 %v4011_v44 }
 0x1d7   : > { %v6247_v11 = vadd.f32 %v2566_v15, %v2518_v42  ;;  %v4064_v15 = vld [vmem:[%s6707_s1 + $0x438] sm:$0xf0] }
 0x1d8   : > { %v2470_v52 = vpop.f32.mrf.mxu1  ;;  %v4067_v35 = vor.u32 %v4308_v58, %v4064_v15 }
 0x1d9   : > { %v2471_v26 = vadd.f32 %v2470_v52, %v6198_v43 }
 0x1da   : > { %2850 = vmatpush.bf16.msra.mxu1 %v4067_v35 }
 0x1db   : > { %v2424_v12 = vpop.f32.mrf.mxu0 }
 0x1dc   : > { %v6250_v31 = vadd.f32 %v2424_v12, %v5948_v20  ;;  %v2568_v19 = vpop.f32.mrf.mxu3  ;;  %v2519_v39 = vpop.f32.mrf.mxu2  ;;  %v6816_v12 = vld [vmem:[#allocation30_spill] sm:$0xff] }
 0x1dd   : > { %v2520_v54 = vadd.f32 %v2519_v39, %v2471_v26  ;;  %v6817_v26 = vld [vmem:[#allocation36_spill] sm:$0xff] }
 0x1de   : > { %2619 = vmatmul.bf16.gmra.mxu0 %v6813_v41 }
 0x1df   : > { %v6254_v59 = vadd.f32 %v2568_v19, %v2520_v54 }
 0x1e0   : > { %v2473_v29 = vpop.f32.mrf.mxu1 }
 0x1e1   : > { %2766 = vmatmul.bf16.gmra.mxu3 %v5997_v34  ;;  %2717 = vmatmul.bf16.gmra.mxu2 %v6814_v50  ;;  %v2474_v1 = vadd.f32 %v2473_v29, %v6198_v43  ;;  %v6818_v29 = vld [vmem:[#allocation34_spill] sm:$0xff] }
 0x1e2   : > { %v3992_v50 = vld [vmem:[%s6707_s1 + $0x3a8] sm:$0xf0] }
 0x1e3   : > { %v2426_v47 = vpop.f32.mrf.mxu0  ;;  %2668 = vmatmul.bf16.gmra.mxu1 %v6815_v30 }
 0x1e4   : > { %v6259_v63 = vadd.f32 %v2426_v47, %v5957_v18  ;;  %v2571_v20 = vpop.f32.mrf.mxu3  ;;  %v2522_v55 = vpop.f32.mrf.mxu2  ;;  %v4003_v18 = vor.u32 %v4292_v14, %v4000_v33  ;;  %v4306_v47 = vld [vmem:[%s6707_s1 + $0x424] sm:$0xf] }
 0x1e5   : > { %v2523_v5 = vadd.f32 %v2522_v55, %v2474_v1  ;;  %v4056_v1 = vld [vmem:[%s6707_s1 + $0x428] sm:$0xf0] }
 0x1e6   : > { %2801 = vmatpush.bf16.msra.mxu0 %v4003_v18  ;;  %v4059_v14 = vor.u32 %v4306_v47, %v4056_v1 }
 0x1e7   : > { %v6275_v2 = vadd.f32 %v2571_v20, %v2523_v5 }
 0x1e8   : > { %v2475_v27 = vpop.f32.mrf.mxu1  ;;  %2851 = vmatpush.bf16.msra.mxu1 %v4059_v14 }
 0x1e9   : > { %v2476_v37 = vadd.f32 %v2475_v27, %v6198_v43  ;;  %v6819_v27 = vld [vmem:[#allocation15_spill] sm:$0xff] }
 0x1eb   : > { %v2429_v56 = vpop.f32.mrf.mxu0 }
 0x1ec   : > { %v6278_v24 = vadd.f32 %v2429_v56, %v5976_v53  ;;  %v2573_v44 = vpop.f32.mrf.mxu3  ;;  %v2524_v42 = vpop.f32.mrf.mxu2 }
 0x1ed   : > { %v2525_v8 = vadd.f32 %v2524_v42, %v2476_v37  ;;  %v6820_v42 = vld [vmem:[#allocation40_spill] sm:$0xff] }
 0x1ee   : > { %2624 = vmatmul.bf16.gmra.mxu0 %v5997_v34  ;;  %v4290_v34 = vld [vmem:[%s6707_s1 + $0x3a4] sm:$0xf] }
 0x1ef   : > { %v6282_v52 = vadd.f32 %v2573_v44, %v2525_v8 }
 0x1f0   : > { %v2478_v19 = vpop.f32.mrf.mxu1 }
 0x1f1   : > { %2771 = vmatmul.bf16.gmra.mxu3 %v6816_v12  ;;  %2722 = vmatmul.bf16.gmra.mxu2 %v6817_v26  ;;  %v2479_v54 = vadd.f32 %v2478_v19, %v6198_v43  ;;  %v6821_v26 = vld [vmem:[#allocation38_spill] sm:$0xff] }
 0x1f3   : > { %v2431_v39 = vpop.f32.mrf.mxu0  ;;  %2673 = vmatmul.bf16.gmra.mxu1 %v6818_v29 }
 0x1f4   : > { %v6287_v41 = vadd.f32 %v2431_v39, %v5985_v9  ;;  %v2576_v53 = vpop.f32.mrf.mxu3  ;;  %v2527_v20 = vpop.f32.mrf.mxu2  ;;  %v3995_v9 = vor.u32 %v4290_v34, %v3992_v50  ;;  %v4288_v39 = vld [vmem:[%s6707_s1 + $0x394] sm:$0xf]  ;;  %v4048_v34 = vld [vmem:[%s6707_s1 + $0x418] sm:$0xf0] }
 0x1f5   : > { %v2528_v30 = vadd.f32 %v2527_v20, %v2479_v54  ;;  %v4304_v54 = vld [vmem:[%s6707_s1 + $0x414] sm:$0xf] }
 0x1f6   : > { %2802 = vmatpush.bf16.msra.mxu0 %v3995_v9  ;;  %v4051_v47 = vor.u32 %v4304_v54, %v4048_v34 }
 0x1f7   : > { %v6303_v33 = vadd.f32 %v2576_v53, %v2528_v30  ;;  %v3984_v53 = vld [vmem:[%s6707_s1 + $0x398] sm:$0xf0] }
 0x1f8   : > { %v2480_v58 = vpop.f32.mrf.mxu1  ;;  %2852 = vmatpush.bf16.msra.mxu1 %v4051_v47  ;;  %v6825_v47 = vld [vmem:[#allocation17_spill] sm:$0xff] }
 0x1f9   : > { %v2481_v5 = vadd.f32 %v2480_v58, %v6198_v43 }
 0x1fb   : > { %v2434_v55 = vpop.f32.mrf.mxu0 }
 0x1fc   : > { %v6306_v18 = vadd.f32 %v2434_v55, %v6025_v6  ;;  %v2578_v15 = vpop.f32.mrf.mxu3  ;;  %v2529_v35 = vpop.f32.mrf.mxu2  ;;  %v6822_v55 = vld [vmem:[#allocation37_spill] sm:$0xff] }
 0x1fd   : > { %v2530_v56 = vadd.f32 %v2529_v35, %v2481_v5  ;;  %v6823_v5 = vld [vmem:[#allocation43_spill] sm:$0xff] }
 0x1fe   : > { %2629 = vmatmul.bf16.gmra.mxu0 %v6819_v27 }
 0x1ff   : > { %v6310_v44 = vadd.f32 %v2578_v15, %v2530_v56 }
 0x200   : > { %v2483_v37 = vpop.f32.mrf.mxu1 }
 0x201   : > { %2776 = vmatmul.bf16.gmra.mxu3 %v6146_v51  ;;  %2727 = vmatmul.bf16.gmra.mxu2 %v6820_v42  ;;  %v2484_v19 = vadd.f32 %v2483_v37, %v6198_v43  ;;  %v4286_v42 = vld [vmem:[%s6707_s1 + $0x384] sm:$0xf] }
 0x203   : > { %v2436_v8 = vpop.f32.mrf.mxu0  ;;  %2678 = vmatmul.bf16.gmra.mxu1 %v6821_v26 }
 0x204   : > { %v6315_v12 = vadd.f32 %v2436_v8, %v6058_v57  ;;  %v2581_v6 = vpop.f32.mrf.mxu3  ;;  %v2532_v29 = vpop.f32.mrf.mxu2  ;;  %v3987_v57 = vor.u32 %v4288_v39, %v3984_v53  ;;  %v4302_v8 = vld [vmem:[%s6707_s1 + $0x404] sm:$0xf] }
 0x205   : > { %v2533_v50 = vadd.f32 %v2532_v29, %v2484_v19  ;;  %v4040_v19 = vld [vmem:[%s6707_s1 + $0x408] sm:$0xf0] }
 0x206   : > { %2803 = vmatpush.bf16.msra.mxu0 %v3987_v57  ;;  %v4043_v39 = vor.u32 %v4302_v8, %v4040_v19 }
 0x207   : > { %v6331_v20 = vadd.f32 %v2581_v6, %v2533_v50 }
 0x208   : > { %v6333_v9 = vpop.f32.mrf.mxu1  ;;  %2853 = vmatpush.bf16.msra.mxu1 %v4043_v39 }
 0x20b   : > { %v2439_v1 = vpop.f32.mrf.mxu0 }
 0x20c   : > { %v6336_v30 = vadd.f32 %v2439_v1, %v6101_v28  ;;  %v6338_v14 = vpop.f32.mrf.mxu3  ;;  %v6340_v58 = vpop.f32.mrf.mxu2  ;;  %v6824_v28 = vld [vmem:[#allocation41_spill] sm:$0xff] }
 0x20d   : > { %v4516_v1 = vld [vmem:[%s5018_s25 + $0x60] sm:$0xff]   ;;  %s3306_s25 = sadd.s32 %s4167_s10, %s4166_s20  ;;  %s3290_s10 = scalar_lea.sflag [#allocation3], %s6558_s22 }
 0x20e   : > { %2634 = vmatmul.bf16.gmra.mxu0 %v6146_v51  ;;  %v3976_v51 = vld [vmem:[%s6707_s1 + $0x388] sm:$0xf0]  ;;  %s4168_s23 = sshll.u32 %s3306_s25, 3 }
 0x20f   : > { %v3979_v6 = vor.u32 %v4286_v42, %v3976_v51  ;;  %s3308_s26 = scalar_lea.hbm %s6713_s7, %s4168_s23  ;;  %s3327_s16 = scalar_lea.hbm %s6714_s8, %s4168_s23 }
 0x210   : > { %v2488_v15 = vpop.f32.mrf.mxu1  ;;  %s3311_s15 = sshll.u32 %s3308_s26, 4  ;;  %s3330_s20 = sshll.u32 %s3327_s16, 4  ;;  %s3312_s15 = int_to_ptr.hbm [resolvable:$true] %s3311_s15  ;;  %s6650_s20 = int_to_ptr.hbm [resolvable:$true] %s3330_s20 }
 0x211   : > { %2781 = vmatmul.bf16.gmra.mxu3 %v6822_v55  ;;  %2732 = vmatmul.bf16.gmra.mxu2 %v6823_v5  ;;  %v2489_v37 = vadd.f32 %v2488_v15, %v6198_v43  ;;  %v6826_v15 = vld [vmem:[#allocation47_spill] sm:$0xff]  ;;  %s4567_s25 = sshra.s32 %s3312_s15, 4  ;;  %s4573_s26 = scalar_lea.hbm %s6713_s7, 512  ;;  %s4568_s25 = int_to_ptr.hbm [resolvable:$true] %s4567_s25 }
 0x212   : > { %2804 = vmatpush.bf16.msra.mxu0 %v3979_v6  ;;  %s4569_s23 = scalar_lea.hbm %s4568_s25, 128  ;;  %p4574_p4 = scmp.lt.s32.totalorder %s4568_s25, %s6713_s7 }
 0x213   : > { %v2441_v35 = vpop.f32.mrf.mxu0  ;;  %2683 = vmatmul.bf16.gmra.mxu1 %v6824_v28  ;;  %p4570_p0 = scmp.ne.s32.totalorder %s4568_s25, %s4569_s23  ;;  %p4575_p5 = scmp.lt.s32.totalorder %s4573_s26, %s4569_s23 }
 0x214   : > { %v6346_v27 = vadd.f32 %v2441_v35, %v6133_v16  ;;  %v2586_v56 = vpop.f32.mrf.mxu3  ;;  %v2537_v16 = vpop.f32.mrf.mxu2 }
 0x215   : > { %v2538_v26 = vadd.f32 %v2537_v16, %v2489_v37  ;;  %p4571_p1 = pnand %p4570_p0, %p4779_p3  ;;  %p4576_p6 = por %p4575_p5, %p4574_p4 }
 0x217   : > { %v6362_v53 = vadd.f32 %v2586_v56, %v2538_v26  ;;  %p4572_p2 = pneg %p4571_p1 }
 0x218   : > { %v6364_v54 = vpop.f32.mrf.mxu1 }
 0x219   : > { %p4577_p7 = pnand %p4576_p6, %p4572_p2 }
 0x21b   : > { %v2444_v29 = vpop.f32.mrf.mxu0 }
 0x21c   : > { %v6367_v57 = vadd.f32 %v2444_v29, %v6162_v46  ;;  %v6369_v34 = vpop.f32.mrf.mxu3  ;;  %v6371_v50 = vpop.f32.mrf.mxu2  ;;  %v6827_v46 = vld [vmem:[#allocation45_spill] sm:$0xff] }
 0x21e   : > { %2639 = vmatmul.bf16.gmra.mxu0 %v6825_v47 }
 0x220   : > { %v2493_v55 = vpop.f32.mrf.mxu1 }
 0x221   : > { %2786 = vmatmul.bf16.gmra.mxu3 %v4516_v1  ;;  %2737 = vmatmul.bf16.gmra.mxu2 %v6826_v15  ;;  %v2494_v37 = vadd.f32 %v2493_v55, %v6198_v43 }
 0x223   : > { %v2446_v5 = vpop.f32.mrf.mxu0  ;;  %2688 = vmatmul.bf16.gmra.mxu1 %v6827_v46 }
 0x224   : > { %v6377_v35 = vadd.f32 %v2446_v5, %v6169_v32  ;;  %v2591_v56 = vpop.f32.mrf.mxu3  ;;  %v2542_v28 = vpop.f32.mrf.mxu2 }
 0x225   : > { %v2543_v42 = vadd.f32 %v2542_v28, %v2494_v37 }
 0x227   : > { %v6381_v51 = vadd.f32 %v2591_v56, %v2543_v42  ;;  %v6828_v56 = vld [vmem:[#allocation25_spill] sm:$0xff] }
 0x228   : > { %v6383_v8 = vpop.f32.mrf.mxu1 }
 0x22b   : > { %v2449_v16 = vpop.f32.mrf.mxu0 }
 0x22c   : > { %v6386_v6 = vadd.f32 %v2449_v16, %v6187_v13  ;;  %v6388_v19 = vpop.f32.mrf.mxu3  ;;  %v6390_v26 = vpop.f32.mrf.mxu2  ;;  %v4325_v13 = vld [vmem:[%s6709_s3 + $0x38] sm:$0xff]  ;;  %v4324_v16 = vld [vmem:[%s6709_s3 + $0x30] sm:$0xff] }
 0x22d   : > { %3059 = vmatpush.bf16.msra.mxu2 %v4325_v13 }
 0x22e   : > { %2644 = vmatmul.bf16.gmra.mxu0 %v4516_v1  ;;  %v4333_v1 = vld [vmem:[%s6711_s5 + $0x38] sm:$0xff] }
 0x22f   : > { %3224 = vmatpush.bf16.msra.mxu3 %v4333_v1  ;;  %v6829_v1 = vld [vmem:[#allocation28_spill] sm:$0xff] }
 0x230   : > { %v2498_v32 = vpop.f32.mrf.mxu1 }
 0x231   : > { %2791 = vmatmul.bf16.gmra.mxu3 %v5733_v10  ;;  %2742 = vmatmul.bf16.gmra.mxu2 %v5843_v17  ;;  %v2499_v47 = vadd.f32 %v2498_v32, %v6198_v43  ;;  %v4332_v32 = vld [vmem:[%s6711_s5 + $0x30] sm:$0xff] }
 0x232   : > { %3060 = vmatpush.bf16.msra.mxu2 %v4324_v16 }
 0x233   : > { %v2451_v39 = vpop.f32.mrf.mxu0  ;;  %2693 = vmatmul.bf16.gmra.mxu1 %v5829_v4  ;;  %3225 = vmatpush.bf16.msra.mxu3 %v4332_v32  ;;  %v4322_v32 = vld [vmem:[%s6709_s3 + $0x20] sm:$0xff] }
 0x234   : > { %v6395_v29 = vadd.f32 %v2451_v39, %v6193_v45  ;;  %v2547_v10 = vpop.f32.mrf.mxu2  ;;  %v2596_v55 = vpop.f32.mrf.mxu3 }
 0x235   : > { %v2548_v15 = vadd.f32 %v2547_v10, %v2499_v47 }
 0x237   : > { %v6405_v17 = vadd.f32 %v2596_v55, %v2548_v15  ;;  %v4323_v15 = vld [vmem:[%s6709_s3 + $0x28] sm:$0xff] }
 0x238   : > { %v6407_v45 = vpop.f32.mrf.mxu1  ;;  %3061 = vmatpush.bf16.msra.mxu2 %v4323_v15  ;;  %v4321_v15 = vld [vmem:[%s6709_s3 + $0x18] sm:$0xff] }
 0x23b   : > { %v2610_v5 = vpop.f32.mrf.mxu0 }
 0x23c   : > { %v2611_v4 = vadd.f32 %v2610_v5, %v6219_v48  ;;  %v4331_v5 = vld [vmem:[%s6711_s5 + $0x28] sm:$0xff]  ;;  %3062 = vmatpush.bf16.msra.mxu2 %v4322_v32 }
 0x23d   : > { %3226 = vmatpush.bf16.msra.mxu3 %v4331_v5  ;;  %v4329_v5 = vld [vmem:[%s6711_s5 + $0x18] sm:$0xff] }
 0x23e   : > { %2805 = vmatmul.bf16.vlgmr.msra.gmra.mxu0 %v6828_v56 }
 0x240   : > { %v2659_v37 = vpop.f32.mrf.mxu1  ;;  %3063 = vmatpush.bf16.msra.mxu2 %v4321_v15 }
 0x241   : > { %v6411_v46 = vadd.f32 %v2659_v37, %v2611_v4 }
 0x243   : > { %v2612_v28 = vpop.f32.mrf.mxu0  ;;  %2854 = vmatmul.bf16.vlgmr.msra.gmra.mxu1 %v5864_v61 }
 0x244   : > { %v2613_v42 = vadd.f32 %v2612_v28, %v6226_v23  ;;  %v6830_v28 = vld [vmem:[#allocation32_spill] sm:$0xff] }
 0x248   : > { %v2661_v48 = vpop.f32.mrf.mxu1 }
 0x249   : > { %v6421_v39 = vadd.f32 %v2661_v48, %v2613_v42  ;;  %v4330_v48 = vld [vmem:[%s6711_s5 + $0x20] sm:$0xff] }
 0x24a   : > { %3227 = vmatpush.bf16.msra.mxu3 %v4330_v48 }
 0x24b   : > { %v2615_v47 = vpop.f32.mrf.mxu0 }
 0x24c   : > { %v2616_v13 = vadd.f32 %v2615_v47, %v6247_v11 }
 0x24e   : > { %2810 = vmatmul.bf16.gmra.mxu0 %v6829_v1  ;;  %3228 = vmatpush.bf16.msra.mxu3 %v4329_v5 }
 0x250   : > { %v2664_v23 = vpop.f32.mrf.mxu1 }
 0x251   : > { %v6425_v61 = vadd.f32 %v2664_v23, %v2616_v13  ;;  %v6831_v23 = vld [vmem:[#allocation35_spill] sm:$0xff] }
 0x253   : > { %v2617_v10 = vpop.f32.mrf.mxu0  ;;  %2859 = vmatmul.bf16.gmra.mxu1 %v5892_v49 }
 0x254   : > { %v2618_v55 = vadd.f32 %v2617_v10, %v6254_v59 }
 0x258   : > { %v2666_v11 = vpop.f32.mrf.mxu1 }
 0x259   : > { %v6435_v4 = vadd.f32 %v2666_v11, %v2618_v55 }
 0x25b   : > { %v2620_v56 = vpop.f32.mrf.mxu0 }
 0x25c   : > { %v2621_v37 = vadd.f32 %v2620_v56, %v6275_v2 }
 0x25e   : > { %2815 = vmatmul.bf16.gmra.mxu0 %v6830_v28  ;;  %v6832_v28 = vld [vmem:[#allocation39_spill] sm:$0xff] }
 0x260   : > { %v2669_v59 = vpop.f32.mrf.mxu1 }
 0x261   : > { %v6439_v49 = vadd.f32 %v2669_v59, %v2621_v37  ;;  %v2486_v37 = vadd.f32 %v6333_v9, %v6198_v43 }
 0x263   : > { %v2622_v42 = vpop.f32.mrf.mxu0  ;;  %2864 = vmatmul.bf16.gmra.mxu1 %v5920_v62 }
 0x264   : > { %v2623_v16 = vadd.f32 %v2622_v42, %v6282_v52 }
 0x268   : > { %v2671_v2 = vpop.f32.mrf.mxu1 }
 0x269   : > { %v6449_v47 = vadd.f32 %v2671_v2, %v2623_v16  ;;  %v4320_v2 = vld [vmem:[%s6709_s3 + $0x10] sm:$0xff] }
 0x26a   : > { %3064 = vmatpush.bf16.msra.mxu2 %v4320_v2 }
 0x26b   : > { %v2625_v13 = vpop.f32.mrf.mxu0 }
 0x26c   : > { %v2626_v1 = vadd.f32 %v2625_v13, %v6303_v33  ;;  %v2491_v13 = vadd.f32 %v6364_v54, %v6198_v43  ;;  %v4319_v54 = vld [vmem:[%s6709_s3 + $0x8] sm:$0xff] }
 0x26e   : > { %2820 = vmatmul.bf16.gmra.mxu0 %v6831_v23  ;;  %v2540_v23 = vadd.f32 %v6371_v50, %v2491_v13  ;;  %3065 = vmatpush.bf16.msra.mxu2 %v4319_v54 }
 0x270   : > { %v2674_v52 = vpop.f32.mrf.mxu1 }
 0x271   : > { %v6453_v62 = vadd.f32 %v2674_v52, %v2626_v1  ;;  %v6833_v52 = vld [vmem:[#allocation42_spill] sm:$0xff] }
 0x273   : > { %v2627_v10 = vpop.f32.mrf.mxu0  ;;  %2869 = vmatmul.bf16.gmra.mxu1 %v5951_v25  ;;  %v2535_v25 = vadd.f32 %v6340_v58, %v2486_v37 }
 0x274   : > { %v2628_v55 = vadd.f32 %v2627_v10, %v6310_v44  ;;  %v2589_v10 = vadd.f32 %v6369_v34, %v2540_v23 }
 0x275   : > { %v2584_v59 = vadd.f32 %v6338_v14, %v2535_v25  ;;  %v2496_v25 = vadd.f32 %v6383_v8, %v6198_v43  ;;  %v4318_v8 = vld [vmem:[%s6709_s3] sm:$0xff] }
 0x276   : > { %3066 = vmatpush.bf16.msra.mxu2 %v4318_v8 }
 0x278   : > { %v2676_v33 = vpop.f32.mrf.mxu1 }
 0x279   : > { %v6463_v11 = vadd.f32 %v2676_v33, %v2628_v55  ;;  %v2598_v55 = vpop.f32.mrf.mxu3 }
 0x27b   : > { %v2630_v56 = vpop.f32.mrf.mxu0 }
 0x27c   : > { %v2631_v44 = vadd.f32 %v2630_v56, %v6331_v20  ;;  %v4328_v20 = vld [vmem:[%s6711_s5 + $0x10] sm:$0xff] }
 0x27d   : > { %3229 = vmatpush.bf16.msra.mxu3 %v4328_v20 }
 0x27e   : > { %2825 = vmatmul.bf16.gmra.mxu0 %v6832_v28 }
 0x280   : > { %v2679_v42 = vpop.f32.mrf.mxu1 }
 0x281   : > { %v6471_v16 = vadd.f32 %v2679_v42, %v2631_v44  ;;  %v2757_v28 = vpop.f32.mrf.mxu3  ;;  %v6834_v42 = vld [vmem:[#allocation46_spill] sm:$0xff] }
 0x283   : > { %v2632_v32 = vpop.f32.mrf.mxu0  ;;  %2874 = vmatmul.bf16.gmra.mxu1 %v5980_v3  ;;  %v2549_v3 = vpop.f32.mrf.mxu2 }
 0x284   : > { %v2633_v48 = vadd.f32 %v2632_v32, %v2584_v59  ;;  %v2545_v59 = vadd.f32 %v6390_v26, %v2496_v25 }
 0x288   : > { %v2681_v9 = vpop.f32.mrf.mxu1 }
 0x289   : > { %v6480_v58 = vadd.f32 %v2681_v9, %v2633_v48  ;;  %v2594_v48 = vadd.f32 %v6388_v19, %v2545_v59  ;;  %v2759_v13 = vpop.f32.mrf.mxu3 }
 0x28b   : > { %v2635_v14 = vpop.f32.mrf.mxu0  ;;  %v2708_v50 = vpop.f32.mrf.mxu2 }
 0x28c   : > { %v2636_v1 = vadd.f32 %v2635_v14, %v6362_v53  ;;  %v4327_v53 = vld [vmem:[%s6711_s5 + $0x8] sm:$0xff]  ;;  %v2709_v25 = vadd.f32 %v2708_v50, %v6411_v46 }
 0x28d   : > { %3230 = vmatpush.bf16.msra.mxu3 %v4327_v53 }
 0x28e   : > { %2830 = vmatmul.bf16.gmra.mxu0 %v6833_v52  ;;  %v2501_v52 = vadd.f32 %v6407_v45, %v6198_v43  ;;  %v2758_v45 = vadd.f32 %v2757_v28, %v2709_v25 }
 0x290   : > { %v2684_v15 = vpop.f32.mrf.mxu1 }
 0x291   : > { %v6488_v5 = vadd.f32 %v2684_v15, %v2636_v1  ;;  %v2762_v15 = vpop.f32.mrf.mxu3 }
 0x293   : > { %v2637_v33 = vpop.f32.mrf.mxu0  ;;  %2879 = vmatmul.bf16.gmra.mxu1 %v6034_v22  ;;  %v2710_v32 = vpop.f32.mrf.mxu2 }
 0x294   : > { %v2638_v56 = vadd.f32 %v2637_v33, %v2589_v10  ;;  %v2550_v10 = vadd.f32 %v2549_v3, %v2501_v52 }
 0x296   : > { %v2599_v33 = vadd.f32 %v2598_v55, %v2550_v10  ;;  %v2711_v55 = vadd.f32 %v2710_v32, %v6421_v39 }
 0x298   : > { %v2686_v34 = vpop.f32.mrf.mxu1  ;;  %v2760_v8 = vadd.f32 %v2759_v13, %v2711_v55  ;;  %v2899_v55 = vmax.f32 %v6222_v40, 0.0 }
 0x299   : > { %v6497_v37 = vadd.f32 %v2686_v34, %v2638_v56 }
 0x29b   : > { %v2640_v44 = vpop.f32.mrf.mxu0  ;;  %v2713_v1 = vpop.f32.mrf.mxu2 }
 0x29c   : > { %v2641_v22 = vadd.f32 %v2640_v44, %v6381_v51  ;;  %v4326_v51 = vld [vmem:[%s6711_s5] sm:$0xff]  ;;  %v2714_v50 = vadd.f32 %v2713_v1, %v6425_v61 }
 0x29d   : > { %3231 = vmatpush.bf16.msra.mxu3 %v4326_v51 }
 0x29e   : > { %2835 = vmatmul.bf16.gmra.mxu0 %v6834_v42  ;;  %v2763_v10 = vadd.f32 %v2762_v15, %v2714_v50 }
 0x2a0   : > { %v2689_v2 = vpop.f32.mrf.mxu1 }
 0x2a1   : > { %v6505_v20 = vadd.f32 %v2689_v2, %v2641_v22  ;;  %v2764_v22 = vpop.f32.mrf.mxu3 }
 0x2a3   : > { %v2642_v9 = vpop.f32.mrf.mxu0  ;;  %2884 = vmatmul.bf16.gmra.mxu1 %v6110_v60  ;;  %v2715_v44 = vpop.f32.mrf.mxu2 }
 0x2a4   : > { %v2643_v14 = vadd.f32 %v2642_v9, %v2594_v48 }
 0x2a8   : > { %v2691_v26 = vpop.f32.mrf.mxu1 }
 0x2a9   : > { %v6514_v23 = vadd.f32 %v2691_v26, %v2643_v14  ;;  %v2767_v9 = vpop.f32.mrf.mxu3  ;;  %v2895_v14 = vmax.f32 %v6190_v0, 0.0 }
 0x2ab   : > { %v2645_v19 = vpop.f32.mrf.mxu0  ;;  %v2718_v3 = vpop.f32.mrf.mxu2 }
 0x2ac   : > { %v2646_v60 = vadd.f32 %v2645_v19, %v6405_v17 }
 0x2ae   : > { %2840 = vmatmul.bf16.gmra.mxu0 %v5834_v36 }
 0x2b0   : > { %v2694_v56 = vpop.f32.mrf.mxu1 }
 0x2b1   : > { %v6520_v54 = vadd.f32 %v2694_v56, %v2646_v60  ;;  %v2897_v60 = vmax.f32 %v6203_v7, 0.0  ;;  %v2769_v32 = vpop.f32.mrf.mxu3 }
 0x2b3   : > { %v2647_v53 = vpop.f32.mrf.mxu0  ;;  %2889 = vmatmul.bf16.gmra.mxu1 %v6165_v38  ;;  %v2720_v26 = vpop.f32.mrf.mxu2 }
 0x2b4   : > { %v2648_v34 = vadd.f32 %v2647_v53, %v2599_v33  ;;  %v2716_v53 = vadd.f32 %v2715_v44, %v6435_v4  ;;  %v2719_v4 = vadd.f32 %v2718_v3, %v6439_v49  ;;  %v2721_v40 = vadd.f32 %v2720_v26, %v6449_v47 }
 0x2b6   : > { %v2765_v7 = vadd.f32 %v2764_v22, %v2716_v53 }
 0x2b8   : > { %v2696_v59 = vpop.f32.mrf.mxu1 }
 0x2b9   : > { %v6524_v43 = vadd.f32 %v2696_v59, %v2648_v34 }
 0x2bb   : > { %v2806_v17 = vpop.f32.mrf.mxu0 }
 0x2bc   : > { %v2807_v36 = vadd.f32 %v2806_v17, %v2758_v45  ;;  %v2723_v17 = vpop.f32.mrf.mxu2 }
 0x2bd   : > { %v2724_v47 = vadd.f32 %v2723_v17, %v6453_v62 }
 0x2c0   : > { %v2855_v42 = vpop.f32.mrf.mxu1 }
 0x2c1   : > { %v2856_v48 = vadd.f32 %v2855_v42, %v2807_v36 }
 0x2c3   : > { %v2808_v2 = vpop.f32.mrf.mxu0  ;;  %v2896_v38 = vmax.f32 %v2856_v48, 0.0 }
 0x2c4   : > { %v2809_v46 = vadd.f32 %v2808_v2, %v2760_v8  ;;  %v2772_v2 = vpop.f32.mrf.mxu3 }
 0x2c5   : > { %v2927_v51 = vpack.c.bf16 %v2896_v38, %v2895_v14  ;;  %v2901_v38 = vmax.f32 %v6231_v21, 0.0  ;;  %v2770_v21 = vadd.f32 %v2769_v32, %v2721_v40 }
 0x2c7   : > { %v2979_v0 = vunpack.c.l.b16 %v2927_v51  ;;  %v3144_v13 = vunpack.c.h.b16 %v2927_v51  ;;  %v2768_v51 = vadd.f32 %v2767_v9, %v2719_v4 }
 0x2c8   : > { %v2857_v19 = vpop.f32.mrf.mxu1 }
 0x2c9   : > { %v2858_v52 = vadd.f32 %v2857_v19, %v2809_v46  ;;  %v2725_v46 = vpop.f32.mrf.mxu2 }
 0x2cb   : > { %v2811_v28 = vpop.f32.mrf.mxu0  ;;  %v2898_v39 = vmax.f32 %v2858_v52, 0.0 }
 0x2cc   : > { %v2812_v56 = vadd.f32 %v2811_v28, %v2763_v10 }
 0x2cd   : > { %v2928_v33 = vpack.c.bf16 %v2898_v39, %v2897_v60  ;;  %v2774_v39 = vpop.f32.mrf.mxu3 }
 0x2cf   : > { %v2980_v34 = vunpack.c.l.b16 %v2928_v33  ;;  %v3145_v25 = vunpack.c.h.b16 %v2928_v33 }
 0x2d0   : > { %v2860_v59 = vpop.f32.mrf.mxu1 }
 0x2d1   : > { %v2995_v61 = vpack.c.b16 %v2980_v34, %v2979_v0  ;;  %v3160_v1 = vpack.c.b16 %v3145_v25, %v3144_v13  ;;  %v2861_v45 = vadd.f32 %v2860_v59, %v2812_v56  ;;  %v2903_v0 = vmax.f32 %v6250_v31, 0.0  ;;  %v2728_v13 = vpop.f32.mrf.mxu2 }
 0x2d2   : > { %v2726_v31 = vadd.f32 %v2725_v46, %v6463_v11  ;;  %v2729_v11 = vadd.f32 %v2728_v13, %v6471_v16 }
 0x2d3   : > { %v2813_v36 = vpop.f32.mrf.mxu0  ;;  %v2900_v15 = vmax.f32 %v2861_v45, 0.0  ;;  %3067 = vmatmul.bf16.vlgmr.msra.gmra.mxu2 %v2995_v61  ;;  %3232 = vmatmul.bf16.vlgmr.msra.gmra.mxu3 %v3160_v1  ;;  %v2905_v45 = vmax.f32 %v6259_v63, 0.0 }
 0x2d4   : > { %v2814_v48 = vadd.f32 %v2813_v36, %v2765_v7  ;;  %v2773_v36 = vadd.f32 %v2772_v2, %v2724_v47  ;;  %v2911_v47 = vmax.f32 %v6306_v18, 0.0 }
 0x2d5   : > { %v2929_v42 = vpack.c.bf16 %v2900_v15, %v2899_v55  ;;  %v2777_v1 = vpop.f32.mrf.mxu3 }
 0x2d7   : > { %v2981_v22 = vunpack.c.l.b16 %v2929_v42  ;;  %v3146_v28 = vunpack.c.h.b16 %v2929_v42 }
 0x2d8   : > { %v2862_v44 = vpop.f32.mrf.mxu1 }
 0x2d9   : > { %v2863_v14 = vadd.f32 %v2862_v44, %v2814_v48  ;;  %v2730_v32 = vpop.f32.mrf.mxu2 }
 0x2db   : > { %v2816_v8 = vpop.f32.mrf.mxu0  ;;  %v2902_v50 = vmax.f32 %v2863_v14, 0.0 }
 0x2dc   : > { %v2817_v52 = vadd.f32 %v2816_v8, %v2768_v51  ;;  %v2907_v51 = vmax.f32 %v6278_v24, 0.0  ;;  %v2731_v24 = vadd.f32 %v2730_v32, %v6480_v58 }
 0x2dd   : > { %v2930_v19 = vpack.c.bf16 %v2902_v50, %v2901_v38  ;;  %v2775_v50 = vadd.f32 %v2774_v39, %v2726_v31  ;;  %v2779_v2 = vpop.f32.mrf.mxu3 }
 0x2df   : > { %v2982_v60 = vunpack.c.l.b16 %v2930_v19  ;;  %v3147_v10 = vunpack.c.h.b16 %v2930_v19 }
 0x2e0   : > { %v2865_v33 = vpop.f32.mrf.mxu1 }
 0x2e1   : > { %v2866_v56 = vadd.f32 %v2865_v33, %v2817_v52  ;;  %v2996_v49 = vpack.c.b16 %v2982_v60, %v2981_v22  ;;  %v3161_v3 = vpack.c.b16 %v3147_v10, %v3146_v28  ;;  %v2733_v40 = vpop.f32.mrf.mxu2  ;;  %v2909_v60 = vmax.f32 %v6287_v41, 0.0 }
 0x2e2   : > { %v2778_v10 = vadd.f32 %v2777_v1, %v2729_v11  ;;  %v2734_v58 = vadd.f32 %v2733_v40, %v6488_v5 }
 0x2e3   : > { %v2818_v53 = vpop.f32.mrf.mxu0  ;;  %v2904_v9 = vmax.f32 %v2866_v56, 0.0  ;;  %3072 = vmatmul.bf16.gmra.mxu2 %v2996_v49  ;;  %3237 = vmatmul.bf16.gmra.mxu3 %v3161_v3 }
 0x2e4   : > { %v2819_v25 = vadd.f32 %v2818_v53, %v2770_v21 }
 0x2e5   : > { %v2931_v34 = vpack.c.bf16 %v2904_v9, %v2903_v0  ;;  %v2782_v39 = vpop.f32.mrf.mxu3 }
 0x2e6   : > { %v2783_v31 = vadd.f32 %v2782_v39, %v2734_v58 }
 0x2e7   : > { %v2983_v42 = vunpack.c.l.b16 %v2931_v34  ;;  %v3148_v48 = vunpack.c.h.b16 %v2931_v34 }
 0x2e8   : > { %v2867_v26 = vpop.f32.mrf.mxu1 }
 0x2e9   : > { %v2868_v59 = vadd.f32 %v2867_v26, %v2819_v25  ;;  %v2780_v26 = vadd.f32 %v2779_v2, %v2731_v24  ;;  %v2735_v41 = vpop.f32.mrf.mxu2  ;;  %v2915_v2 = vmax.f32 %v6336_v30, 0.0 }
 0x2eb   : > { %v2821_v61 = vpop.f32.mrf.mxu0  ;;  %v2906_v55 = vmax.f32 %v2868_v59, 0.0 }
 0x2ec   : > { %v2822_v15 = vadd.f32 %v2821_v61, %v2773_v36 }
 0x2ed   : > { %v2932_v7 = vpack.c.bf16 %v2906_v55, %v2905_v45  ;;  %v2784_v45 = vpop.f32.mrf.mxu3 }
 0x2ef   : > { %v2984_v4 = vunpack.c.l.b16 %v2932_v7  ;;  %v3149_v44 = vunpack.c.h.b16 %v2932_v7 }
 0x2f0   : > { %v2870_v14 = vpop.f32.mrf.mxu1 }
 0x2f1   : > { %v2871_v8 = vadd.f32 %v2870_v14, %v2822_v15  ;;  %v2997_v62 = vpack.c.b16 %v2984_v4, %v2983_v42  ;;  %v3162_v17 = vpack.c.b16 %v3149_v44, %v3148_v48  ;;  %v2913_v15 = vmax.f32 %v6315_v12, 0.0  ;;  %v2738_v42 = vpop.f32.mrf.mxu2 }
 0x2f2   : > { %v2736_v4 = vadd.f32 %v2735_v41, %v6497_v37  ;;  %v2739_v37 = vadd.f32 %v2738_v42, %v6505_v20 }
 0x2f3   : > { %v2823_v38 = vpop.f32.mrf.mxu0  ;;  %v2908_v63 = vmax.f32 %v2871_v8, 0.0  ;;  %3077 = vmatmul.bf16.gmra.mxu2 %v2997_v62  ;;  %3242 = vmatmul.bf16.gmra.mxu3 %v3162_v17 }
 0x2f4   : > { %v2824_v52 = vadd.f32 %v2823_v38, %v2775_v50  ;;  %v2785_v12 = vadd.f32 %v2784_v45, %v2736_v4  ;;  %v2921_v45 = vmax.f32 %v6377_v35, 0.0 }
 0x2f5   : > { %v2933_v19 = vpack.c.bf16 %v2908_v63, %v2907_v51  ;;  %v2787_v63 = vpop.f32.mrf.mxu3 }
 0x2f7   : > { %v2985_v3 = vunpack.c.l.b16 %v2933_v19  ;;  %v3150_v53 = vunpack.c.h.b16 %v2933_v19 }
 0x2f8   : > { %v2872_v46 = vpop.f32.mrf.mxu1 }
 0x2f9   : > { %v2873_v22 = vadd.f32 %v2872_v46, %v2824_v52  ;;  %v2740_v46 = vpop.f32.mrf.mxu2 }
 0x2fa   : > { %v2741_v30 = vadd.f32 %v2740_v46, %v6514_v23 }
 0x2fb   : > { %v2826_v28 = vpop.f32.mrf.mxu0  ;;  %v2910_v33 = vmax.f32 %v2873_v22, 0.0 }
 0x2fc   : > { %v2827_v49 = vadd.f32 %v2826_v28, %v2778_v10  ;;  %v2788_v10 = vadd.f32 %v2787_v63, %v2739_v37  ;;  %v2925_v63 = vmax.f32 %v6395_v29, 0.0  ;;  %v6569_v29 = vld [vmem:[%s6712_s6] ss:$0 sm:$0xff] }
 0x2fd   : > { %v2934_v56 = vpack.c.bf16 %v2910_v33, %v2909_v60  ;;  %v2917_v60 = vmax.f32 %v6346_v27, 0.0 }
 0x2ff   : > { %v2986_v0 = vunpack.c.l.b16 %v2934_v56  ;;  %v3151_v21 = vunpack.c.h.b16 %v2934_v56  ;;  %v2789_v56 = vpop.f32.mrf.mxu3 }
 0x300   : > { %v2875_v9 = vpop.f32.mrf.mxu1  ;;  %v2790_v27 = vadd.f32 %v2789_v56, %v2741_v30 }
 0x301   : > { %v2876_v34 = vadd.f32 %v2875_v9, %v2827_v49  ;;  %v2998_v16 = vpack.c.b16 %v2986_v0, %v2985_v3  ;;  %v3163_v13 = vpack.c.b16 %v3151_v21, %v3150_v53  ;;  %v2743_v9 = vpop.f32.mrf.mxu2 }
 0x302   : > { %v2744_v23 = vadd.f32 %v2743_v9, %v6520_v54 }
 0x303   : > { %v2828_v25 = vpop.f32.mrf.mxu0  ;;  %v2912_v59 = vmax.f32 %v2876_v34, 0.0  ;;  %3082 = vmatmul.bf16.gmra.mxu2 %v2998_v16  ;;  %3247 = vmatmul.bf16.gmra.mxu3 %v3163_v13 }
 0x304   : > { %v2829_v1 = vadd.f32 %v2828_v25, %v2780_v26  ;;  %v2919_v25 = vmax.f32 %v6367_v57, 0.0 }
 0x305   : > { %v2935_v61 = vpack.c.bf16 %v2912_v59, %v2911_v47 }
 0x307   : > { %v2987_v44 = vunpack.c.l.b16 %v2935_v61  ;;  %v3152_v14 = vunpack.c.h.b16 %v2935_v61  ;;  %v2792_v59 = vpop.f32.mrf.mxu3 }
 0x308   : > { %v2877_v36 = vpop.f32.mrf.mxu1 }
 0x309   : > { %v2878_v55 = vadd.f32 %v2877_v36, %v2829_v1  ;;  %v2793_v36 = vadd.f32 %v2792_v59, %v2744_v23 }
 0x30b   : > { %v2831_v7 = vpop.f32.mrf.mxu0  ;;  %v2914_v32 = vmax.f32 %v2878_v55, 0.0  ;;  %v2745_v55 = vpop.f32.mrf.mxu2 }
 0x30c   : > { %v2832_v18 = vadd.f32 %v2831_v7, %v2783_v31  ;;  %v2746_v57 = vadd.f32 %v2745_v55, %v6524_v43 }
 0x30d   : > { %v2936_v48 = vpack.c.bf16 %v2914_v32, %v2913_v15 }
 0x30f   : > { %v2988_v8 = vunpack.c.l.b16 %v2936_v48  ;;  %v3153_v62 = vunpack.c.h.b16 %v2936_v48  ;;  %v2794_v4 = vpop.f32.mrf.mxu3 }
 0x310   : > { %v2880_v17 = vpop.f32.mrf.mxu1  ;;  %v2795_v35 = vadd.f32 %v2794_v4, %v2746_v57 }
 0x311   : > { %v2881_v38 = vadd.f32 %v2880_v17, %v2832_v18  ;;  %v2999_v5 = vpack.c.b16 %v2988_v8, %v2987_v44  ;;  %v3164_v51 = vpack.c.b16 %v3153_v62, %v3152_v14  ;;  %v2923_v17 = vmax.f32 %v6386_v6, 0.0  ;;  %v6564_v6 = vld [vmem:[%s6710_s4] ss:$0 sm:$0xff] }
 0x313   : > { %v2833_v50 = vpop.f32.mrf.mxu0  ;;  %v2916_v19 = vmax.f32 %v2881_v38, 0.0  ;;  %3087 = vmatmul.bf16.gmra.mxu2 %v2999_v5  ;;  %3252 = vmatmul.bf16.gmra.mxu3 %v3164_v51 }
 0x314   : > { %v2834_v11 = vadd.f32 %v2833_v50, %v2785_v12 }
 0x315   : > { %v2937_v52 = vpack.c.bf16 %v2916_v19, %v2915_v2 }
 0x317   : > { %v2989_v39 = vunpack.c.l.b16 %v2937_v52  ;;  %v3154_v3 = vunpack.c.h.b16 %v2937_v52 }
 0x318   : > { %v2882_v40 = vpop.f32.mrf.mxu1 }
 0x319   : > { %v2883_v22 = vadd.f32 %v2882_v40, %v2834_v11 }
 0x31b   : > { %v2836_v28 = vpop.f32.mrf.mxu0  ;;  %v2918_v33 = vmax.f32 %v2883_v22, 0.0 }
 0x31c   : > { %v2837_v24 = vadd.f32 %v2836_v28, %v2788_v10 }
 0x31d   : > { %v2938_v49 = vpack.c.bf16 %v2918_v33, %v2917_v60 }
 0x31f   : > { %v2990_v53 = vunpack.c.l.b16 %v2938_v49  ;;  %v3155_v0 = vunpack.c.h.b16 %v2938_v49 }
 0x320   : > { %v2885_v21 = vpop.f32.mrf.mxu1 }
 0x321   : > { %v2886_v20 = vadd.f32 %v2885_v21, %v2837_v24  ;;  %v3000_v34 = vpack.c.b16 %v2990_v53, %v2989_v39  ;;  %v3165_v16 = vpack.c.b16 %v3155_v0, %v3154_v3 }
 0x323   : > { %v2838_v13 = vpop.f32.mrf.mxu0  ;;  %v2920_v47 = vmax.f32 %v2886_v20, 0.0  ;;  %3092 = vmatmul.bf16.gmra.mxu2 %v3000_v34  ;;  %3257 = vmatmul.bf16.gmra.mxu3 %v3165_v16 }
 0x324   : > { %v2839_v41 = vadd.f32 %v2838_v13, %v2790_v27 }
 0x325   : > { %v2939_v26 = vpack.c.bf16 %v2920_v47, %v2919_v25 }
 0x327   : > { %v2991_v32 = vunpack.c.l.b16 %v2939_v26  ;;  %v3156_v42 = vunpack.c.h.b16 %v2939_v26 }
 0x328   : > { %v2887_v61 = vpop.f32.mrf.mxu1 }
 0x329   : > { %v2888_v1 = vadd.f32 %v2887_v61, %v2839_v41 }
 0x32b   : > { %v2841_v58 = vpop.f32.mrf.mxu0  ;;  %v2922_v7 = vmax.f32 %v2888_v1, 0.0 }
 0x32c   : > { %v2842_v31 = vadd.f32 %v2841_v58, %v2793_v36 }
 0x32d   : > { %v2940_v15 = vpack.c.bf16 %v2922_v7, %v2921_v45 }
 0x32f   : > { %v2992_v48 = vunpack.c.l.b16 %v2940_v15  ;;  %v3157_v18 = vunpack.c.h.b16 %v2940_v15 }
 0x330   : > { %v2890_v44 = vpop.f32.mrf.mxu1 }
 0x331   : > { %v2891_v14 = vadd.f32 %v2890_v44, %v2842_v31  ;;  %v3001_v54 = vpack.c.b16 %v2992_v48, %v2991_v32  ;;  %v3166_v8 = vpack.c.b16 %v3157_v18, %v3156_v42 }
 0x333   : > { %v2843_v62 = vpop.f32.mrf.mxu0  ;;  %v2924_v38 = vmax.f32 %v2891_v14, 0.0  ;;  %3097 = vmatmul.bf16.gmra.mxu2 %v3001_v54  ;;  %3262 = vmatmul.bf16.gmra.mxu3 %v3166_v8 }
 0x334   : > { %v2844_v51 = vadd.f32 %v2843_v62, %v2795_v35 }
 0x335   : > { %v2941_v5 = vpack.c.bf16 %v2924_v38, %v2923_v17 }
 0x337   : > { %v2993_v19 = vunpack.c.l.b16 %v2941_v5  ;;  %v3158_v52 = vunpack.c.h.b16 %v2941_v5 }
 0x338   : > { %v2892_v43 = vpop.f32.mrf.mxu1 }
 0x339   : > { %v2893_v50 = vadd.f32 %v2892_v43, %v2844_v51 }
 0x33b   : > { %v2926_v2 = vmax.f32 %v2893_v50, 0.0 }
 0x33d   : > { %v2942_v12 = vpack.c.bf16 %v2926_v2, %v2925_v63 }
 0x33f   : > { %v2994_v11 = vunpack.c.l.b16 %v2942_v12  ;;  %v3159_v37 = vunpack.c.h.b16 %v2942_v12 }
 0x341   : > { %v3002_v46 = vpack.c.b16 %v2994_v11, %v2993_v19  ;;  %v3167_v40 = vpack.c.b16 %v3159_v37, %v3158_v52 }
 0x343   : > { %3102 = vmatmul.bf16.gmra.mxu2 %v3002_v46  ;;  %3267 = vmatmul.bf16.gmra.mxu3 %v3167_v40 }
 0x356   : > { %v3068_v22 = vpop.f32.mrf.mxu2  ;;  %v3233_v28 = vpop.f32.mrf.mxu3 }
 0x357   : > { %v3069_v60 = vadd.f32 %v6564_v6, %v3068_v22  ;;  %v3234_v10 = vadd.f32 %v6569_v29, %v3233_v28 }
 0x359   : > { %3108 = vst [vmem:[%s6573_s11] sm:$0xff] %v3069_v60 }
 0x35a   : > { %3273 = vst [vmem:[%s6576_s17] sm:$0xff] %v3234_v10 }
 0x35e   : > { %v3070_v33 = vpop.f32.mrf.mxu2  ;;  %v3235_v56 = vpop.f32.mrf.mxu3 }
 0x35f   : > { %v3071_v49 = vadd.f32 %v6564_v6, %v3070_v33  ;;  %v3236_v24 = vadd.f32 %v6569_v29, %v3235_v56 }
 0x361   : > { %3109 = vst [vmem:[%s6573_s11 + $0x8] sm:$0xff] %v3071_v49 }
 0x362   : > { %3274 = vst [vmem:[%s6576_s17 + $0x8] sm:$0xff] %v3236_v24 }
 0x366   : > { %v3073_v30 = vpop.f32.mrf.mxu2  ;;  %v3238_v39 = vpop.f32.mrf.mxu3 }
 0x367   : > { %v3074_v3 = vadd.f32 %v6564_v6, %v3073_v30  ;;  %v3239_v53 = vadd.f32 %v6569_v29, %v3238_v39 }
 0x369   : > { %3110 = vst [vmem:[%s6573_s11 + $0x10] sm:$0xff] %v3074_v3 }
 0x36a   : > { %3275 = vst [vmem:[%s6576_s17 + $0x10] sm:$0xff] %v3239_v53 }
 0x36e   : > { %v3075_v0 = vpop.f32.mrf.mxu2  ;;  %v3240_v21 = vpop.f32.mrf.mxu3 }
 0x36f   : > { %v3076_v9 = vadd.f32 %v6564_v6, %v3075_v0  ;;  %v3241_v20 = vadd.f32 %v6569_v29, %v3240_v21 }
 0x371   : > { %3111 = vst [vmem:[%s6573_s11 + $0x18] sm:$0xff] %v3076_v9 }
 0x372   : > { %3276 = vst [vmem:[%s6576_s17 + $0x18] sm:$0xff] %v3241_v20 }
 0x376   : > { %v3078_v34 = vpop.f32.mrf.mxu2  ;;  %v3243_v16 = vpop.f32.mrf.mxu3 }
 0x377   : > { %v3079_v13 = vadd.f32 %v6564_v6, %v3078_v34  ;;  %v3244_v25 = vadd.f32 %v6569_v29, %v3243_v16 }
 0x379   : > { %3112 = vst [vmem:[%s6573_s11 + $0x20] sm:$0xff] %v3079_v13 }
 0x37a   : > { %3277 = vst [vmem:[%s6576_s17 + $0x20] sm:$0xff] %v3244_v25 }
 0x37e   : > { %v3080_v27 = vpop.f32.mrf.mxu2  ;;  %v3245_v47 = vpop.f32.mrf.mxu3 }
 0x37f   : > { %v3081_v26 = vadd.f32 %v6564_v6, %v3080_v27  ;;  %v3246_v41 = vadd.f32 %v6569_v29, %v3245_v47 }
 0x381   : > { %3113 = vst [vmem:[%s6573_s11 + $0x28] sm:$0xff] %v3081_v26 }
 0x382   : > { %3278 = vst [vmem:[%s6576_s17 + $0x28] sm:$0xff] %v3246_v41 }
 0x386   : > { %v3083_v59 = vpop.f32.mrf.mxu2  ;;  %v3248_v23 = vpop.f32.mrf.mxu3 }
 0x387   : > { %v3084_v61 = vadd.f32 %v6564_v6, %v3083_v59  ;;  %v3249_v1 = vadd.f32 %v6569_v29, %v3248_v23 }
 0x389   : > { %3114 = vst [vmem:[%s6573_s11 + $0x30] sm:$0xff] %v3084_v61 }
 0x38a   : > { %3279 = vst [vmem:[%s6576_s17 + $0x30] sm:$0xff] %v3249_v1 }
 0x38e   : > { %v3085_v58 = vpop.f32.mrf.mxu2  ;;  %v3250_v45 = vpop.f32.mrf.mxu3 }
 0x38f   : > { %v3086_v36 = vadd.f32 %v6564_v6, %v3085_v58  ;;  %v3251_v55 = vadd.f32 %v6569_v29, %v3250_v45 }
 0x391   : > { %3115 = vst [vmem:[%s6573_s11 + $0x38] sm:$0xff] %v3086_v36 }
 0x392   : > { %3280 = vst [vmem:[%s6576_s17 + $0x38] sm:$0xff] %v3251_v55 }
 0x396   : > { %v3088_v7 = vpop.f32.mrf.mxu2  ;;  %v3253_v15 = vpop.f32.mrf.mxu3 }
 0x397   : > { %v3089_v31 = vadd.f32 %v6564_v6, %v3088_v7  ;;  %v3254_v57 = vadd.f32 %v6569_v29, %v3253_v15 }
 0x399   : > { %3116 = vst [vmem:[%s6573_s11 + $0x40] sm:$0xff] %v3089_v31 }
 0x39a   : > { %3281 = vst [vmem:[%s6576_s17 + $0x40] sm:$0xff] %v3254_v57 }
 0x39e   : > { %v3090_v32 = vpop.f32.mrf.mxu2  ;;  %v3255_v42 = vpop.f32.mrf.mxu3 }
 0x39f   : > { %v3091_v48 = vadd.f32 %v6564_v6, %v3090_v32  ;;  %v3256_v18 = vadd.f32 %v6569_v29, %v3255_v42 }
 0x3a1   : > { %3117 = vst [vmem:[%s6573_s11 + $0x48] sm:$0xff] %v3091_v48 }
 0x3a2   : > { %3282 = vst [vmem:[%s6576_s17 + $0x48] sm:$0xff] %v3256_v18 }
 0x3a6   : > { %v3093_v4 = vpop.f32.mrf.mxu2  ;;  %v3258_v44 = vpop.f32.mrf.mxu3 }
 0x3a7   : > { %v3094_v14 = vadd.f32 %v6564_v6, %v3093_v4  ;;  %v3259_v54 = vadd.f32 %v6569_v29, %v3258_v44 }
 0x3a9   : > { %3118 = vst [vmem:[%s6573_s11 + $0x50] sm:$0xff] %v3094_v14 }
 0x3aa   : > { %3283 = vst [vmem:[%s6576_s17 + $0x50] sm:$0xff] %v3259_v54 }
 0x3ae   : > { %v3095_v8 = vpop.f32.mrf.mxu2  ;;  %v3260_v62 = vpop.f32.mrf.mxu3 }
 0x3af   : > { %v3096_v17 = vadd.f32 %v6564_v6, %v3095_v8  ;;  %v3261_v35 = vadd.f32 %v6569_v29, %v3260_v62 }
 0x3b1   : > { %3119 = vst [vmem:[%s6573_s11 + $0x58] sm:$0xff] %v3096_v17 }
 0x3b2   : > { %3284 = vst [vmem:[%s6576_s17 + $0x58] sm:$0xff] %v3261_v35 }
 0x3b6   : > { %v3098_v38 = vpop.f32.mrf.mxu2  ;;  %v3263_v5 = vpop.f32.mrf.mxu3 }
 0x3b7   : > { %v3099_v51 = vadd.f32 %v6564_v6, %v3098_v38  ;;  %v3264_v43 = vadd.f32 %v6569_v29, %v3263_v5 }
 0x3b9   : > { %3120 = vst [vmem:[%s6573_s11 + $0x60] sm:$0xff] %v3099_v51 }
 0x3ba   : > { %3285 = vst [vmem:[%s6576_s17 + $0x60] sm:$0xff] %v3264_v43 }
 0x3be   : > { %v3100_v50 = vpop.f32.mrf.mxu2  ;;  %v3265_v63 = vpop.f32.mrf.mxu3 }
 0x3bf   : > { %v3101_v2 = vadd.f32 %v6564_v6, %v3100_v50  ;;  %v3266_v12 = vadd.f32 %v6569_v29, %v3265_v63 }
 0x3c1   : > { %3121 = vst [vmem:[%s6573_s11 + $0x68] sm:$0xff] %v3101_v2 }
 0x3c2   : > { %3286 = vst [vmem:[%s6576_s17 + $0x68] sm:$0xff] %v3266_v12 }
 0x3c6   : > { %v3103_v19 = vpop.f32.mrf.mxu2  ;;  %v3268_v52 = vpop.f32.mrf.mxu3 }
 0x3c7   : > { %v3104_v11 = vadd.f32 %v6564_v6, %v3103_v19  ;;  %v3269_v37 = vadd.f32 %v6569_v29, %v3268_v52 }
 0x3c9   : > { %3122 = vst [vmem:[%s6573_s11 + $0x70] sm:$0xff] %v3104_v11 }
 0x3ca   : > { %3287 = vst [vmem:[%s6576_s17 + $0x70] sm:$0xff] %v3269_v37 }
 0x3ce   : > { %v3105_v46 = vpop.f32.mrf.mxu2  ;;  %v3270_v40 = vpop.f32.mrf.mxu3 }
 0x3cf   : > { %v3106_v22 = vadd.f32 %v6564_v6, %v3105_v46  ;;  %v3271_v28 = vadd.f32 %v6569_v29, %v3270_v40 }
 0x3d1   : > { %3123 = vst [vmem:[%s6573_s11 + $0x78] sm:$0xff] %v3106_v22 }
 0x3d2   : > { %3288 = vst [vmem:[%s6576_s17 + $0x78] sm:$0xff] %v3271_v28 }
 0x3d3   : > { %4580 = shalt.err (!%p4577_p7)
}
 0x3d4   : > { %s4681_s11 = smov 128   ;;  %s4682_s17 = smov 8  }
 0x3d5   : > { %4431 = dma.vmem_to_hbm [thread:$0]  (%p4779_p3), %s3310_s14, 2048, %s3312_s15, %s3290_s10, %s4681_s11, %s4681_s11, %s4682_s17  }
 0x3d6   : > { %s3295_s16 = scalar_lea.sflag [#allocation5], %s6558_s22  ;;  %s4595_s0 = sshra.s32 %s6650_s20, 4  ;;  %s4596_s0 = int_to_ptr.hbm [resolvable:$true] %s4595_s0 }
 0x3d7   : > { %s4597_s24 = scalar_lea.hbm %s4596_s0, 128  ;;  %s4601_s21 = scalar_lea.hbm %s6714_s8, 512 }
 0x3d8   : > { %p4598_p9 = scmp.ne.s32.totalorder %s4596_s0, %s4597_s24  ;;  %p4602_p12 = scmp.lt.s32.totalorder %s4596_s0, %s6714_s8 }
 0x3d9   : > { %p4603_p13 = scmp.lt.s32.totalorder %s4601_s21, %s4597_s24 }
 0x3da   : > { %p4599_p10 = pnand %p4598_p9, %p4779_p3 }
 0x3db   : > { %p4604_p0 = por %p4603_p13, %p4602_p12 }
 0x3dc   : > { %p4600_p11 = pneg %p4599_p10 }
 0x3de   : > { %p4605_p1 = pnand %p4604_p0, %p4600_p11 }
 0x3e0   : > { %4608 = shalt.err (!%p4605_p1)
}
 0x3e1   : > { %4432 = dma.vmem_to_hbm [thread:$0]  (%p4779_p3), %s6648_s13, 2048, %s6650_s20, %s3295_s16, %s4681_s11, %s4681_s11, %s4682_s17  }
 0x3e2 PF: > { %p4442_p2 = scmp.ge.s32.totalorder %s4679_s12, 2  ;;  %s3345_s22 = sand.u32 1, %s4651_s27  }
 0x3e3   : > { %s3346_s14 = scalar_lea.sflag [#allocation3], %s3345_s22 }
 0x3e4   : > { %p4436_p4 = pnand %p4442_p2, %p4788_p8 }
 0x3e6   : > { %p4437_p5 = pneg %p4436_p4 }
 0x3e8   : > { %4642 = dma.done.wait (%p4437_p5), %s3346_s14, 2048  }
 0x3e9   : > { %4644 = vsyncadd (%p4437_p5), %s3346_s14, 4294965248  ;;  %s3356_s0 = scalar_lea.sflag [#allocation5], %s3345_s22 }
 0x3ea   : > { %4646 = dma.done.wait (%p4437_p5), %s3356_s0, 2048  }
 0x3eb   : > { %4648 = vsyncadd (%p4437_p5), %s3356_s0, 4294965248  ;;  %s25_s12 = sadd.s32 1, %s4679_s12   ;;  %s6835_s18 = sld [smem:[#allocation12_spill]] }
 0x3ec   : > { %p22_p6 = scmp.ge.s32.totalorder %s25_s12, 6   ;;  %s6836_s30 = sld [smem:[#allocation8_spill]] }
 0x3ed   : > { %s6837_s9 = sld [smem:[#allocation9_spill]]  ;;  %s6840_s27 = smov %s4655_s28 }
 0x3ee   : > { %s6838_s10 = sld [smem:[#allocation10_spill]]  ;;  %s6841_s28 = smov %s4659_s29 }
 0x3ef   : > { %s6839_s11 = sld [smem:[#allocation11_spill]]  ;;  %24 = sbr.rel (!%p22_p6) target bundleno = 9 (0x9), region = 102 }
 0x3f1   : > { %s6842_s29 = smov %s6835_s18 }
 0x3f4   :  { %3362 = vsyncpa [#allocation3], 1 }
 0x3f5   :  { %3364 = vsyncpa [#allocation3 + $0x1], 1 }
 0x3f6   :  { %3365 = vsyncpa [#allocation5], 1 }
 0x3f7   :  { %3367 = vsyncpa [#allocation5 + $0x1], 1 }

</bundles_post_ra>
